<compile_context>
chip_gen: v7x
topology: tpu7x:2x2x1
jax: 0.10.0
libtpu: 0.0.40
codegen_flags: <defaults>
</compile_context>

<pallas_src>
import numpy as np
import jax
import jax.numpy as jnp
from jax.experimental import pallas as pl
from jax.experimental.pallas import tpu as pltpu


def _round_up(x: int, m: int) -> int:
    return ((x + m - 1) // m) * m


def _pair_indices(num_feat: int, offset: int):
    """Lower-triangular pair ordering matching the PyTorch reference."""
    return [(i, j) for i in range(num_feat) for j in range(i + offset)]


def _make_selection_matrix(num_feat: int, offset: int, p_pad: int) -> np.ndarray:
    """sel[i*F + j, p] = 1 selects Z[i, j] for flat pair index p.

    Zero-padded to p_pad columns so the kernel's output block is lane-dense
    (padded columns of zflat come out exactly zero).
    """
    pairs = _pair_indices(num_feat, offset)
    sel = np.zeros((num_feat * num_feat, p_pad), dtype=np.float32)
    for p, (i, j) in enumerate(pairs):
        sel[i * num_feat + j, p] = 1.0
    return sel


def _pick_batch_tile(batch: int, requested: int, itemsize: int) -> int:
    """Largest divisor of `batch` <= requested that respects sublane packing."""
    mult = max(8, 32 // itemsize)       # 8 rows f32 / 16 bf16 / 32 int8
    tb = min(int(requested), batch)
    tb -= tb % mult
    while tb >= mult and batch % tb:
        tb -= mult
    if tb < mult or batch % tb:
        return batch                    # block dim == full array dim is always legal
    return tb


def _make_dot_kernel(num_feat: int, d: int, mxu_dtype):
    ff = num_feat * num_feat

    def kernel(x_ref, t_ref, sel_ref, o_ref):
        # x_ref:   (tb, d)        dense features (layout-matched to o[:, :d])
        # t_ref:   (tb, F, d)     stacked features
        # sel_ref: (F*F, P_pad)   static 0/1 triangular-selection matrix (f32)
        # o_ref:   (tb, out_pad)  lane-dense (multiple of 128) output tile
        t = t_ref[...].astype(mxu_dtype)
        # Batched Z = T @ T^T on the MXU, f32 accumulation.
        z = jnp.einsum('bfd,bgd->bfg', t, t,
                       preferred_element_type=jnp.float32)
        tb = z.shape[0]
        # Triangular extraction as an f32 matmul with the 0/1 selection
        # matrix: stays on the MXU, no data-dependent gather, and the f32
        # accumulator values are passed through untouched.
        zflat = jnp.dot(z.reshape(tb, ff), sel_ref[...],
                        preferred_element_type=jnp.float32)
        # Two direct slice stores -- no in-kernel concatenate, no extra temp.
        o_ref[:, :d] = x_ref[...].astype(o_ref.dtype)
        o_ref[:, d:] = zflat.astype(o_ref.dtype)

    return kernel


def interaction_layer(x, ly, arch_interaction_op='dot',
                      arch_interaction_itself=False,
                      tb=128, use_bf16_mxu=False, vmem_limit_bytes=None):
    """JAX/Pallas equivalent of DLRM InteractionLayer.forward.

    tb:               requested batch tile (sweep 128-512; auto-fitted to B).
    use_bf16_mxu:     cast T @ T^T MXU operands to bf16 (f32 accumulation).
                      Fast on v6e/v7x; differs from the f32 reference by
                      ~bf16 eps.  Default off -> bit-faithful f32 path.
    vmem_limit_bytes: optional scoped-VMEM override for very large tiles
                      (e.g. 96 MiB on v6e; keep <= ~48 MiB on v7x).
    """
    if arch_interaction_op == 'cat':
        # Pure concatenation; no compute hot path, leave to XLA.
        return jnp.concatenate([x] + list(ly), axis=1)
    if arch_interaction_op != 'dot':
        raise ValueError(
            f"arch_interaction_op={arch_interaction_op!r} is not supported")

    B, d = x.shape
    T = jnp.concatenate([x] + list(ly), axis=1).reshape(B, -1, d)
    F = T.shape[1]
    offset = 1 if arch_interaction_itself else 0
    P = len(_pair_indices(F, offset))
    if P == 0:
        return x

    out_dim = d + P
    out_pad = _round_up(out_dim, 128)     # lane-dense output slab
    p_pad = out_pad - d

    mxu_dtype = jnp.bfloat16 if use_bf16_mxu else x.dtype
    sel = jnp.asarray(_make_selection_matrix(F, offset, p_pad),
                      dtype=jnp.float32)

    tb_eff = _pick_batch_tile(B, tb, np.dtype(x.dtype).itemsize)
    grid = (B // tb_eff,)

    kernel = _make_dot_kernel(F, d, mxu_dtype)

    out = pl.pallas_call(
        kernel,
        out_shape=jax.ShapeDtypeStruct((B, out_pad), x.dtype),
        grid_spec=pltpu.PrefetchScalarGridSpec(
            num_scalar_prefetch=0,
            grid=grid,
            in_specs=[
                pl.BlockSpec((tb_eff, d), lambda b: (b, 0)),
                pl.BlockSpec((tb_eff, F, d), lambda b: (b, 0, 0)),
                pl.BlockSpec((F * F, p_pad), lambda b: (0, 0)),
            ],
            out_specs=pl.BlockSpec((tb_eff, out_pad), lambda b: (b, 0)),
        ),
        compiler_params=pltpu.CompilerParams(
            dimension_semantics=("parallel",),
            vmem_limit_bytes=vmem_limit_bytes),
    )(x, T, sel)

    return out if out_pad == out_dim else out[:, :out_dim]


def _reference(x, ly, arch_interaction_itself):
    """Pure-JAX reference mirroring the PyTorch module exactly."""
    B, d = x.shape
    T = jnp.concatenate([x] + list(ly), axis=1).reshape(B, -1, d)
    Z = jnp.einsum('bfd,bgd->bfg', T, T, precision=jax.lax.Precision.HIGHEST)
    F = T.shape[1]
    offset = 1 if arch_interaction_itself else 0
    li = np.array([i for i in range(F) for j in range(i + offset)], dtype=np.int32)
    lj = np.array([j for i in range(F) for j in range(i + offset)], dtype=np.int32)
    Zflat = Z[:, li, lj]
    return jnp.concatenate([x, Zflat], axis=1)


if __name__ == "__main__":
    key = jax.random.PRNGKey(0)

    # --- main 'dot' test: modest but MXU-meaningful shapes -----------------
    B, d = 256, 128           # batch, dense/embedding dim
    num_sparse = 12           # -> F = 13 features, P = 78 pairs
    kx, *kly = jax.random.split(key, 1 + num_sparse)
    x = jax.random.normal(kx, (B, d), dtype=jnp.float32)
    ly = [jax.random.normal(k, (B, d), dtype=jnp.float32) for k in kly]
    ref = _reference(x, ly, arch_interaction_itself=False)

    # f32 MXU path (default): bit-faithful to the reference.
    out = interaction_layer(x, ly, 'dot', arch_interaction_itself=False, tb=128)
    out = jax.block_until_ready(out)
    assert out.shape == ref.shape, (out.shape, ref.shape)
    assert jnp.allclose(out, ref, atol=1e-3, rtol=1e-3), \
        float(jnp.max(jnp.abs(out - ref)))

    # bf16-MXU path (f32 accumulation): loose tolerance sanity check.
    out_bf = interaction_layer(x, ly, 'dot', arch_interaction_itself=False,
                               tb=128, use_bf16_mxu=True)
    out_bf = jax.block_until_ready(out_bf)
    rel_err = float(jnp.max(jnp.abs(out_bf - ref)) / (jnp.max(jnp.abs(ref)) + 1e-6))
    assert rel_err < 5e-2, rel_err

    # --- self-interaction ('itself') path at smaller shapes ----------------
    B2, d2, ns2 = 64, 32, 3
    k2x, *k2ly = jax.random.split(jax.random.PRNGKey(1), 1 + ns2)
    x2 = jax.random.normal(k2x, (B2, d2), dtype=jnp.float32)
    ly2 = [jax.random.normal(k, (B2, d2), dtype=jnp.float32) for k in k2ly]
    out2 = interaction_layer(x2, ly2, 'dot', arch_interaction_itself=True)
    out2 = jax.block_until_ready(out2)
    ref2 = _reference(x2, ly2, arch_interaction_itself=True)
    assert out2.shape == ref2.shape
    assert jnp.allclose(out2, ref2, atol=1e-3, rtol=1e-3)

    # --- 'cat' path ---------------------------------------------------------
    cat = jax.block_until_ready(interaction_layer(x, ly, 'cat'))
    assert cat.shape == (B, d * (1 + num_sparse))

    print("KERNEL_OK")
</pallas_src>

<mosaic_0001>
module attributes {stable_mosaic.version = 11 : i64} {
  func.func @kernel(%arg0: i32, %arg1: memref<128x128xf32, #tpu.memory_space<vmem>>, %arg2: memref<128x13x128xf32, #tpu.memory_space<vmem>>, %arg3: memref<169x128xf32, #tpu.memory_space<vmem>>, %arg4: memref<128x256xf32, #tpu.memory_space<vmem>>) attributes {dimension_semantics = [#tpu.dimension_semantics<parallel>], iteration_bounds = array<i64: 2>, scalar_prefetch = 0 : i64, scratch_operands = 0 : i64, tpu.core_type = #tpu.core_type<tc>, window_params = [{transform_indices = @transform_0, window_bounds = array<i64: 128, 128>}, {transform_indices = @transform_1, window_bounds = array<i64: 128, 13, 128>}, {pipeline_mode = #tpu.pipeline_mode<synchronous>, transform_indices = @transform_2, window_bounds = array<i64: 169, 128>}, {transform_indices = @transform_3, window_bounds = array<i64: 128, 256>}]} {
    %c0 = arith.constant 0 : index
    %c0_0 = arith.constant 0 : index
    %c0_1 = arith.constant 0 : index
    %0 = vector.load %arg2[%c0, %c0_0, %c0_1] : memref<128x13x128xf32, #tpu.memory_space<vmem>>, vector<128x13x128xf32>
    "tpu.trace_start"() <{level = 10 : i32, message = "bfd,bgd->bfg"}> : () -> ()
    %cst = arith.constant dense<0.000000e+00> : vector<128x13x13xf32>
    %1 = tpu.matmul %0, %0, %cst {dimension_numbers = #tpu.dot_dimension_numbers<[2], [2], [1], [1], [0, 0, 0, 1, 1, 1], [0], [0]>} : vector<128x13x128xf32>, vector<128x13x128xf32>, vector<128x13x13xf32> -> vector<128x13x13xf32>
    "tpu.trace_stop"() : () -> ()
    %2 = vector.shape_cast %1 : vector<128x13x13xf32> to vector<128x169xf32>
    %c0_2 = arith.constant 0 : index
    %c0_3 = arith.constant 0 : index
    %3 = vector.load %arg3[%c0_2, %c0_3] : memref<169x128xf32, #tpu.memory_space<vmem>>, vector<169x128xf32>
    %cst_4 = arith.constant dense<0.000000e+00> : vector<128x128xf32>
    %4 = tpu.matmul %2, %3, %cst_4 {dimension_numbers = #tpu.dot_dimension_numbers<[1], [0], [0], [1], [0, 0, 1, 1], [], []>} : vector<128x169xf32>, vector<169x128xf32>, vector<128x128xf32> -> vector<128x128xf32>
    %c0_5 = arith.constant 0 : index
    %c0_6 = arith.constant 0 : index
    %5 = vector.load %arg1[%c0_5, %c0_6] : memref<128x128xf32, #tpu.memory_space<vmem>>, vector<128x128xf32>
    %c0_7 = arith.constant 0 : index
    %c0_8 = arith.constant 0 : index
    %6 = vector.load %arg4[%c0_7, %c0_8] : memref<128x256xf32, #tpu.memory_space<vmem>>, vector<128x128xf32>
    tpu.vector_store %arg4[%c0_7, %c0_8], %5 {strides = array<i32>} : memref<128x256xf32, #tpu.memory_space<vmem>>, vector<128x128xf32>,
    %c0_9 = arith.constant 0 : index
    %c128 = arith.constant 128 : index
    %7 = vector.load %arg4[%c0_9, %c128] : memref<128x256xf32, #tpu.memory_space<vmem>>, vector<128x128xf32>
    tpu.vector_store %arg4[%c0_9, %c128], %4 {strides = array<i32>} : memref<128x256xf32, #tpu.memory_space<vmem>>, vector<128x128xf32>,
    return
  }
  func.func @transform_0(%arg0: i32) -> (i32, i32) {
    %c0_i32 = arith.constant 0 : i32
    %c0_i32_0 = arith.constant 0 : i32
    return %arg0, %c0_i32 : i32, i32
  }
  func.func @transform_1(%arg0: i32) -> (i32, i32, i32) {
    %c0_i32 = arith.constant 0 : i32
    %c0_i32_0 = arith.constant 0 : i32
    %c0_i32_1 = arith.constant 0 : i32
    return %arg0, %c0_i32, %c0_i32_0 : i32, i32, i32
  }
  func.func @transform_2(%arg0: i32) -> (i32, i32) {
    %c0_i32 = arith.constant 0 : i32
    %c0_i32_0 = arith.constant 0 : i32
    %c0_i32_1 = arith.constant 0 : i32
    return %c0_i32, %c0_i32_0 : i32, i32
  }
  func.func @transform_3(%arg0: i32) -> (i32, i32) {
    %c0_i32 = arith.constant 0 : i32
    %c0_i32_0 = arith.constant 0 : i32
    return %arg0, %c0_i32 : i32, i32
  }
}

</mosaic_0001>

<bundles_post_ra>
// kernel: tpu_custom_call.1
= control target key start
LH: loop header
LB: loop body
LE: loop exit
PB: predicated region body
PF: predicated region fallthrough
CT: control target
= control target key end

     0   :  { %8 = vsyncpa [#allocation3], 0  ;;  %s21582_s0 = inlined_call_operand.vmem [shape: f32[256,128], index: 0, kind: input, shape index: {}]   ;;  %s21583_s1 = inlined_call_operand.vmem [shape: f32[256,13,128], index: 1, kind: input, shape index: {}]   ;;  %s21584_s2 = inlined_call_operand.vmem [shape: f32[169,128], index: 2, kind: input, shape index: {}]   ;;  %s21585_s3 = inlined_call_operand.hbm [shape: f32[256,256], index: 3, kind: output, shape index: {}]  }
   0x1   :  { %10 = vsyncpa [#allocation3 + $0x1], 0  ;;  %s17922_s12 = smov 0   ;;  %s17924_s13 = smov 0  }
   0x2   :  { %s17926_s14 = smov 0   ;;  %s17928_s15 = smov 0  }
   0x3 LB: > { %s17943_s16 = sadd.s32 4294967295, %s17881_s15   ;;  %s15430_s17 = sadd.s32 4294967294, %s17881_s15   ;;  %s17881_s15 = sphi %s17928_s15, %s21983_s15   ;;  %s17877_s14 = sphi %s17926_s14, %s21982_s14   ;;  %s17873_s13 = sphi %s17924_s13, %s21981_s13   ;;  %s17869_s12 = sphi %s17922_s12, %s21980_s12  }
   0x4   : > { %s17947_s18 = sadd.s32 1, %s17881_s15   ;;  %s96_s19 = sadd.s32 1, %s17877_s14 }
   0x5   : > { %s93_s20 = ssub.s32 %s17881_s15, %s17947_s18  ;;  %p106_p0 = scmp.ne.s32.totalorder %s17877_s14, %s17873_s13 }
   0x6   : > { %p94_p1 = scmp.eq.s32.totalorder %s93_s20, 0  ;;  %p107_p2 = scmp.eq.s32.totalorder %s17943_s16, 1 }
   0x7   : > { %p112_p3 = scmp.ne.s32.totalorder %s17873_s13, %s17869_s12  ;;  %p113_p4 = scmp.eq.s32.totalorder %s15430_s17, 1 }
   0x8   : > { %s17958_s21 = scalar_select %p94_p1, %s17877_s14, %s96_s19  }
   0x9   : > { %p17960_p5 = por %p107_p2, %p106_p0  ;;  %p17964_p6 = por %p113_p4, %p112_p3 }
   0xa   : > { %p15433_p7 = scmp.ge.s32.totalorder %s17881_s15, 1  ;;  %p153_p8 = scmp.lt.s32.totalorder %s17881_s15, 3 }
   0xc   : > { %p154_p9 = pnand %p15433_p7, %p153_p8 }
   0xe   : > { %157 = sbr.rel (%p154_p9) target bundleno = 1142 (0x476), region = 32 }
  0x15   : > { %s15437_s24 = sshll.u32 %s17943_s16, 7  ;;  %s17885_s29 = smov 117   ;;  %vm15022_vm0 = vcmask 15360   ;;  %vm15039_vm1 = vcmask 121856   ;;  %vm15056_vm2 = vcmask 228352   ;;  %vm15095_vm3 = vcmask 334848  }
  0x16   : > { %p190_p10 = scmp.lt.s32.totalorder %s15437_s24, 255  ;;  %s17886_s30 = smov 2   ;;  %vm14869_vm4 = vcmask 105472   ;;  %vm14886_vm5 = vcmask 211968   ;;  %vm14903_vm6 = vcmask 318464   ;;  %vm15144_vm7 = vcmask 1040384  }
  0x17   : > { %s17887_s4 = smov 15   ;;  %s17888_s5 = smov 28   ;;  %vm17898_vm8 = vmmov 1   ;;  %vm14920_vm10 = vcmask 424960   ;;  %vm14937_vm11 = vcmask 531456   ;;  %vm14954_vm12 = vcmask 637952  }
  0x18   : > { %s21985_s24 = smov (!%p190_p10, %s15437_s24), 255  ;;  %s17889_s6 = smov 13   ;;  %vm20176_vm9 = vmpackc.low %vm15144_vm7, %vm17898_vm8  ;;  %vm14971_vm13 = vcmask 744448   ;;  %vm14988_vm14 = vcmask 850944   ;;  %vm15005_vm15 = vcmask 957440  }
  0x19   : > { %s15463_s25 = sshll.u32 %s21985_s24, 4  ;;  %s17890_s7 = smov 26  }
  0x1a   : > { %s17974_s28 = scalar_lea.vmem %s21583_s1, %s15463_s25  ;;  %s21675_s8 = smov 39  }
  0x1b   : > { %v197_v0 = vld [vmem:[%s17974_s28] sm:$0xff]  ;;  %v198_v1 = vld [vmem:[%s17974_s28 + $0x8] sm:$0x1f]  ;;  %v199_v2 = vld [vmem:[%s17974_s28 + $0x10] sm:$0xff]  ;;  %s17893_s10 = smov 65   ;;  %s17894_s24 = smov 104  }
  0x1c   : > { %v16874_v3 = vpack.c.bf16 %v198_v1, %v197_v0  ;;  %v200_v4 = vld [vmem:[%s17974_s28 + $0x18] sm:$0x1f]  ;;  %15982 = vmatprep.mubr.f32.mxu0 %v197_v0  ;;  %15989 = vmatprep.mubr.f32.mxu1 %v199_v2  ;;  %v201_v5 = vld [vmem:[%s17974_s28 + $0x20] sm:$0xff]  ;;  %v202_v6 = vld [vmem:[%s17974_s28 + $0x28] sm:$0x1f]  ;;  %s17895_s11 = smov 52  }
  0x1d   : > { %v16878_v7 = vpack.c.bf16 %v200_v4, %v199_v2  ;;  %v16882_v8 = vpack.c.bf16 %v202_v6, %v201_v5  ;;  %v203_v9 = vld [vmem:[%s17974_s28 + $0x30] sm:$0xff]  ;;  %v204_v10 = vld [vmem:[%s17974_s28 + $0x38] sm:$0x1f]  ;;  %v205_v12 = vld [vmem:[%s17974_s28 + $0x40] sm:$0xff]  ;;  %s17896_s9 = smov 78   ;;  %s17897_s17 = smov 91  }
  0x1e   : > { %16875 = vmatprep.subr.bf16.mxu0 %v16874_v3  ;;  %v16886_v11 = vpack.c.bf16 %v204_v10, %v203_v9  ;;  %v206_v13 = vld [vmem:[%s17974_s28 + $0x48] sm:$0x1f]  ;;  %v207_v14 = vld [vmem:[%s17974_s28 + $0x50] sm:$0xff]  ;;  %v208_v15 = vld [vmem:[%s17974_s28 + $0x58] sm:$0x1f]  ;;  %s17899_s20 = smov [#allocation2]  }
  0x1f   : > { %16879 = vmatprep.subr.bf16.mxu1 %v16878_v7  ;;  %16877 = vmatpush3.bf16.xpose.msra.mxu0 %v16874_v3  ;;  %v16890_v16 = vpack.c.bf16 %v206_v13, %v205_v12  ;;  %v16894_v17 = vpack.c.bf16 %v208_v15, %v207_v14  ;;  %v209_v18 = vld [vmem:[%s17974_s28 + $0x60] sm:$0xff]  ;;  %v210_v19 = vld [vmem:[%s17974_s28 + $0x68] sm:$0x1f]  ;;  %v211_v20 = vld [vmem:[%s17974_s28 + $0x70] sm:$0xff]  ;;  %s17823_s25 = sshll.u32 %s17899_s20, 4  ;;  %s17824_s25 = int_to_ptr.vmem [resolvable:$false] %s17823_s25 }
  0x20   : > { %16881 = vmatpush3.bf16.xpose.msra.mxu1 %v16878_v7  ;;  %16883 = vmatprep.subr.bf16.mxu0 %v16882_v8  ;;  %v212_v21 = vld [vmem:[%s17974_s28 + $0x78] sm:$0x1f]  ;;  %v16898_v22 = vpack.c.bf16 %v210_v19, %v209_v18  ;;  %v213_v24 = vld [vmem:[%s17974_s28 + $0x80] sm:$0xff]  ;;  %v214_v25 = vld [vmem:[%s17974_s28 + $0x88] sm:$0x1f]  ;;  %s17825_s26 = scalar_lea.vmem %s17824_s25, 8192 }
  0x21   : > { %16887 = vmatprep.subr.bf16.mxu1 %v16886_v11  ;;  %v16902_v23 = vpack.c.bf16 %v212_v21, %v211_v20  ;;  %v215_v26 = vld [vmem:[%s17974_s28 + $0x90] sm:$0xff]  ;;  %v216_v27 = vld [vmem:[%s17974_s28 + $0x98] sm:$0x1f]  ;;  %v16906_v28 = vpack.c.bf16 %v214_v25, %v213_v24  ;;  %v217_v30 = vld [vmem:[%s17974_s28 + $0xa0] sm:$0xff] }
  0x22   : > { %v16910_v29 = vpack.c.bf16 %v216_v27, %v215_v26  ;;  %v218_v31 = vld [vmem:[%s17974_s28 + $0xa8] sm:$0x1f]  ;;  %v219_v32 = vld [vmem:[%s17974_s28 + $0xb0] sm:$0xff]  ;;  %v220_v33 = vld [vmem:[%s17974_s28 + $0xb8] sm:$0x1f] }
  0x23   : > { %v16914_v34 = vpack.c.bf16 %v218_v31, %v217_v30  ;;  %v16918_v35 = vpack.c.bf16 %v220_v33, %v219_v32  ;;  %v221_v36 = vld [vmem:[%s17974_s28 + $0xc0] sm:$0xff]  ;;  %v222_v37 = vld [vmem:[%s17974_s28 + $0xc8] sm:$0x1f]  ;;  %v223_v38 = vld [vmem:[%s17974_s28 + $0xd0] sm:$0xff] }
  0x24   : > { %v224_v39 = vld [vmem:[%s17974_s28 + $0xd8] sm:$0x1f]  ;;  %v16922_v40 = vpack.c.bf16 %v222_v37, %v221_v36  ;;  %v225_v42 = vld [vmem:[%s17974_s28 + $0xe0] sm:$0xff]  ;;  %v226_v43 = vld [vmem:[%s17974_s28 + $0xe8] sm:$0x1f] }
  0x25   : > { %v16926_v41 = vpack.c.bf16 %v224_v39, %v223_v38  ;;  %v227_v44 = vld [vmem:[%s17974_s28 + $0xf0] sm:$0xff]  ;;  %v228_v45 = vld [vmem:[%s17974_s28 + $0xf8] sm:$0x1f]  ;;  %v16930_v46 = vpack.c.bf16 %v226_v43, %v225_v42  ;;  %v229_v48 = vld [vmem:[%s17974_s28 + $0x100] sm:$0xff] }
  0x26   : > { %15983 = vmatmul.mubr.f32.vlgmr.msra.gmra.mrb[0].mxu0 %v198_v1  ;;  %v16934_v47 = vpack.c.bf16 %v228_v45, %v227_v44  ;;  %v230_v49 = vld [vmem:[%s17974_s28 + $0x108] sm:$0x1f]  ;;  %v231_v50 = vld [vmem:[%s17974_s28 + $0x110] sm:$0xff]  ;;  %v232_v51 = vld [vmem:[%s17974_s28 + $0x118] sm:$0x1f] }
  0x27   : > { %15990 = vmatmul.mubr.f32.vlgmr.msra.gmra.mrb[0].mxu1 %v200_v4  ;;  %16885 = vmatpush3.bf16.xpose.msra.mxu0 %v16882_v8  ;;  %v16938_v52 = vpack.c.bf16 %v230_v49, %v229_v48  ;;  %v16942_v53 = vpack.c.bf16 %v232_v51, %v231_v50  ;;  %v233_v54 = vld [vmem:[%s17974_s28 + $0x120] sm:$0xff]  ;;  %v234_v55 = vld [vmem:[%s17974_s28 + $0x128] sm:$0x1f]  ;;  %v235_v56 = vld [vmem:[%s17974_s28 + $0x130] sm:$0xff] }
  0x28   : > { %16889 = vmatpush3.bf16.xpose.msra.mxu1 %v16886_v11  ;;  %15996 = vmatprep.mubr.f32.mxu0 %v201_v5  ;;  %v236_v57 = vld [vmem:[%s17974_s28 + $0x138] sm:$0x1f]  ;;  %v16946_v58 = vpack.c.bf16 %v234_v55, %v233_v54  ;;  %v237_v60 = vld [vmem:[%s17974_s28 + $0x140] sm:$0xff]  ;;  %v238_v61 = vld [vmem:[%s17974_s28 + $0x148] sm:$0x1f] }
  0x29   : > { %16003 = vmatprep.mubr.f32.mxu1 %v203_v9  ;;  %16891 = vmatprep.subr.bf16.mxu0 %v16890_v16  ;;  %v16950_v59 = vpack.c.bf16 %v236_v57, %v235_v56  ;;  %v239_v62 = vld [vmem:[%s17974_s28 + $0x150] sm:$0xff]  ;;  %v240_v63 = vld [vmem:[%s17974_s28 + $0x158] sm:$0x1f]  ;;  %v16954_v0 = vpack.c.bf16 %v238_v61, %v237_v60  ;;  %v241_v2 = vld [vmem:[%s17974_s28 + $0x160] sm:$0xff] }
  0x2a   : > { %16895 = vmatprep.subr.bf16.mxu1 %v16894_v17  ;;  %v16958_v1 = vpack.c.bf16 %v240_v63, %v239_v62  ;;  %v242_v3 = vld [vmem:[%s17974_s28 + $0x168] sm:$0x1f]  ;;  %v243_v4 = vld [vmem:[%s17974_s28 + $0x170] sm:$0xff]  ;;  %v244_v5 = vld [vmem:[%s17974_s28 + $0x178] sm:$0x1f] }
  0x2b   : > { %v16966_v7 = vpack.c.bf16 %v244_v5, %v243_v4  ;;  %v245_v8 = vld [vmem:[%s17974_s28 + $0x180] sm:$0xff]  ;;  %v246_v9 = vld [vmem:[%s17974_s28 + $0x188] sm:$0x1f]  ;;  %v248_v11 = vld [vmem:[%s17974_s28 + $0x198] sm:$0x1f] }
  0x2e   : > { %15997 = vmatmul.mubr.f32.vlgmr.msra.gmra.mrb[2].mxu0 %v202_v6  ;;  %v16962_v6 = vpack.c.bf16 %v242_v3, %v241_v2 }
  0x2f   : > { %16004 = vmatmul.mubr.f32.vlgmr.msra.gmra.mrb[2].mxu1 %v204_v10  ;;  %16893 = vmatpush3.bf16.xpose.msra.mxu0 %v16890_v16  ;;  %v247_v10 = vld [vmem:[%s17974_s28 + $0x190] sm:$0xff] }
  0x30   : > { %16897 = vmatpush3.bf16.xpose.msra.mxu1 %v16894_v17  ;;  %16010 = vmatprep.mubr.f32.mxu0 %v205_v12  ;;  %v16970_v12 = vpack.c.bf16 %v246_v9, %v245_v8  ;;  %v251_v16 = vld [vmem:[%s17974_s28 + $0x1b0] sm:$0xff]  ;;  %v252_v17 = vld [vmem:[%s17974_s28 + $0x1b8] sm:$0x1f] }
  0x31   : > { %16017 = vmatprep.mubr.f32.mxu1 %v207_v14  ;;  %16899 = vmatprep.subr.bf16.mxu0 %v16898_v22  ;;  %v249_v14 = vld [vmem:[%s17974_s28 + $0x1a0] sm:$0xff] }
  0x32   : > { %16903 = vmatprep.subr.bf16.mxu1 %v16902_v23 }
  0x36   : > { %16011 = vmatmul.mubr.f32.vlgmr.msra.gmra.mrb[4].mxu0 %v206_v13  ;;  %v16974_v13 = vpack.c.bf16 %v248_v11, %v247_v10 }
  0x37   : > { %16018 = vmatmul.mubr.f32.vlgmr.msra.gmra.mrb[4].mxu1 %v208_v15  ;;  %16901 = vmatpush3.bf16.xpose.msra.mxu0 %v16898_v22  ;;  %v250_v15 = vld [vmem:[%s17974_s28 + $0x1a8] sm:$0x1f]  ;;  %v255_v22 = vld [vmem:[%s17974_s28 + $0x1d0] sm:$0xff] }
  0x38   : > { %16905 = vmatpush3.bf16.xpose.msra.mxu1 %v16902_v23  ;;  %16024 = vmatprep.mubr.f32.mxu0 %v209_v18  ;;  %v16978_v18 = vpack.c.bf16 %v250_v15, %v249_v14  ;;  %v256_v23 = vld [vmem:[%s17974_s28 + $0x1d8] sm:$0x1f] }
  0x39   : > { %16031 = vmatprep.mubr.f32.mxu1 %v211_v20  ;;  %16907 = vmatprep.subr.bf16.mxu0 %v16906_v28  ;;  %v253_v20 = vld [vmem:[%s17974_s28 + $0x1c0] sm:$0xff] }
  0x3a   : > { %16911 = vmatprep.subr.bf16.mxu1 %v16910_v29 }
  0x3e   : > { %16025 = vmatmul.mubr.f32.vlgmr.msra.gmra.mrb[6].mxu0 %v210_v19  ;;  %v16982_v19 = vpack.c.bf16 %v252_v17, %v251_v16 }
  0x3f   : > { %16032 = vmatmul.mubr.f32.vlgmr.msra.gmra.mrb[6].mxu1 %v212_v21  ;;  %16909 = vmatpush3.bf16.xpose.msra.mxu0 %v16906_v28  ;;  %v254_v21 = vld [vmem:[%s17974_s28 + $0x1c8] sm:$0x1f]  ;;  %v259_v28 = vld [vmem:[%s17974_s28 + $0x1f0] sm:$0xff] }
  0x40   : > { %16913 = vmatpush3.bf16.xpose.msra.mxu1 %v16910_v29  ;;  %16038 = vmatprep.mubr.f32.mxu0 %v213_v24  ;;  %v16986_v24 = vpack.c.bf16 %v254_v21, %v253_v20  ;;  %v260_v29 = vld [vmem:[%s17974_s28 + $0x1f8] sm:$0x1f] }
  0x41   : > { %16045 = vmatprep.mubr.f32.mxu1 %v215_v26  ;;  %16915 = vmatprep.subr.bf16.mxu0 %v16914_v34  ;;  %v257_v26 = vld [vmem:[%s17974_s28 + $0x1e0] sm:$0xff] }
  0x42   : > { %16919 = vmatprep.subr.bf16.mxu1 %v16918_v35 }
  0x46   : > { %16039 = vmatmul.mubr.f32.vlgmr.msra.gmra.mrb[8].mxu0 %v214_v25  ;;  %v16990_v25 = vpack.c.bf16 %v256_v23, %v255_v22 }
  0x47   : > { %16046 = vmatmul.mubr.f32.vlgmr.msra.gmra.mrb[8].mxu1 %v216_v27  ;;  %16917 = vmatpush3.bf16.xpose.msra.mxu0 %v16914_v34  ;;  %v258_v27 = vld [vmem:[%s17974_s28 + $0x1e8] sm:$0x1f]  ;;  %v263_v34 = vld [vmem:[%s17974_s28 + $0x210] sm:$0xff] }
  0x48   : > { %16921 = vmatpush3.bf16.xpose.msra.mxu1 %v16918_v35  ;;  %16052 = vmatprep.mubr.f32.mxu0 %v217_v30  ;;  %v16994_v30 = vpack.c.bf16 %v258_v27, %v257_v26  ;;  %v264_v35 = vld [vmem:[%s17974_s28 + $0x218] sm:$0x1f] }
  0x49   : > { %16059 = vmatprep.mubr.f32.mxu1 %v219_v32  ;;  %16923 = vmatprep.subr.bf16.mxu0 %v16922_v40  ;;  %v261_v32 = vld [vmem:[%s17974_s28 + $0x200] sm:$0xff] }
  0x4a   : > { %16927 = vmatprep.subr.bf16.mxu1 %v16926_v41 }
  0x4e   : > { %16053 = vmatmul.mubr.f32.vlgmr.msra.gmra.mrb[10].mxu0 %v218_v31  ;;  %v16998_v31 = vpack.c.bf16 %v260_v29, %v259_v28 }
  0x4f   : > { %16060 = vmatmul.mubr.f32.vlgmr.msra.gmra.mrb[10].mxu1 %v220_v33  ;;  %16925 = vmatpush3.bf16.xpose.msra.mxu0 %v16922_v40  ;;  %v262_v33 = vld [vmem:[%s17974_s28 + $0x208] sm:$0x1f]  ;;  %v267_v40 = vld [vmem:[%s17974_s28 + $0x230] sm:$0xff] }
  0x50   : > { %16929 = vmatpush3.bf16.xpose.msra.mxu1 %v16926_v41  ;;  %16066 = vmatprep.mubr.f32.mxu0 %v221_v36  ;;  %v17002_v36 = vpack.c.bf16 %v262_v33, %v261_v32  ;;  %v268_v41 = vld [vmem:[%s17974_s28 + $0x238] sm:$0x1f] }
  0x51   : > { %16073 = vmatprep.mubr.f32.mxu1 %v223_v38  ;;  %16931 = vmatprep.subr.bf16.mxu0 %v16930_v46  ;;  %v265_v38 = vld [vmem:[%s17974_s28 + $0x220] sm:$0xff] }
  0x52   : > { %16935 = vmatprep.subr.bf16.mxu1 %v16934_v47 }
  0x56   : > { %16067 = vmatmul.mubr.f32.vlgmr.msra.gmra.mrb[12].mxu0 %v222_v37  ;;  %v17006_v37 = vpack.c.bf16 %v264_v35, %v263_v34 }
  0x57   : > { %16074 = vmatmul.mubr.f32.vlgmr.msra.gmra.mrb[12].mxu1 %v224_v39  ;;  %16933 = vmatpush3.bf16.xpose.msra.mxu0 %v16930_v46  ;;  %v266_v39 = vld [vmem:[%s17974_s28 + $0x228] sm:$0x1f]  ;;  %v271_v46 = vld [vmem:[%s17974_s28 + $0x250] sm:$0xff] }
  0x58   : > { %16937 = vmatpush3.bf16.xpose.msra.mxu1 %v16934_v47  ;;  %16080 = vmatprep.mubr.f32.mxu0 %v225_v42  ;;  %v17010_v42 = vpack.c.bf16 %v266_v39, %v265_v38  ;;  %v272_v47 = vld [vmem:[%s17974_s28 + $0x258] sm:$0x1f] }
  0x59   : > { %16087 = vmatprep.mubr.f32.mxu1 %v227_v44  ;;  %16939 = vmatprep.subr.bf16.mxu0 %v16938_v52  ;;  %v269_v44 = vld [vmem:[%s17974_s28 + $0x240] sm:$0xff] }
  0x5a   : > { %16943 = vmatprep.subr.bf16.mxu1 %v16942_v53 }
  0x5e   : > { %16081 = vmatmul.mubr.f32.vlgmr.msra.gmra.mrb[14].mxu0 %v226_v43  ;;  %v17014_v43 = vpack.c.bf16 %v268_v41, %v267_v40 }
  0x5f   : > { %16088 = vmatmul.mubr.f32.vlgmr.msra.gmra.mrb[14].mxu1 %v228_v45  ;;  %16941 = vmatpush3.bf16.xpose.msra.mxu0 %v16938_v52  ;;  %v270_v45 = vld [vmem:[%s17974_s28 + $0x248] sm:$0x1f]  ;;  %v275_v52 = vld [vmem:[%s17974_s28 + $0x270] sm:$0xff] }
  0x60   : > { %16945 = vmatpush3.bf16.xpose.msra.mxu1 %v16942_v53  ;;  %16094 = vmatprep.mubr.f32.mxu0 %v229_v48  ;;  %v17018_v48 = vpack.c.bf16 %v270_v45, %v269_v44  ;;  %v276_v53 = vld [vmem:[%s17974_s28 + $0x278] sm:$0x1f] }
  0x61   : > { %16101 = vmatprep.mubr.f32.mxu1 %v231_v50  ;;  %16947 = vmatprep.subr.bf16.mxu0 %v16946_v58  ;;  %v273_v50 = vld [vmem:[%s17974_s28 + $0x260] sm:$0xff] }
  0x62   : > { %16951 = vmatprep.subr.bf16.mxu1 %v16950_v59 }
  0x66   : > { %16095 = vmatmul.mubr.f32.vlgmr.msra.gmra.mrb[16].mxu0 %v230_v49  ;;  %v17022_v49 = vpack.c.bf16 %v272_v47, %v271_v46 }
  0x67   : > { %16102 = vmatmul.mubr.f32.vlgmr.msra.gmra.mrb[16].mxu1 %v232_v51  ;;  %16949 = vmatpush3.bf16.xpose.msra.mxu0 %v16946_v58  ;;  %v274_v51 = vld [vmem:[%s17974_s28 + $0x268] sm:$0x1f]  ;;  %v279_v58 = vld [vmem:[%s17974_s28 + $0x290] sm:$0xff] }
  0x68   : > { %16953 = vmatpush3.bf16.xpose.msra.mxu1 %v16950_v59  ;;  %16108 = vmatprep.mubr.f32.mxu0 %v233_v54  ;;  %v17026_v54 = vpack.c.bf16 %v274_v51, %v273_v50  ;;  %v280_v59 = vld [vmem:[%s17974_s28 + $0x298] sm:$0x1f] }
  0x69   : > { %16115 = vmatprep.mubr.f32.mxu1 %v235_v56  ;;  %16955 = vmatprep.subr.bf16.mxu0 %v16954_v0  ;;  %v277_v56 = vld [vmem:[%s17974_s28 + $0x280] sm:$0xff] }
  0x6a   : > { %16959 = vmatprep.subr.bf16.mxu1 %v16958_v1 }
  0x6e   : > { %16109 = vmatmul.mubr.f32.vlgmr.msra.gmra.mrb[18].mxu0 %v234_v55  ;;  %v17030_v55 = vpack.c.bf16 %v276_v53, %v275_v52 }
  0x6f   : > { %16116 = vmatmul.mubr.f32.vlgmr.msra.gmra.mrb[18].mxu1 %v236_v57  ;;  %16957 = vmatpush3.bf16.xpose.msra.mxu0 %v16954_v0  ;;  %v278_v57 = vld [vmem:[%s17974_s28 + $0x288] sm:$0x1f]  ;;  %v283_v0 = vld [vmem:[%s17974_s28 + $0x2b0] sm:$0xff] }
  0x70   : > { %16961 = vmatpush3.bf16.xpose.msra.mxu1 %v16958_v1  ;;  %16122 = vmatprep.mubr.f32.mxu0 %v237_v60  ;;  %v17034_v60 = vpack.c.bf16 %v278_v57, %v277_v56  ;;  %v284_v1 = vld [vmem:[%s17974_s28 + $0x2b8] sm:$0x1f] }
  0x71   : > { %16129 = vmatprep.mubr.f32.mxu1 %v239_v62  ;;  %16963 = vmatprep.subr.bf16.mxu0 %v16962_v6  ;;  %v281_v62 = vld [vmem:[%s17974_s28 + $0x2a0] sm:$0xff] }
  0x72   : > { %16967 = vmatprep.subr.bf16.mxu1 %v16966_v7 }
  0x76   : > { %16123 = vmatmul.mubr.f32.vlgmr.msra.gmra.mrb[20].mxu0 %v238_v61  ;;  %v17038_v61 = vpack.c.bf16 %v280_v59, %v279_v58 }
  0x77   : > { %16130 = vmatmul.mubr.f32.vlgmr.msra.gmra.mrb[20].mxu1 %v240_v63  ;;  %16965 = vmatpush3.bf16.xpose.msra.mxu0 %v16962_v6  ;;  %v282_v63 = vld [vmem:[%s17974_s28 + $0x2a8] sm:$0x1f]  ;;  %v287_v6 = vld [vmem:[%s17974_s28 + $0x2d0] sm:$0xff] }
  0x78   : > { %16969 = vmatpush3.bf16.xpose.msra.mxu1 %v16966_v7  ;;  %16136 = vmatprep.mubr.f32.mxu0 %v241_v2  ;;  %v17042_v2 = vpack.c.bf16 %v282_v63, %v281_v62  ;;  %v288_v7 = vld [vmem:[%s17974_s28 + $0x2d8] sm:$0x1f] }
  0x79   : > { %16143 = vmatprep.mubr.f32.mxu1 %v243_v4  ;;  %16971 = vmatprep.subr.bf16.mxu0 %v16970_v12  ;;  %v285_v4 = vld [vmem:[%s17974_s28 + $0x2c0] sm:$0xff] }
  0x7a   : > { %16975 = vmatprep.subr.bf16.mxu1 %v16974_v13 }
  0x7e   : > { %16137 = vmatmul.mubr.f32.vlgmr.msra.gmra.mrb[22].mxu0 %v242_v3  ;;  %v17046_v3 = vpack.c.bf16 %v284_v1, %v283_v0 }
  0x7f   : > { %16144 = vmatmul.mubr.f32.vlgmr.msra.gmra.mrb[22].mxu1 %v244_v5  ;;  %16973 = vmatpush3.bf16.xpose.msra.mxu0 %v16970_v12  ;;  %v286_v5 = vld [vmem:[%s17974_s28 + $0x2c8] sm:$0x1f]  ;;  %v291_v12 = vld [vmem:[%s17974_s28 + $0x2f0] sm:$0xff] }
  0x80   : > { %16977 = vmatpush3.bf16.xpose.msra.mxu1 %v16974_v13  ;;  %16150 = vmatprep.mubr.f32.mxu0 %v245_v8  ;;  %v17050_v8 = vpack.c.bf16 %v286_v5, %v285_v4  ;;  %v292_v13 = vld [vmem:[%s17974_s28 + $0x2f8] sm:$0x1f] }
  0x81   : > { %16157 = vmatprep.mubr.f32.mxu1 %v247_v10  ;;  %16979 = vmatprep.subr.bf16.mxu0 %v16978_v18  ;;  %v289_v10 = vld [vmem:[%s17974_s28 + $0x2e0] sm:$0xff] }
  0x82   : > { %16983 = vmatprep.subr.bf16.mxu1 %v16982_v19 }
  0x86   : > { %16151 = vmatmul.mubr.f32.vlgmr.msra.gmra.mrb[24].mxu0 %v246_v9  ;;  %v17054_v9 = vpack.c.bf16 %v288_v7, %v287_v6 }
  0x87   : > { %16158 = vmatmul.mubr.f32.vlgmr.msra.gmra.mrb[24].mxu1 %v248_v11  ;;  %16981 = vmatpush3.bf16.xpose.msra.mxu0 %v16978_v18  ;;  %v290_v11 = vld [vmem:[%s17974_s28 + $0x2e8] sm:$0x1f]  ;;  %v295_v18 = vld [vmem:[%s17974_s28 + $0x310] sm:$0xff] }
  0x88   : > { %16985 = vmatpush3.bf16.xpose.msra.mxu1 %v16982_v19  ;;  %16164 = vmatprep.mubr.f32.mxu0 %v249_v14  ;;  %v17058_v14 = vpack.c.bf16 %v290_v11, %v289_v10  ;;  %v296_v19 = vld [vmem:[%s17974_s28 + $0x318] sm:$0x1f] }
  0x89   : > { %16171 = vmatprep.mubr.f32.mxu1 %v251_v16  ;;  %16987 = vmatprep.subr.bf16.mxu0 %v16986_v24  ;;  %v293_v16 = vld [vmem:[%s17974_s28 + $0x300] sm:$0xff] }
  0x8a   : > { %16991 = vmatprep.subr.bf16.mxu1 %v16990_v25 }
  0x8e   : > { %16165 = vmatmul.mubr.f32.vlgmr.msra.gmra.mrb[26].mxu0 %v250_v15  ;;  %v17062_v15 = vpack.c.bf16 %v292_v13, %v291_v12 }
  0x8f   : > { %16172 = vmatmul.mubr.f32.vlgmr.msra.gmra.mrb[26].mxu1 %v252_v17  ;;  %16989 = vmatpush3.bf16.xpose.msra.mxu0 %v16986_v24  ;;  %v294_v17 = vld [vmem:[%s17974_s28 + $0x308] sm:$0x1f]  ;;  %v299_v24 = vld [vmem:[%s17974_s28 + $0x330] sm:$0xff] }
  0x90   : > { %16993 = vmatpush3.bf16.xpose.msra.mxu1 %v16990_v25  ;;  %16178 = vmatprep.mubr.f32.mxu0 %v253_v20  ;;  %v17066_v20 = vpack.c.bf16 %v294_v17, %v293_v16  ;;  %v300_v25 = vld [vmem:[%s17974_s28 + $0x338] sm:$0x1f] }
  0x91   : > { %16185 = vmatprep.mubr.f32.mxu1 %v255_v22  ;;  %16995 = vmatprep.subr.bf16.mxu0 %v16994_v30  ;;  %v297_v22 = vld [vmem:[%s17974_s28 + $0x320] sm:$0xff] }
  0x92   : > { %16999 = vmatprep.subr.bf16.mxu1 %v16998_v31 }
  0x96   : > { %16179 = vmatmul.mubr.f32.vlgmr.msra.gmra.mrb[28].mxu0 %v254_v21  ;;  %v17070_v21 = vpack.c.bf16 %v296_v19, %v295_v18 }
  0x97   : > { %16186 = vmatmul.mubr.f32.vlgmr.msra.gmra.mrb[28].mxu1 %v256_v23  ;;  %16997 = vmatpush3.bf16.xpose.msra.mxu0 %v16994_v30  ;;  %v298_v23 = vld [vmem:[%s17974_s28 + $0x328] sm:$0x1f]  ;;  %v303_v30 = vld [vmem:[%s17974_s28 + $0x350] sm:$0xff] }
  0x98   : > { %17001 = vmatpush3.bf16.xpose.msra.mxu1 %v16998_v31  ;;  %16192 = vmatprep.mubr.f32.mxu0 %v257_v26  ;;  %v17074_v26 = vpack.c.bf16 %v298_v23, %v297_v22  ;;  %v304_v31 = vld [vmem:[%s17974_s28 + $0x358] sm:$0x1f] }
  0x99   : > { %16199 = vmatprep.mubr.f32.mxu1 %v259_v28  ;;  %17003 = vmatprep.subr.bf16.mxu0 %v17002_v36  ;;  %v301_v28 = vld [vmem:[%s17974_s28 + $0x340] sm:$0xff] }
  0x9a   : > { %17007 = vmatprep.subr.bf16.mxu1 %v17006_v37 }
  0x9e   : > { %16193 = vmatmul.mubr.f32.vlgmr.msra.gmra.mrb[30].mxu0 %v258_v27  ;;  %v17078_v27 = vpack.c.bf16 %v300_v25, %v299_v24 }
  0x9f   : > { %16200 = vmatmul.mubr.f32.vlgmr.msra.gmra.mrb[30].mxu1 %v260_v29  ;;  %17005 = vmatpush3.bf16.xpose.msra.mxu0 %v17002_v36  ;;  %v302_v29 = vld [vmem:[%s17974_s28 + $0x348] sm:$0x1f]  ;;  %v307_v36 = vld [vmem:[%s17974_s28 + $0x370] sm:$0xff] }
  0xa0   : > { %17009 = vmatpush3.bf16.xpose.msra.mxu1 %v17006_v37  ;;  %16206 = vmatprep.mubr.f32.mxu0 %v261_v32  ;;  %v17082_v32 = vpack.c.bf16 %v302_v29, %v301_v28  ;;  %v308_v37 = vld [vmem:[%s17974_s28 + $0x378] sm:$0x1f] }
  0xa1   : > { %16213 = vmatprep.mubr.f32.mxu1 %v263_v34  ;;  %17011 = vmatprep.subr.bf16.mxu0 %v17010_v42  ;;  %v305_v34 = vld [vmem:[%s17974_s28 + $0x360] sm:$0xff] }
  0xa2   : > { %17015 = vmatprep.subr.bf16.mxu1 %v17014_v43 }
  0xa6   : > { %16207 = vmatmul.mubr.f32.vlgmr.msra.gmra.mrb[32].mxu0 %v262_v33  ;;  %v17086_v33 = vpack.c.bf16 %v304_v31, %v303_v30 }
  0xa7   : > { %16214 = vmatmul.mubr.f32.vlgmr.msra.gmra.mrb[32].mxu1 %v264_v35  ;;  %17013 = vmatpush3.bf16.xpose.msra.mxu0 %v17010_v42  ;;  %v306_v35 = vld [vmem:[%s17974_s28 + $0x368] sm:$0x1f]  ;;  %v311_v42 = vld [vmem:[%s17974_s28 + $0x390] sm:$0xff] }
  0xa8   : > { %17017 = vmatpush3.bf16.xpose.msra.mxu1 %v17014_v43  ;;  %16220 = vmatprep.mubr.f32.mxu0 %v265_v38  ;;  %v17090_v38 = vpack.c.bf16 %v306_v35, %v305_v34  ;;  %v18094_v43 = vld [vmem:[%s17974_s28 + $0x398] sm:$0x1f] }
  0xa9   : > { %16227 = vmatprep.mubr.f32.mxu1 %v267_v40  ;;  %17019 = vmatprep.subr.bf16.mxu0 %v17018_v48  ;;  %v309_v40 = vld [vmem:[%s17974_s28 + $0x380] sm:$0xff] }
  0xaa   : > { %17023 = vmatprep.subr.bf16.mxu1 %v17022_v49 }
  0xae   : > { %16221 = vmatmul.mubr.f32.vlgmr.msra.gmra.mrb[34].mxu0 %v266_v39  ;;  %v17094_v39 = vpack.c.bf16 %v308_v37, %v307_v36 }
  0xaf   : > { %16228 = vmatmul.mubr.f32.vlgmr.msra.gmra.mrb[34].mxu1 %v268_v41  ;;  %17021 = vmatpush3.bf16.xpose.msra.mxu0 %v17018_v48  ;;  %v18090_v41 = vld [vmem:[%s17974_s28 + $0x388] sm:$0x1f]  ;;  %v10058_v48 = vlaneseq }
  0xb0   : > { %17025 = vmatpush3.bf16.xpose.msra.mxu1 %v17022_v49  ;;  %16234 = vmatprep.mubr.f32.mxu0 %v269_v44  ;;  %v17098_v44 = vpack.c.bf16 %v18090_v41, %v309_v40 }
  0xb1   : > { %16241 = vmatprep.mubr.f32.mxu1 %v271_v46  ;;  %17027 = vmatprep.subr.bf16.mxu0 %v17026_v54  ;;  %v17883_v46 = vmov 1983009808  }
  0xb2   : > { %17031 = vmatprep.subr.bf16.mxu1 %v17030_v55 }
  0xb6   : > { %16235 = vmatmul.mubr.f32.vlgmr.msra.gmra.mrb[36].mxu0 %v270_v45  ;;  %v17102_v45 = vpack.c.bf16 %v18094_v43, %v311_v42 }
  0xb7   : > { %16242 = vmatmul.mubr.f32.vlgmr.msra.gmra.mrb[36].mxu1 %v272_v47  ;;  %17029 = vmatpush3.bf16.xpose.msra.mxu0 %v17026_v54  ;;  %v10056_v47 = vunpack.c.l.s4 %v17883_v46  ;;  %v18163_v46 = vld [vmem:[%s17974_s28 + $0x410] sm:$0xff] }
  0xb8   : > { %17033 = vmatpush3.bf16.xpose.msra.mxu1 %v17030_v55  ;;  %16248 = vmatprep.mubr.f32.mxu0 %v273_v50  ;;  %v315_v55 = vld [vmem:[%s17974_s28 + $0x3b0] sm:$0xff] }
  0xb9   : > { %16255 = vmatprep.mubr.f32.mxu1 %v275_v52  ;;  %17035 = vmatprep.subr.bf16.mxu0 %v17034_v60  ;;  %v313_v52 = vld [vmem:[%s17974_s28 + $0x3a0] sm:$0xff] }
  0xba   : > { %17039 = vmatprep.subr.bf16.mxu1 %v17038_v61 }
  0xbe   : > { %16249 = vmatmul.mubr.f32.vlgmr.msra.gmra.mrb[38].mxu0 %v274_v51 }
  0xbf   : > { %16256 = vmatmul.mubr.f32.vlgmr.msra.gmra.mrb[38].mxu1 %v276_v53  ;;  %17037 = vmatpush3.bf16.xpose.msra.mxu0 %v17034_v60  ;;  %v18100_v53 = vld [vmem:[%s17974_s28 + $0x3a8] sm:$0x1f] }
  0xc0   : > { %17041 = vmatpush3.bf16.xpose.msra.mxu1 %v17038_v61  ;;  %16262 = vmatprep.mubr.f32.mxu0 %v277_v56  ;;  %v18104_v56 = vld [vmem:[%s17974_s28 + $0x3b8] sm:$0x1f] }
  0xc1   : > { %16269 = vmatprep.mubr.f32.mxu1 %v279_v58  ;;  %17043 = vmatprep.subr.bf16.mxu0 %v17042_v2  ;;  %v18106_v58 = vshrl.u32 %v10058_v48, 7  ;;  %v17110_v60 = vpack.c.bf16 %v18104_v56, %v315_v55 }
  0xc2   : > { %17047 = vmatprep.subr.bf16.mxu1 %v17046_v3 }
  0xc6   : > { %16263 = vmatmul.mubr.f32.vlgmr.msra.gmra.mrb[40].mxu0 %v278_v57  ;;  %v10057_v57 = vunpack.c.0.s8 %v10056_v47  ;;  %v18166_v47 = vld [vmem:[%s17974_s28 + $0x418] sm:$0x1f] }
  0xc7   : > { %16270 = vmatmul.mubr.f32.vlgmr.msra.gmra.mrb[40].mxu1 %v280_v59  ;;  %17045 = vmatpush3.bf16.xpose.msra.mxu0 %v17042_v2  ;;  %v17106_v59 = vpack.c.bf16 %v18100_v53, %v313_v52 }
  0xc8   : > { %17049 = vmatpush3.bf16.xpose.msra.mxu1 %v17046_v3  ;;  %16276 = vmatprep.mubr.f32.mxu0 %v281_v62  ;;  %v18111_v61 = vsub.s32 %v10057_v57, %v18106_v58  ;;  %v17884_v3 = vmov 1934713408  }
  0xc9   : > { %16283 = vmatprep.mubr.f32.mxu1 %v283_v0  ;;  %17051 = vmatprep.subr.bf16.mxu0 %v17050_v8 }
  0xca   : > { %17055 = vmatprep.subr.bf16.mxu1 %v17054_v9 }
  0xce   : > { %16277 = vmatmul.mubr.f32.vlgmr.msra.gmra.mrb[42].mxu0 %v282_v63 }
  0xcf   : > { %16284 = vmatmul.mubr.f32.vlgmr.msra.gmra.mrb[42].mxu1 %v284_v1  ;;  %17053 = vmatpush3.bf16.xpose.msra.mxu0 %v17050_v8 }
  0xd0   : > { %17057 = vmatpush3.bf16.xpose.msra.mxu1 %v17054_v9  ;;  %16290 = vmatprep.mubr.f32.mxu0 %v285_v4  ;;  %v10120_v4 = vunpack.c.l.s4 %v17884_v3 }
  0xd1   : > { %16297 = vmatprep.mubr.f32.mxu1 %v287_v6  ;;  %17059 = vmatprep.subr.bf16.mxu0 %v17058_v14 }
  0xd2   : > { %17063 = vmatprep.subr.bf16.mxu1 %v17062_v15 }
  0xd6   : > { %16291 = vmatmul.mubr.f32.vlgmr.msra.gmra.mrb[44].mxu0 %v286_v5  ;;  %v317_v5 = vld [vmem:[%s17974_s28 + $0x3c0] sm:$0xff] }
  0xd7   : > { %16298 = vmatmul.mubr.f32.vlgmr.msra.gmra.mrb[44].mxu1 %v288_v7  ;;  %17061 = vmatpush3.bf16.xpose.msra.mxu0 %v17058_v14 }
  0xd8   : > { %17065 = vmatpush3.bf16.xpose.msra.mxu1 %v17062_v15  ;;  %16304 = vmatprep.mubr.f32.mxu0 %v289_v10 }
  0xd9   : > { %16311 = vmatprep.mubr.f32.mxu1 %v291_v12  ;;  %17067 = vmatprep.subr.bf16.mxu0 %v17066_v20  ;;  %v319_v12 = vld [vmem:[%s17974_s28 + $0x3d0] sm:$0xff] }
  0xda   : > { %17071 = vmatprep.subr.bf16.mxu1 %v17070_v21 }
  0xde   : > { %16305 = vmatmul.mubr.f32.vlgmr.msra.gmra.mrb[46].mxu0 %v290_v11  ;;  %v18115_v11 = vld [vmem:[%s17974_s28 + $0x3c8] sm:$0x1f] }
  0xdf   : > { %16312 = vmatmul.mubr.f32.vlgmr.msra.gmra.mrb[46].mxu1 %v292_v13  ;;  %17069 = vmatpush3.bf16.xpose.msra.mxu0 %v17066_v20  ;;  %v18119_v13 = vld [vmem:[%s17974_s28 + $0x3d8] sm:$0x1f] }
  0xe0   : > { %17073 = vmatpush3.bf16.xpose.msra.mxu1 %v17070_v21  ;;  %16318 = vmatprep.mubr.f32.mxu0 %v293_v16 }
  0xe1   : > { %16325 = vmatprep.mubr.f32.mxu1 %v295_v18  ;;  %17075 = vmatprep.subr.bf16.mxu0 %v17074_v26 }
  0xe2   : > { %17079 = vmatprep.subr.bf16.mxu1 %v17078_v27 }
  0xe6   : > { %16319 = vmatmul.mubr.f32.vlgmr.msra.gmra.mrb[48].mxu0 %v294_v17 }
  0xe7   : > { %16326 = vmatmul.mubr.f32.vlgmr.msra.gmra.mrb[48].mxu1 %v296_v19  ;;  %17077 = vmatpush3.bf16.xpose.msra.mxu0 %v17074_v26 }
  0xe8   : > { %17081 = vmatpush3.bf16.xpose.msra.mxu1 %v17078_v27  ;;  %16332 = vmatprep.mubr.f32.mxu0 %v297_v22 }
  0xe9   : > { %16339 = vmatprep.mubr.f32.mxu1 %v299_v24  ;;  %17083 = vmatprep.subr.bf16.mxu0 %v17082_v32  ;;  %v17114_v24 = vpack.c.bf16 %v18115_v11, %v317_v5 }
  0xea   : > { %17087 = vmatprep.subr.bf16.mxu1 %v17086_v33 }
  0xee   : > { %16333 = vmatmul.mubr.f32.vlgmr.msra.gmra.mrb[50].mxu0 %v298_v23 }
  0xef   : > { %16340 = vmatmul.mubr.f32.vlgmr.msra.gmra.mrb[50].mxu1 %v300_v25  ;;  %17085 = vmatpush3.bf16.xpose.msra.mxu0 %v17082_v32  ;;  %v17118_v25 = vpack.c.bf16 %v18119_v13, %v319_v12 }
  0xf0   : > { %17089 = vmatpush3.bf16.xpose.msra.mxu1 %v17086_v33  ;;  %16346 = vmatprep.mubr.f32.mxu0 %v301_v28  ;;  %v10121_v33 = vunpack.c.0.s8 %v10120_v4 }
  0xf1   : > { %16353 = vmatprep.mubr.f32.mxu1 %v303_v30  ;;  %17091 = vmatprep.subr.bf16.mxu0 %v17090_v38 }
  0xf2   : > { %17095 = vmatprep.subr.bf16.mxu1 %v17094_v39 }
  0xf6   : > { %16347 = vmatmul.mubr.f32.vlgmr.msra.gmra.mrb[52].mxu0 %v302_v29 }
  0xf7   : > { %16354 = vmatmul.mubr.f32.vlgmr.msra.gmra.mrb[52].mxu1 %v304_v31  ;;  %17093 = vmatpush3.bf16.xpose.msra.mxu0 %v17090_v38  ;;  %v18145_v38 = vld [vmem:[%s17974_s28 + $0x3e8] sm:$0x1f] }
  0xf8   : > { %17097 = vmatpush3.bf16.xpose.msra.mxu1 %v17094_v39  ;;  %16360 = vmatprep.mubr.f32.mxu0 %v305_v34 }
  0xf9   : > { %v15984_v49 = vpop.f32.mrb[0].mxu0  ;;  %16367 = vmatprep.mubr.f32.mxu1 %v307_v36  ;;  %17099 = vmatprep.subr.bf16.mxu0 %v17098_v44 }
  0xfa   : > { %v15991_v50 = vpop.f32.mrb[0].mxu1  ;;  %v519_v51 = vpop.f32.mrb[1].mxu0  ;;  %17103 = vmatprep.subr.bf16.mxu1 %v17102_v45 }
  0xfb   : > { %v594_v54 = vpop.f32.mrb[1].mxu1 }
  0xfe   : > { %16361 = vmatmul.mubr.f32.vlgmr.msra.gmra.mrb[54].mxu0 %v306_v35 }
  0xff   : > { %16368 = vmatmul.mubr.f32.vlgmr.msra.gmra.mrb[54].mxu1 %v308_v37  ;;  %17101 = vmatpush3.bf16.xpose.msra.mxu0 %v17098_v44  ;;  %v18142_v37 = vld [vmem:[%s17974_s28 + $0x3e0] sm:$0xff] }
 0x100   : > { %17105 = vmatpush3.bf16.xpose.msra.mxu1 %v17102_v45  ;;  %16374 = vmatprep.mubr.f32.mxu0 %v309_v40  ;;  %v323_v40 = vld [vmem:[%s17974_s28 + $0x3f0] sm:$0xff]  ;;  %v17122_v44 = vpack.c.bf16 %v18145_v38, %v18142_v37  ;;  %v18160_v45 = vld [vmem:[%s17974_s28 + $0x408] sm:$0x1f] }
 0x101   : > { %v15998_v62 = vpop.f32.mrb[2].mxu0  ;;  %16381 = vmatprep.mubr.f32.mxu1 %v311_v42  ;;  %17107 = vmatprep.subr.bf16.mxu0 %v17106_v59  ;;  %v18152_v42 = vld [vmem:[%s17974_s28 + $0x400] sm:$0xff] }
 0x102   : > { %v12229_v63 = vcombine.low %v15984_v49, %v15998_v62  ;;  %v12230_v0 = vcombine.high %v15984_v49, %v15998_v62  ;;  %v16005_v1 = vpop.f32.mrb[2].mxu1  ;;  %v669_v2 = vpop.f32.mrb[3].mxu0  ;;  %17111 = vmatprep.subr.bf16.mxu1 %v17110_v60  ;;  %v18173_v49 = vpack.c.bf16 %v18160_v45, %v18152_v42 }
 0x103   : > { %v12245_v6 = vcombine.low %v15991_v50, %v16005_v1  ;;  %v12246_v7 = vcombine.high %v15991_v50, %v16005_v1  ;;  %v10053_v8 = vcombine.low %v519_v51, %v669_v2  ;;  %v10054_v9 = vcombine.high %v519_v51, %v669_v2  ;;  %v744_v10 = vpop.f32.mrb[3].mxu1 }
 0x104   : > { %v12237_v14 = vrot.slane %v12229_v63, %v18111_v61  ;;  %v12244_v15 = vrot.slane %v12230_v0, %v18111_v61  ;;  %v10069_v16 = vcombine.low %v594_v54, %v744_v10  ;;  %v10070_v17 = vcombine.high %v594_v54, %v744_v10 }
 0x105   : > { %v12253_v18 = vrot.slane %v12245_v6, %v18111_v61  ;;  %v12260_v19 = vrot.slane %v12246_v7, %v18111_v61  ;;  %v10061_v20 = vrot.slane %v10053_v8, %v18111_v61  ;;  %v18127_v21 = vrot.slane %v10054_v9, %v18111_v61 }
 0x106   : > { %v10077_v22 = vrot.slane %v10069_v16, %v18111_v61  ;;  %v18131_v23 = vrot.slane %v10070_v17, %v18111_v61  ;;  %16375 = vmatmul.mubr.f32.vlgmr.msra.gmra.mrb[56].mxu0 %v18090_v41  ;;  %v18149_v41 = vld [vmem:[%s17974_s28 + $0x3f8] sm:$0x1f]  ;;  %v18177_v50 = vpack.c.bf16 %v18166_v47, %v18163_v46 }
 0x107   : > { %v12294_v26 = vcombine.high %v12237_v14, %v12253_v18  ;;  %v12309_v27 = vcombine.low %v12244_v15, %v12260_v19  ;;  %16382 = vmatmul.mubr.f32.vlgmr.msra.gmra.mrb[56].mxu1 %v18094_v43  ;;  %17109 = vmatpush3.bf16.xpose.msra.mxu0 %v17106_v59  ;;  %v12293_v28 = vcombine.low %v12237_v14, %v12253_v18 }
 0x108   : > { %v10117_v29 = vcombine.low %v10061_v20, %v10077_v22  ;;  %v10118_v30 = vcombine.high %v10061_v20, %v10077_v22  ;;  %v10133_v31 = vcombine.low %v18127_v21, %v18131_v23  ;;  %v10134_v32 = vcombine.high %v18127_v21, %v18131_v23  ;;  %17113 = vmatpush3.bf16.xpose.msra.mxu1 %v17110_v60 }
 0x109   : > { %v16012_v34 = vpop.f32.mrb[4].mxu0  ;;  %16388 = vmatprep.mubr.f32.mxu0 %v313_v52  ;;  %16395 = vmatprep.mubr.f32.mxu1 %v315_v55  ;;  %v18155_v43 = vsub.s32 %v10121_v33, %v18106_v58  ;;  %v17126_v48 = vpack.c.bf16 %v18149_v41, %v323_v40  ;;  %v18237_v33 = vld [vmem:[%s17974_s28 + $0x428] sm:$0x1f] }
 0x10a   : > { %v16019_v35 = vpop.f32.mrb[4].mxu1  ;;  %v819_v36 = vpop.f32.mrb[5].mxu0  ;;  %17115 = vmatprep.subr.bf16.mxu0 %v17114_v24  ;;  %17119 = vmatprep.subr.bf16.mxu1 %v17118_v25 }
 0x10b   : > { %v894_v39 = vpop.f32.mrb[5].mxu1  ;;  %v18180_v52 = vrot.slane %v12293_v28, %v18155_v43  ;;  %v18186_v54 = vrot.slane %v12309_v27, %v18155_v43  ;;  %v18189_v55 = vrot.slane %v10117_v29, %v18155_v43  ;;  %v18204_v14 = vrot.slane %v10134_v32, %v18155_v43  ;;  %v18234_v32 = vld [vmem:[%s17974_s28 + $0x420] sm:$0xff] }
 0x10d   : > { %21690 = vst [vmem:[#allocation5_spill] sm:$0xff] %v18189_v55 }
 0x10e   : > { %16389 = vmatmul.mubr.f32.vlgmr.msra.gmra.mrb[58].mxu0 %v18100_v53  ;;  %v18183_v53 = vrot.slane %v12294_v26, %v18155_v43 }
 0x10f   : > { %16396 = vmatmul.mubr.f32.vlgmr.msra.gmra.mrb[58].mxu1 %v18104_v56  ;;  %17117 = vmatpush3.bf16.xpose.msra.mxu0 %v17114_v24  ;;  %v18192_v56 = vrot.slane %v10118_v30, %v18155_v43 }
 0x110   : > { %17121 = vmatpush3.bf16.xpose.msra.mxu1 %v17118_v25  ;;  %16402 = vmatprep.mubr.f32.mxu0 %v317_v5 }
 0x111   : > { %v16026_v51 = vpop.f32.mrb[6].mxu0  ;;  %16409 = vmatprep.mubr.f32.mxu1 %v319_v12  ;;  %17123 = vmatprep.subr.bf16.mxu0 %v17122_v44  ;;  %v18201_v12 = vrot.slane %v10133_v31, %v18155_v43 }
 0x112   : > { %v12261_v57 = vcombine.low %v16012_v34, %v16026_v51  ;;  %v12262_v58 = vcombine.high %v16012_v34, %v16026_v51  ;;  %v16033_v59 = vpop.f32.mrb[6].mxu1  ;;  %v969_v60 = vpop.f32.mrb[7].mxu0  ;;  %17127 = vmatprep.subr.bf16.mxu1 %v17126_v48 }
 0x113   : > { %v12277_v62 = vcombine.low %v16019_v35, %v16033_v59  ;;  %v12278_v63 = vcombine.high %v16019_v35, %v16033_v59  ;;  %v10085_v0 = vcombine.low %v819_v36, %v969_v60  ;;  %v10086_v1 = vcombine.high %v819_v36, %v969_v60  ;;  %v1044_v2 = vpop.f32.mrb[7].mxu1  ;;  %v18711_v60 = vld [vmem:[%s17974_s28 + $0x5a8] sm:$0x1f] }
 0x114   : > { %v12269_v3 = vrot.slane %v12261_v57, %v18111_v61  ;;  %v12276_v4 = vrot.slane %v12262_v58, %v18111_v61  ;;  %v10101_v5 = vcombine.low %v894_v39, %v1044_v2  ;;  %v10102_v6 = vcombine.high %v894_v39, %v1044_v2 }
 0x115   : > { %v12285_v7 = vrot.slane %v12277_v62, %v18111_v61  ;;  %v12292_v8 = vrot.slane %v12278_v63, %v18111_v61  ;;  %v10093_v9 = vrot.slane %v10085_v0, %v18111_v61  ;;  %v10100_v10 = vrot.slane %v10086_v1, %v18111_v61 }
 0x116   : > { %v10109_v15 = vrot.slane %v10101_v5, %v18111_v61  ;;  %v10116_v16 = vrot.slane %v10102_v6, %v18111_v61  ;;  %16403 = vmatmul.mubr.f32.vlgmr.msra.gmra.mrb[60].mxu0 %v18115_v11 }
 0x117   : > { %v12318_v17 = vcombine.high %v12269_v3, %v12285_v7  ;;  %v12333_v18 = vcombine.low %v12276_v4, %v12292_v8  ;;  %16410 = vmatmul.mubr.f32.vlgmr.msra.gmra.mrb[60].mxu1 %v18119_v13  ;;  %17125 = vmatpush3.bf16.xpose.msra.mxu0 %v17122_v44  ;;  %v12317_v19 = vcombine.low %v12269_v3, %v12285_v7  ;;  %v18252_v44 = vld [vmem:[%s17974_s28 + $0x438] sm:$0x1f]  ;;  %v18286_v7 = vld [vmem:[%s17974_s28 + $0x448] sm:$0x1f]  ;;  %v335_v8 = vld [vmem:[%s17974_s28 + $0x450] sm:$0xff] }
 0x118   : > { %v10149_v20 = vcombine.low %v10093_v9, %v10109_v15  ;;  %v10150_v21 = vcombine.high %v10093_v9, %v10109_v15  ;;  %v10165_v22 = vcombine.low %v10100_v10, %v10116_v16  ;;  %v10166_v23 = vcombine.high %v10100_v10, %v10116_v16  ;;  %17129 = vmatpush3.bf16.xpose.msra.mxu1 %v17126_v48  ;;  %v18290_v9 = vld [vmem:[%s17974_s28 + $0x458] sm:$0x1f] }
 0x119   : > { %v16040_v24 = vpop.f32.mrb[8].mxu0  ;;  %v18211_v25 = vrot.slane %v12317_v19, %v18155_v43  ;;  %16416 = vmatprep.mubr.f32.mxu0 %v18142_v37  ;;  %16423 = vmatprep.mubr.f32.mxu1 %v323_v40  ;;  %v18215_v11 = vrot.slane %v12318_v17, %v18155_v43  ;;  %v18218_v13 = vrot.slane %v12333_v18, %v18155_v43  ;;  %v18249_v40 = vld [vmem:[%s17974_s28 + $0x430] sm:$0xff] }
 0x11a   : > { %v18221_v26 = vrot.slane %v10149_v20, %v18155_v43  ;;  %v18224_v27 = vrot.slane %v10150_v21, %v18155_v43  ;;  %v18227_v28 = vrot.slane %v10165_v22, %v18155_v43  ;;  %v18230_v29 = vrot.slane %v10166_v23, %v18155_v43  ;;  %v16047_v30 = vpop.f32.mrb[8].mxu1  ;;  %v1119_v31 = vpop.f32.mrb[9].mxu0  ;;  %17131 = vmatprep.subr.bf16.mxu0 %v18173_v49 }
 0x11b   : > { %v1194_v34 = vpop.f32.mrb[9].mxu1  ;;  %v12342_v35 = vcombine.high %v18180_v52, %v18211_v25  ;;  %17135 = vmatprep.subr.bf16.mxu1 %v18177_v50  ;;  %v12343_v37 = vcombine.low %v18183_v53, %v18215_v11  ;;  %v12344_v39 = vcombine.high %v18183_v53, %v18215_v11  ;;  %v12345_v51 = vcombine.low %v18186_v54, %v18218_v13 }
 0x11c   : > { %21691 = vst [vmem:[#allocation6_spill] sm:$0xff] %v18221_v26  ;;  %v10182_v57 = vcombine.high %v18189_v55, %v18221_v26  ;;  %v10183_v58 = vcombine.low %v18192_v56, %v18224_v27  ;;  %v17138_v53 = vpack.c.bf16 %v18237_v33, %v18234_v32  ;;  %v10184_v59 = vcombine.high %v18192_v56, %v18224_v27 }
 0x11d   : > { %14629 = vrot.lane.b32.xlu1 %v12342_v35, %s17885_s29  ;;  %v17142_v54 = vpack.c.bf16 %v18252_v44, %v18249_v40 }
 0x11e   : > { %16417 = vmatmul.mubr.f32.vlgmr.msra.gmra.mrb[62].mxu0 %v18145_v38 }
 0x11f   : > { %16424 = vmatmul.mubr.f32.vlgmr.msra.gmra.mrb[62].mxu1 %v18149_v41  ;;  %17133 = vmatpush3.bf16.xpose.msra.mxu0 %v18173_v49  ;;  %v333_v41 = vld [vmem:[%s17974_s28 + $0x440] sm:$0xff] }
 0x120   : > { %17137 = vmatpush3.bf16.xpose.msra.mxu1 %v18177_v50  ;;  %16430 = vmatprep.mubr.f32.mxu0 %v18152_v42  ;;  %v17146_v23 = vpack.c.bf16 %v18286_v7, %v333_v41 }
 0x121   : > { %14693 = vrot.lane.b32.xlu1 %v12343_v37, %s17886_s30  ;;  %v16054_v38 = vpop.f32.mrb[10].mxu0  ;;  %16437 = vmatprep.mubr.f32.mxu1 %v18163_v46 }
 0x122   : > { %v12346_v1 = vcombine.low %v16040_v24, %v16054_v38  ;;  %v12347_v2 = vcombine.high %v16040_v24, %v16054_v38  ;;  %v16061_v3 = vpop.f32.mrb[10].mxu1  ;;  %v1269_v4 = vpop.f32.mrb[11].mxu0  ;;  %17139 = vmatprep.subr.bf16.mxu0 %v17138_v53  ;;  %17143 = vmatprep.subr.bf16.mxu1 %v17142_v54  ;;  %v17150_v24 = vpack.c.bf16 %v18290_v9, %v335_v8  ;;  %v18326_v38 = vld [vmem:[%s17974_s28 + $0x468] sm:$0x1f] }
 0x123   : > { %v12362_v49 = vcombine.low %v16047_v30, %v16061_v3  ;;  %v12363_v50 = vcombine.high %v16047_v30, %v16061_v3  ;;  %v10189_v5 = vcombine.low %v1119_v31, %v1269_v4  ;;  %v10190_v42 = vcombine.high %v1119_v31, %v1269_v4  ;;  %v1344_v6 = vpop.f32.mrb[11].mxu1  ;;  %v18334_v3 = vld [vmem:[%s17974_s28 + $0x480] sm:$0xff]  ;;  %v18339_v4 = vld [vmem:[%s17974_s28 + $0x488] sm:$0x1f] }
 0x124   : > { %v12354_v10 = vrot.slane %v12346_v1, %v18111_v61  ;;  %v12361_v46 = vrot.slane %v12347_v2, %v18111_v61  ;;  %v10205_v15 = vcombine.low %v1194_v34, %v1344_v6  ;;  %v10206_v16 = vcombine.high %v1194_v34, %v1344_v6  ;;  %v18330_v2 = vld [vmem:[%s17974_s28 + $0x478] sm:$0x1f] }
 0x125   : > { %v12370_v17 = vrot.slane %v12362_v49, %v18111_v61  ;;  %v12377_v18 = vrot.slane %v12363_v50, %v18111_v61  ;;  %v18297_v19 = vrot.slane %v10189_v5, %v18111_v61  ;;  %v18300_v20 = vrot.slane %v10190_v42, %v18111_v61  ;;  %14757 = vrot.lane.b32.xlu1 %v12344_v39, %s17887_s4  ;;  %v18345_v49 = vld [vmem:[%s17974_s28 + $0x498] sm:$0x1f] }
 0x126   : > { %v18304_v21 = vrot.slane %v10205_v15, %v18111_v61  ;;  %v18307_v22 = vrot.slane %v10206_v16, %v18111_v61  ;;  %16431 = vmatmul.mubr.f32.vlgmr.msra.gmra.mrb[64].mxu0 %v18160_v45 }
 0x127   : > { %v12410_v11 = vcombine.low %v12354_v10, %v12370_v17  ;;  %v12426_v13 = vcombine.low %v12361_v46, %v12377_v18  ;;  %16438 = vmatmul.mubr.f32.vlgmr.msra.gmra.mrb[64].mxu1 %v18166_v47  ;;  %17141 = vmatpush3.bf16.xpose.msra.mxu0 %v17138_v53  ;;  %v12411_v30 = vcombine.high %v12354_v10, %v12370_v17  ;;  %v337_v53 = vld [vmem:[%s17974_s28 + $0x460] sm:$0xff] }
 0x128   : > { %v10253_v31 = vcombine.low %v18297_v19, %v18304_v21  ;;  %v10254_v34 = vcombine.high %v18297_v19, %v18304_v21  ;;  %v10269_v45 = vcombine.low %v18300_v20, %v18307_v22  ;;  %v10270_v35 = vcombine.high %v18300_v20, %v18307_v22  ;;  %17145 = vmatpush3.bf16.xpose.msra.mxu1 %v17142_v54  ;;  %v339_v54 = vld [vmem:[%s17974_s28 + $0x470] sm:$0xff] }
 0x129   : > { %14821 = vrot.lane.b32.xlu1 %v12345_v51, %s17888_s5  ;;  %v16068_v47 = vpop.f32.mrb[12].mxu0  ;;  %16444 = vmatprep.mubr.f32.mxu0 %v18234_v32  ;;  %v17154_v51 = vpack.c.bf16 %v18326_v38, %v337_v53  ;;  %v17158_v32 = vpack.c.bf16 %v18330_v2, %v339_v54  ;;  %v18349_v5 = vrot.slane %v12411_v30, %v18155_v43 }
 0x12a   : > { %v16075_v37 = vpop.f32.mrb[12].mxu1  ;;  %v1419_v39 = vpop.f32.mrb[13].mxu0  ;;  %16451 = vmatprep.mubr.f32.mxu1 %v18249_v40  ;;  %17147 = vmatprep.subr.bf16.mxu0 %v17146_v23  ;;  %v18342_v40 = vld [vmem:[%s17974_s28 + $0x490] sm:$0xff]  ;;  %v18372_v48 = vrot.slane %v10253_v31, %v18155_v43 }
 0x12b   : > { %v1494_v1 = vpop.f32.mrb[13].mxu1  ;;  %17151 = vmatprep.subr.bf16.mxu1 %v17150_v24  ;;  %v18357_v42 = vpack.c.bf16 %v18345_v49, %v18342_v40 }
 0x12c   : > { %21693 = vst [vmem:[#allocation8_spill] sm:$0xff] %v18372_v48 }
 0x12e   : > { %16445 = vmatmul.mubr.f32.vlgmr.msra.gmra.mrb[66].mxu0 %v18237_v33  ;;  %v18353_v33 = vpack.c.bf16 %v18339_v4, %v18334_v3 }
 0x12f   : > { %16452 = vmatmul.mubr.f32.vlgmr.msra.gmra.mrb[66].mxu1 %v18252_v44  ;;  %17149 = vmatpush3.bf16.xpose.msra.mxu0 %v17146_v23 }
 0x130   : > { %17153 = vmatpush3.bf16.xpose.msra.mxu1 %v17150_v24  ;;  %16458 = vmatprep.mubr.f32.mxu0 %v333_v41  ;;  %v18360_v41 = vrot.slane %v12410_v11, %v18155_v43 }
 0x131   : > { %v16082_v50 = vpop.f32.mrb[14].mxu0  ;;  %16465 = vmatprep.mubr.f32.mxu1 %v335_v8  ;;  %17155 = vmatprep.subr.bf16.mxu0 %v17154_v51  ;;  %v18363_v8 = vrot.slane %v12426_v13, %v18155_v43 }
 0x132   : > { %v12378_v6 = vcombine.low %v16068_v47, %v16082_v50  ;;  %v12379_v10 = vcombine.high %v16068_v47, %v16082_v50  ;;  %v16089_v44 = vpop.f32.mrb[14].mxu1  ;;  %v1569_v46 = vpop.f32.mrb[15].mxu0  ;;  %17159 = vmatprep.subr.bf16.mxu1 %v17158_v32  ;;  %21692 = vst [vmem:[#allocation7_spill] sm:$0xff] %v18360_v41 }
 0x133   : > { %v12394_v15 = vcombine.low %v16075_v37, %v16089_v44  ;;  %v12395_v16 = vcombine.high %v16075_v37, %v16089_v44  ;;  %v10221_v17 = vcombine.low %v1419_v39, %v1569_v46  ;;  %v10222_v18 = vcombine.high %v1419_v39, %v1569_v46  ;;  %v1644_v19 = vpop.f32.mrb[15].mxu1 }
 0x134   : > { %v12386_v21 = vrot.slane %v12378_v6, %v18111_v61  ;;  %v12393_v23 = vrot.slane %v12379_v10, %v18111_v61  ;;  %v10237_v24 = vcombine.low %v1494_v1, %v1644_v19  ;;  %v10238_v30 = vcombine.high %v1494_v1, %v1644_v19 }
 0x135   : > { %v12402_v47 = vrot.slane %v12394_v15, %v18111_v61  ;;  %v12409_v50 = vrot.slane %v12395_v16, %v18111_v61  ;;  %v10229_v11 = vrot.slane %v10221_v17, %v18111_v61  ;;  %v10236_v13 = vrot.slane %v10222_v18, %v18111_v61 }
 0x136   : > { %v10268_v37 = vrot.slane %v10254_v34, %v18155_v43  ;;  %v10245_v39 = vrot.slane %v10237_v24, %v18111_v61  ;;  %v10252_v6 = vrot.slane %v10238_v30, %v18111_v61  ;;  %16459 = vmatmul.mubr.f32.vlgmr.msra.gmra.mrb[68].mxu0 %v18286_v7 }
 0x137   : > { %v12434_v1 = vcombine.low %v12386_v21, %v12402_v47  ;;  %v12450_v10 = vcombine.low %v12393_v23, %v12409_v50  ;;  %16466 = vmatmul.mubr.f32.vlgmr.msra.gmra.mrb[68].mxu1 %v18290_v9  ;;  %17157 = vmatpush3.bf16.xpose.msra.mxu0 %v17154_v51  ;;  %v12435_v44 = vcombine.high %v12386_v21, %v12402_v47 }
 0x138   : > { %v10285_v46 = vcombine.low %v10229_v11, %v10245_v39  ;;  %v10286_v15 = vcombine.high %v10229_v11, %v10245_v39  ;;  %v10301_v16 = vcombine.low %v10236_v13, %v10252_v6  ;;  %v10302_v31 = vcombine.high %v10236_v13, %v10252_v6  ;;  %17161 = vmatpush3.bf16.xpose.msra.mxu1 %v17158_v32  ;;  %v18414_v6 = vld [vmem:[%s17974_s28 + $0x4b0] sm:$0xff] }
 0x139   : > { %v18379_v34 = vpop.f32.mrb[16].mxu0  ;;  %v12449_v17 = vrot.slane %v12435_v44, %v18155_v43  ;;  %v18383_v18 = vrot.slane %v12434_v1, %v18155_v43  ;;  %16472 = vmatprep.mubr.f32.mxu0 %v337_v53  ;;  %16479 = vmatprep.mubr.f32.mxu1 %v339_v54  ;;  %v12457_v7 = vrot.slane %v12450_v10, %v18155_v43  ;;  %v18398_v53 = vld [vmem:[%s17974_s28 + $0x4a0] sm:$0xff]  ;;  %v18401_v54 = vld [vmem:[%s17974_s28 + $0x4a8] sm:$0x1f]  ;;  %v18417_v1 = vld [vmem:[%s17974_s28 + $0x4b8] sm:$0x1f] }
 0x13a   : > { %v18387_v9 = vrot.slane %v10285_v46, %v18155_v43  ;;  %v10300_v51 = vrot.slane %v10286_v15, %v18155_v43  ;;  %v18391_v19 = vrot.slane %v10301_v16, %v18155_v43  ;;  %v18394_v32 = vrot.slane %v10302_v31, %v18155_v43  ;;  %v16103_v21 = vpop.f32.mrb[16].mxu1  ;;  %v1719_v23 = vpop.f32.mrb[17].mxu0  ;;  %17163 = vmatprep.subr.bf16.mxu0 %v18353_v33 }
 0x13b   : > { %21694 = vst [vmem:[#allocation9_spill] sm:$0xff] %v18383_v18  ;;  %v1794_v24 = vpop.f32.mrb[17].mxu1  ;;  %v12461_v30 = vcombine.high %v18349_v5, %v12449_v17  ;;  %v12459_v47 = vcombine.high %v18360_v41, %v18383_v18  ;;  %17167 = vmatprep.subr.bf16.mxu1 %v18357_v42  ;;  %v12462_v50 = vcombine.low %v18363_v8, %v12457_v7 }
 0x13c   : > { %21695 = vst [vmem:[#allocation10_spill] sm:$0xff] %v18387_v9  ;;  %21696 = vst [vmem:[#allocation11_spill] sm:$0xff] %v18391_v19  ;;  %v12460_v11 = vcombine.low %v18349_v5, %v12449_v17  ;;  %v10318_v39 = vcombine.high %v18372_v48, %v18387_v9  ;;  %v10319_v10 = vcombine.low %v10268_v37, %v10300_v51 }
 0x13d   : > { %21697 = vst [vmem:[#allocation12_spill] sm:$0xff] %v18394_v32  ;;  %v10320_v44 = vcombine.high %v10268_v37, %v10300_v51  ;;  %v18423_v46 = vrot.slane %v10269_v45, %v18155_v43  ;;  %v18429_v5 = vrot.slane %v10270_v35, %v18155_v43  ;;  %14759 = vrot.lane.b32.xlu0 %v12461_v30, %s17887_s4  ;;  %v18470_v51 = vld [vmem:[%s17974_s28 + $0x4c8] sm:$0x1f]  ;;  %v351_v30 = vld [vmem:[%s17974_s28 + $0x4d0] sm:$0xff] }
 0x13e   : > { %14631 = vrot.lane.b32.xlu1 %v12459_v47, %s17885_s29  ;;  %v17170_v8 = vpack.c.bf16 %v18401_v54, %v18398_v53  ;;  %16473 = vmatmul.mubr.f32.vlgmr.msra.gmra.mrb[70].mxu0 %v18326_v38  ;;  %v17499_v45 = vpack.i.bf16 %v10318_v39, %v10182_v57  ;;  %v17504_v37 = vpack.i.bf16 %v10319_v10, %v10183_v58  ;;  %v18474_v47 = vld [vmem:[%s17974_s28 + $0x4d8] sm:$0x1f] }
 0x13f   : > { %21698 = vst [vmem:[#allocation13_spill] sm:$0xff] %v18423_v46  ;;  %21699 = vst [vmem:[#allocation14_spill] sm:$0xff] %v18429_v5  ;;  %v18445_v20 = vpack.i.bf16 %v10320_v44, %v10184_v59  ;;  %16480 = vmatmul.mubr.f32.vlgmr.msra.gmra.mrb[70].mxu1 %v18330_v2  ;;  %17165 = vmatpush3.bf16.xpose.msra.mxu0 %v18353_v33  ;;  %v17174_v35 = vpack.c.bf16 %v18417_v1, %v18414_v6 }
 0x140   : > { %17169 = vmatpush3.bf16.xpose.msra.mxu1 %v18357_v42  ;;  %16486 = vmatprep.mubr.f32.mxu0 %v18334_v3  ;;  %v349_v42 = vld [vmem:[%s17974_s28 + $0x4c0] sm:$0xff] }
 0x141   : > { %14823 = vrot.lane.b32.xlu0 %v12462_v50, %s17888_s5  ;;  %v16110_v59 = vpop.f32.mrb[18].mxu0  ;;  %16493 = vmatprep.mubr.f32.mxu1 %v18342_v40 }
 0x142   : > { %14695 = vrot.lane.b32.xlu1 %v12460_v11, %s17886_s30  ;;  %v12463_v38 = vcombine.low %v18379_v34, %v16110_v59  ;;  %v12464_v2 = vcombine.high %v18379_v34, %v16110_v59  ;;  %v16117_v33 = vpop.f32.mrb[18].mxu1  ;;  %v1869_v3 = vpop.f32.mrb[19].mxu0  ;;  %17171 = vmatprep.subr.bf16.mxu0 %v17170_v8 }
 0x143   : > { %v12479_v15 = vcombine.low %v16103_v21, %v16117_v33  ;;  %v12480_v16 = vcombine.high %v16103_v21, %v16117_v33  ;;  %v10325_v31 = vcombine.low %v1719_v23, %v1869_v3  ;;  %v10326_v17 = vcombine.high %v1719_v23, %v1869_v3  ;;  %v1944_v7 = vpop.f32.mrb[19].mxu1  ;;  %17175 = vmatprep.subr.bf16.mxu1 %v17174_v35 }
 0x144   : > { %v12471_v50 = vrot.slane %v12463_v38, %v18111_v61  ;;  %v12478_v34 = vrot.slane %v12464_v2, %v18111_v61  ;;  %v10341_v11 = vcombine.low %v1794_v24, %v1944_v7  ;;  %v10342_v39 = vcombine.high %v1794_v24, %v1944_v7  ;;  %v18504_v7 = vld [vmem:[%s17974_s28 + $0x4e8] sm:$0x1f] }
 0x145   : > { %v12487_v40 = vrot.slane %v12479_v15, %v18111_v61  ;;  %v12494_v10 = vrot.slane %v12480_v16, %v18111_v61  ;;  %v10333_v21 = vrot.slane %v10325_v31, %v18111_v61  ;;  %v18482_v23 = vrot.slane %v10326_v17, %v18111_v61  ;;  %17500 = vrot.lane.b32.xlu0 %v17499_v45, %s17889_s6  ;;  %v18501_v17 = vld [vmem:[%s17974_s28 + $0x4e0] sm:$0xff] }
 0x146   : > { %v10349_v44 = vrot.slane %v10341_v11, %v18111_v61  ;;  %v18487_v59 = vrot.slane %v10342_v39, %v18111_v61  ;;  %16487 = vmatmul.mubr.f32.vlgmr.msra.gmra.mrb[72].mxu0 %v18339_v4  ;;  %v17178_v24 = vpack.c.bf16 %v18470_v51, %v349_v42  ;;  %v17182_v38 = vpack.c.bf16 %v18474_v47, %v351_v30  ;;  %v18521_v11 = vld [vmem:[%s17974_s28 + $0x510] sm:$0xff]  ;;  %v18524_v39 = vld [vmem:[%s17974_s28 + $0x518] sm:$0x1f] }
 0x147   : > { %v12527_v2 = vcombine.low %v12471_v50, %v12487_v40  ;;  %v12528_v33 = vcombine.high %v12471_v50, %v12487_v40  ;;  %v12543_v3 = vcombine.low %v12478_v34, %v12494_v10  ;;  %16494 = vmatmul.mubr.f32.vlgmr.msra.gmra.mrb[72].mxu1 %v18345_v49  ;;  %17173 = vmatpush3.bf16.xpose.msra.mxu0 %v17170_v8  ;;  %v18508_v34 = vld [vmem:[%s17974_s28 + $0x4f8] sm:$0x1f] }
 0x148   : > { %v10389_v45 = vcombine.low %v10333_v21, %v10349_v44  ;;  %v10390_v15 = vcombine.high %v10333_v21, %v10349_v44  ;;  %v10405_v16 = vcombine.low %v18482_v23, %v18487_v59  ;;  %v10406_v4 = vcombine.high %v18482_v23, %v18487_v59  ;;  %17177 = vmatpush3.bf16.xpose.msra.mxu1 %v17174_v35  ;;  %v355_v35 = vld [vmem:[%s17974_s28 + $0x4f0] sm:$0xff] }
 0x149   : > { %17505 = vrot.lane.b32.xlu0 %v17504_v37, %s17890_s7  ;;  %v16124_v31 = vpop.f32.mrb[20].mxu0  ;;  %16500 = vmatprep.mubr.f32.mxu0 %v18398_v53  ;;  %v18511_v37 = vld [vmem:[%s17974_s28 + $0x500] sm:$0xff]  ;;  %v17186_v53 = vpack.c.bf16 %v18504_v7, %v18501_v17  ;;  %v17190_v40 = vpack.c.bf16 %v18508_v34, %v355_v35  ;;  %v18535_v10 = vpack.c.bf16 %v18524_v39, %v18521_v11 }
 0x14a   : > { %v16131_v49 = vpop.f32.mrb[20].mxu1  ;;  %v2019_v8 = vpop.f32.mrb[21].mxu0  ;;  %16507 = vmatprep.mubr.f32.mxu1 %v18414_v6  ;;  %17179 = vmatprep.subr.bf16.mxu0 %v17178_v24  ;;  %v18518_v6 = vld [vmem:[%s17974_s28 + $0x508] sm:$0x1f]  ;;  %v18541_v23 = vrot.slane %v12528_v33, %v18155_v43  ;;  %v18550_v44 = vrot.slane %v10390_v15, %v18155_v43  ;;  %v18559_v0 = vrot.slane %v10405_v16, %v18155_v43 }
 0x14b   : > { %v2094_v50 = vpop.f32.mrb[21].mxu1  ;;  %17183 = vmatprep.subr.bf16.mxu1 %v17182_v38 }
 0x14c   : > { %21702 = vst [vmem:[#allocation17_spill] sm:$0xff] %v18559_v0 }
 0x14d   : > { %17510 = vrot.lane.b32.xlu0 %v18445_v20, %s21675_s8  ;;  %v18531_v20 = vpack.c.bf16 %v18518_v6, %v18511_v37 }
 0x14e   : > { %16501 = vmatmul.mubr.f32.vlgmr.msra.gmra.mrb[74].mxu0 %v18401_v54  ;;  %v18538_v54 = vrot.slane %v12527_v2, %v18155_v43 }
 0x14f   : > { %16508 = vmatmul.mubr.f32.vlgmr.msra.gmra.mrb[74].mxu1 %v18417_v1  ;;  %17181 = vmatpush3.bf16.xpose.msra.mxu0 %v17178_v24  ;;  %v18544_v1 = vrot.slane %v12543_v3, %v18155_v43 }
 0x150   : > { %17185 = vmatpush3.bf16.xpose.msra.mxu1 %v17182_v38  ;;  %16514 = vmatprep.mubr.f32.mxu0 %v349_v42  ;;  %21700 = vst [vmem:[#allocation15_spill] sm:$0xff] %v18538_v54  ;;  %v18547_v42 = vrot.slane %v10389_v45, %v18155_v43 }
 0x151   : > { %v16138_v21 = vpop.f32.mrb[22].mxu0  ;;  %16521 = vmatprep.mubr.f32.mxu1 %v351_v30  ;;  %17187 = vmatprep.subr.bf16.mxu0 %v17186_v53 }
 0x152   : > { %21701 = vst [vmem:[#allocation16_spill] sm:$0xff] %v18547_v42  ;;  %v12495_v59 = vcombine.low %v16124_v31, %v16138_v21  ;;  %v12496_v24 = vcombine.high %v16124_v31, %v16138_v21  ;;  %v16145_v38 = vpop.f32.mrb[22].mxu1  ;;  %v2169_v30 = vpop.f32.mrb[23].mxu0  ;;  %17191 = vmatprep.subr.bf16.mxu1 %v17190_v40 }
 0x153   : > { %v12511_v13 = vcombine.low %v16131_v49, %v16145_v38  ;;  %v12512_v2 = vcombine.high %v16131_v49, %v16145_v38  ;;  %v10357_v27 = vcombine.low %v2019_v8, %v2169_v30  ;;  %v10358_v56 = vcombine.high %v2019_v8, %v2169_v30  ;;  %v2244_v33 = vpop.f32.mrb[23].mxu1  ;;  %v18590_v30 = vld [vmem:[%s17974_s28 + $0x520] sm:$0xff] }
 0x154   : > { %v12503_v58 = vrot.slane %v12495_v59, %v18111_v61  ;;  %v12510_v3 = vrot.slane %v12496_v24, %v18111_v61  ;;  %v10373_v57 = vcombine.low %v2094_v50, %v2244_v33  ;;  %v10374_v45 = vcombine.high %v2094_v50, %v2244_v33 }
 0x155   : > { %v12519_v22 = vrot.slane %v12511_v13, %v18111_v61  ;;  %v12526_v15 = vrot.slane %v12512_v2, %v18111_v61  ;;  %v10365_v31 = vrot.slane %v10357_v27, %v18111_v61  ;;  %v10372_v21 = vrot.slane %v10358_v56, %v18111_v61  ;;  %v18593_v2 = vld [vmem:[%s17974_s28 + $0x528] sm:$0x1f] }
 0x156   : > { %v18562_v49 = vrot.slane %v10406_v4, %v18155_v43  ;;  %v10381_v8 = vrot.slane %v10373_v57, %v18111_v61  ;;  %v10388_v59 = vrot.slane %v10374_v45, %v18111_v61  ;;  %16515 = vmatmul.mubr.f32.vlgmr.msra.gmra.mrb[76].mxu0 %v18470_v51 }
 0x157   : > { %v12551_v50 = vcombine.low %v12503_v58, %v12519_v22  ;;  %v12552_v13 = vcombine.high %v12503_v58, %v12519_v22  ;;  %v12567_v24 = vcombine.low %v12510_v3, %v12526_v15  ;;  %16522 = vmatmul.mubr.f32.vlgmr.msra.gmra.mrb[76].mxu1 %v18474_v47  ;;  %17189 = vmatpush3.bf16.xpose.msra.mxu0 %v17186_v53 }
 0x158   : > { %21703 = vst [vmem:[#allocation18_spill] sm:$0xff] %v18562_v49  ;;  %v10421_v27 = vcombine.low %v10365_v31, %v10381_v8  ;;  %v10422_v56 = vcombine.high %v10365_v31, %v10381_v8  ;;  %v10437_v38 = vcombine.low %v10372_v21, %v10388_v59  ;;  %v10438_v16 = vcombine.high %v10372_v21, %v10388_v59  ;;  %v18601_v31 = vld [vmem:[%s17974_s28 + $0x530] sm:$0xff]  ;;  %v18604_v21 = vld [vmem:[%s17974_s28 + $0x538] sm:$0x1f] }
 0x159   : > { %17193 = vmatpush3.bf16.xpose.msra.mxu1 %v17190_v40  ;;  %v16152_v4 = vpop.f32.mrb[24].mxu0  ;;  %v18569_v57 = vrot.slane %v12551_v50, %v18155_v43  ;;  %16528 = vmatprep.mubr.f32.mxu0 %v18501_v17  ;;  %v12566_v22 = vrot.slane %v12552_v13, %v18155_v43  ;;  %v18574_v58 = vrot.slane %v12567_v24, %v18155_v43 }
 0x15a   : > { %16535 = vmatprep.mubr.f32.mxu1 %v355_v35  ;;  %v18577_v51 = vrot.slane %v10421_v27, %v18155_v43  ;;  %v18580_v47 = vrot.slane %v10422_v56, %v18155_v43  ;;  %v18583_v53 = vrot.slane %v10437_v38, %v18155_v43  ;;  %v18586_v40 = vrot.slane %v10438_v16, %v18155_v43  ;;  %v16159_v17 = vpop.f32.mrb[24].mxu1  ;;  %v2319_v35 = vpop.f32.mrb[25].mxu0  ;;  %v18644_v38 = vld [vmem:[%s17974_s28 + $0x558] sm:$0x1f] }
 0x15b   : > { %21704 = vst [vmem:[#allocation19_spill] sm:$0xff] %v18569_v57  ;;  %17195 = vmatprep.subr.bf16.mxu0 %v18531_v20  ;;  %v2394_v33 = vpop.f32.mrb[25].mxu1  ;;  %v12576_v3 = vcombine.high %v18538_v54, %v18569_v57  ;;  %17199 = vmatprep.subr.bf16.mxu1 %v18535_v10  ;;  %v12577_v45 = vcombine.low %v18541_v23, %v12566_v22 }
 0x15c   : > { %21705 = vst [vmem:[#allocation20_spill] sm:$0xff] %v18577_v51  ;;  %21706 = vst [vmem:[#allocation21_spill] sm:$0xff] %v18583_v53  ;;  %v12578_v15 = vcombine.high %v18541_v23, %v12566_v22  ;;  %v12579_v8 = vcombine.low %v18544_v1, %v18574_v58  ;;  %v17202_v23 = vpack.c.bf16 %v18593_v2, %v18590_v30  ;;  %v18640_v1 = vld [vmem:[%s17974_s28 + $0x548] sm:$0x1f] }
 0x15d   : > { %21707 = vst [vmem:[#allocation22_spill] sm:$0xff] %v18586_v40  ;;  %14633 = vrot.lane.b32.xlu0 %v12576_v3, %s17885_s29  ;;  %v17206_v56 = vpack.c.bf16 %v18604_v21, %v18601_v31 }
 0x15e   : > { %16529 = vmatmul.mubr.f32.vlgmr.msra.gmra.mrb[78].mxu0 %v18504_v7 }
 0x15f   : > { %17197 = vmatpush3.bf16.xpose.msra.mxu0 %v18531_v20  ;;  %16542 = vmatprep.mubr.f32.mxu0 %v18511_v37 }
 0x160   : > { %16536 = vmatmul.mubr.f32.vlgmr.msra.gmra.mrb[78].mxu1 %v18508_v34  ;;  %17203 = vmatprep.subr.bf16.mxu0 %v17202_v23  ;;  %v365_v34 = vld [vmem:[%s17974_s28 + $0x540] sm:$0xff] }
 0x161   : > { %17201 = vmatpush3.bf16.xpose.msra.mxu1 %v18535_v10  ;;  %14697 = vrot.lane.b32.xlu0 %v12577_v45, %s17886_s30  ;;  %v16166_v7 = vpop.f32.mrb[26].mxu0  ;;  %v367_v45 = vld [vmem:[%s17974_s28 + $0x550] sm:$0xff] }
 0x162   : > { %16549 = vmatprep.mubr.f32.mxu1 %v18521_v11  ;;  %v12580_v58 = vcombine.low %v16152_v4, %v16166_v7  ;;  %v12581_v3 = vcombine.high %v16152_v4, %v16166_v7  ;;  %v16173_v59 = vpop.f32.mrb[26].mxu1  ;;  %v2469_v22 = vpop.f32.mrb[27].mxu0  ;;  %17207 = vmatprep.subr.bf16.mxu1 %v17206_v56 }
 0x163   : > { %v12596_v20 = vcombine.low %v16159_v17, %v16173_v59  ;;  %v12597_v16 = vcombine.high %v16159_v17, %v16173_v59  ;;  %v10461_v10 = vcombine.low %v2319_v35, %v2469_v22  ;;  %v10462_v27 = vcombine.high %v2319_v35, %v2469_v22  ;;  %v2544_v37 = vpop.f32.mrb[27].mxu1 }
 0x164   : > { %v12588_v63 = vrot.slane %v12580_v58, %v18111_v61  ;;  %v18648_v11 = vrot.slane %v12581_v3, %v18111_v61  ;;  %v10477_v4 = vcombine.low %v2394_v33, %v2544_v37  ;;  %v10478_v7 = vcombine.high %v2394_v33, %v2544_v37 }
 0x165   : > { %v12604_v62 = vrot.slane %v12596_v20, %v18111_v61  ;;  %v12611_v36 = vrot.slane %v12597_v16, %v18111_v61  ;;  %v18653_v17 = vrot.slane %v10461_v10, %v18111_v61  ;;  %v18656_v35 = vrot.slane %v10462_v27, %v18111_v61  ;;  %14761 = vrot.lane.b32.xlu0 %v12578_v15, %s17887_s4  ;;  %v18685_v10 = vld [vmem:[%s17974_s28 + $0x568] sm:$0x1f] }
 0x166   : > { %v18660_v59 = vrot.slane %v10477_v4, %v18111_v61  ;;  %v18663_v22 = vrot.slane %v10478_v7, %v18111_v61  ;;  %16543 = vmatmul.mubr.f32.vlgmr.msra.gmra.mrb[80].mxu0 %v18518_v6  ;;  %v17210_v33 = vpack.c.bf16 %v18640_v1, %v365_v34  ;;  %v17214_v16 = vpack.c.bf16 %v18644_v38, %v367_v45  ;;  %v18697_v4 = vld [vmem:[%s17974_s28 + $0x588] sm:$0x1f]  ;;  %v18700_v7 = vld [vmem:[%s17974_s28 + $0x590] sm:$0xff] }
 0x167   : > { %v12644_v58 = vcombine.low %v12588_v63, %v12604_v62  ;;  %v12645_v3 = vcombine.high %v12588_v63, %v12604_v62  ;;  %v12660_v27 = vcombine.low %v18648_v11, %v12611_v36  ;;  %17205 = vmatpush3.bf16.xpose.msra.mxu0 %v17202_v23  ;;  %16556 = vmatprep.mubr.f32.mxu0 %v18590_v30  ;;  %v18682_v23 = vld [vmem:[%s17974_s28 + $0x560] sm:$0xff] }
 0x168   : > { %16550 = vmatmul.mubr.f32.vlgmr.msra.gmra.mrb[80].mxu1 %v18524_v39  ;;  %v10525_v15 = vcombine.low %v18653_v17, %v18660_v59  ;;  %v10526_v6 = vcombine.high %v18653_v17, %v18660_v59  ;;  %v10541_v20 = vcombine.low %v18656_v35, %v18663_v22  ;;  %17211 = vmatprep.subr.bf16.mxu0 %v17210_v33  ;;  %v18692_v11 = vld [vmem:[%s17974_s28 + $0x580] sm:$0xff] }
 0x169   : > { %17209 = vmatpush3.bf16.xpose.msra.mxu1 %v17206_v56  ;;  %14825 = vrot.lane.b32.xlu0 %v12579_v8, %s17888_s5  ;;  %v16180_v36 = vpop.f32.mrb[28].mxu0  ;;  %v371_v56 = vld [vmem:[%s17974_s28 + $0x570] sm:$0xff]  ;;  %v18689_v8 = vld [vmem:[%s17974_s28 + $0x578] sm:$0x1f]  ;;  %v17218_v30 = vpack.c.bf16 %v18685_v10, %v18682_v23  ;;  %v18708_v59 = vld [vmem:[%s17974_s28 + $0x5a0] sm:$0xff]  ;;  %v18716_v24 = vpack.c.bf16 %v18697_v4, %v18692_v11  ;;  %v18723_v50 = vrot.slane %v12645_v3, %v18155_v43 }
 0x16a   : > { %v16187_v63 = vpop.f32.mrb[28].mxu1  ;;  %v2619_v39 = vpop.f32.mrb[29].mxu0  ;;  %16563 = vmatprep.mubr.f32.mxu1 %v18601_v31  ;;  %17215 = vmatprep.subr.bf16.mxu1 %v17214_v16  ;;  %v18703_v31 = vld [vmem:[%s17974_s28 + $0x598] sm:$0x1f]  ;;  %v17222_v17 = vpack.c.bf16 %v18689_v8, %v371_v56  ;;  %v18726_v62 = vrot.slane %v12644_v58, %v18155_v43  ;;  %v10540_v54 = vrot.slane %v10526_v6, %v18155_v43 }
 0x16b   : > { %v2694_v37 = vpop.f32.mrb[29].mxu1  ;;  %v18720_v13 = vpack.c.bf16 %v18703_v31, %v18700_v7 }
 0x16c   : > { %21708 = vst [vmem:[#allocation23_spill] sm:$0xff] %v18726_v62 }
 0x16e   : > { %16557 = vmatmul.mubr.f32.vlgmr.msra.gmra.mrb[82].mxu0 %v18593_v2 }
 0x16f   : > { %17213 = vmatpush3.bf16.xpose.msra.mxu0 %v17210_v33  ;;  %16570 = vmatprep.mubr.f32.mxu0 %v365_v34  ;;  %v18733_v34 = vrot.slane %v10525_v15, %v18155_v43 }
 0x170   : > { %16564 = vmatmul.mubr.f32.vlgmr.msra.gmra.mrb[82].mxu1 %v18604_v21  ;;  %17219 = vmatprep.subr.bf16.mxu0 %v17218_v30  ;;  %v18730_v21 = vpack.c.bf16 %v18711_v60, %v18708_v59 }
 0x171   : > { %17217 = vmatpush3.bf16.xpose.msra.mxu1 %v17214_v16  ;;  %v16194_v2 = vpop.f32.mrb[30].mxu0  ;;  %16577 = vmatprep.mubr.f32.mxu1 %v367_v45  ;;  %21709 = vst [vmem:[#allocation24_spill] sm:$0xff] %v18733_v34  ;;  %v18736_v45 = vrot.slane %v12660_v27, %v18155_v43 }
 0x172   : > { %v12612_v33 = vcombine.low %v16180_v36, %v16194_v2  ;;  %v12613_v16 = vcombine.high %v16180_v36, %v16194_v2  ;;  %v16201_v9 = vpop.f32.mrb[30].mxu1  ;;  %v2769_v48 = vpop.f32.mrb[31].mxu0  ;;  %17223 = vmatprep.subr.bf16.mxu1 %v17222_v17 }
 0x173   : > { %v12628_v3 = vcombine.low %v16187_v63, %v16201_v9  ;;  %v12629_v26 = vcombine.high %v16187_v63, %v16201_v9  ;;  %v10493_v55 = vcombine.low %v2619_v39, %v2769_v48  ;;  %v10494_v58 = vcombine.high %v2619_v39, %v2769_v48  ;;  %v2844_v40 = vpop.f32.mrb[31].mxu1 }
 0x174   : > { %v12620_v49 = vrot.slane %v12612_v33, %v18111_v61  ;;  %v12627_v53 = vrot.slane %v12613_v16, %v18111_v61  ;;  %v10509_v0 = vcombine.low %v2694_v37, %v2844_v40  ;;  %v10510_v15 = vcombine.high %v2694_v37, %v2844_v40 }
 0x175   : > { %v12636_v57 = vrot.slane %v12628_v3, %v18111_v61  ;;  %v12643_v36 = vrot.slane %v12629_v26, %v18111_v61  ;;  %v10501_v2 = vrot.slane %v10493_v55, %v18111_v61  ;;  %v10508_v27 = vrot.slane %v10494_v58, %v18111_v61  ;;  %v18772_v3 = vld [vmem:[%s17974_s28 + $0x5b0] sm:$0xff] }
 0x176   : > { %v18746_v9 = vrot.slane %v10541_v20, %v18155_v43  ;;  %v10517_v48 = vrot.slane %v10509_v0, %v18111_v61  ;;  %v10524_v63 = vrot.slane %v10510_v15, %v18111_v61  ;;  %16571 = vmatmul.mubr.f32.vlgmr.msra.gmra.mrb[84].mxu0 %v18640_v1 }
 0x177   : > { %v12668_v40 = vcombine.low %v12620_v49, %v12636_v57  ;;  %v12669_v39 = vcombine.high %v12620_v49, %v12636_v57  ;;  %v12684_v37 = vcombine.low %v12627_v53, %v12643_v36  ;;  %17221 = vmatpush3.bf16.xpose.msra.mxu0 %v17218_v30  ;;  %16584 = vmatprep.mubr.f32.mxu0 %v18682_v23  ;;  %v18775_v23 = vld [vmem:[%s17974_s28 + $0x5b8] sm:$0x1f] }
 0x178   : > { %21710 = vst [vmem:[#allocation25_spill] sm:$0xff] %v18746_v9  ;;  %16578 = vmatmul.mubr.f32.vlgmr.msra.gmra.mrb[84].mxu1 %v18644_v38  ;;  %v10557_v55 = vcombine.low %v10501_v2, %v10517_v48  ;;  %v10558_v26 = vcombine.high %v10501_v2, %v10517_v48  ;;  %v10573_v33 = vcombine.low %v10508_v27, %v10524_v63 }
 0x179   : > { %v10574_v6 = vcombine.high %v10508_v27, %v10524_v63  ;;  %17225 = vmatpush3.bf16.xpose.msra.mxu1 %v17222_v17  ;;  %v18752_v20 = vpop.f32.mrb[32].mxu0  ;;  %v12683_v0 = vrot.slane %v12669_v39, %v18155_v43  ;;  %v18756_v16 = vrot.slane %v12668_v40, %v18155_v43  ;;  %16591 = vmatprep.mubr.f32.mxu1 %v371_v56 }
 0x17a   : > { %v12691_v49 = vrot.slane %v12684_v37, %v18155_v43  ;;  %v18761_v57 = vrot.slane %v10557_v55, %v18155_v43  ;;  %v10572_v53 = vrot.slane %v10558_v26, %v18155_v43  ;;  %v18765_v1 = vrot.slane %v10573_v33, %v18155_v43  ;;  %v16215_v30 = vpop.f32.mrb[32].mxu1  ;;  %v2919_v17 = vpop.f32.mrb[33].mxu0  ;;  %17227 = vmatprep.subr.bf16.mxu0 %v18716_v24 }
 0x17b   : > { %21711 = vst [vmem:[#allocation26_spill] sm:$0xff] %v18756_v16  ;;  %v18768_v38 = vrot.slane %v10574_v6, %v18155_v43  ;;  %v2994_v56 = vpop.f32.mrb[33].mxu1  ;;  %v12695_v58 = vcombine.high %v18723_v50, %v12683_v0  ;;  %v12693_v15 = vcombine.high %v18726_v62, %v18756_v16  ;;  %17231 = vmatprep.subr.bf16.mxu1 %v18720_v13 }
 0x17c   : > { %21712 = vst [vmem:[#allocation27_spill] sm:$0xff] %v18761_v57  ;;  %21713 = vst [vmem:[#allocation28_spill] sm:$0xff] %v18765_v1  ;;  %v12696_v36 = vcombine.low %v18736_v45, %v12691_v49  ;;  %v12694_v2 = vcombine.low %v18723_v50, %v12683_v0  ;;  %v10591_v48 = vcombine.low %v10540_v54, %v10572_v53  ;;  %v18817_v0 = vld [vmem:[%s17974_s28 + $0x5c8] sm:$0x1f] }
 0x17d   : > { %21714 = vst [vmem:[#allocation29_spill] sm:$0xff] %v18768_v38  ;;  %v10590_v63 = vcombine.high %v18733_v34, %v18761_v57  ;;  %v10592_v40 = vcombine.high %v10540_v54, %v10572_v53  ;;  %v21715_v39 = vcombine.high %v18656_v35, %v18663_v22  ;;  %14763 = vrot.lane.b32.xlu1 %v12695_v58, %s17887_s4 }
 0x17e   : > { %14635 = vrot.lane.b32.xlu0 %v12693_v15, %s17885_s29  ;;  %v17238_v50 = vpack.c.bf16 %v18775_v23, %v18772_v3  ;;  %16585 = vmatmul.mubr.f32.vlgmr.msra.gmra.mrb[86].mxu0 %v18685_v10  ;;  %v21717_v54 = vcombine.low %v18550_v44, %v18580_v47  ;;  %v21718_v35 = vcombine.high %v18547_v42, %v18577_v51  ;;  %v18814_v10 = vld [vmem:[%s17974_s28 + $0x5c0] sm:$0xff] }
 0x17f   : > { %v18791_v37 = vrot.slane %v21715_v39, %v18155_v43  ;;  %v21719_v26 = vcombine.high %v18550_v44, %v18580_v47  ;;  %17229 = vmatpush3.bf16.xpose.msra.mxu0 %v18716_v24  ;;  %16598 = vmatprep.mubr.f32.mxu0 %v18692_v11  ;;  %v18837_v39 = vld [vmem:[%s17974_s28 + $0x5d8] sm:$0x1f] }
 0x180   : > { %v17519_v55 = vpack.i.bf16 %v10591_v48, %v21717_v54  ;;  %v17514_v22 = vpack.i.bf16 %v10590_v63, %v21718_v35  ;;  %16592 = vmatmul.mubr.f32.vlgmr.msra.gmra.mrb[86].mxu1 %v18689_v8  ;;  %17235 = vmatprep.subr.bf16.mxu0 %v18730_v21 }
 0x181   : > { %21716 = vst [vmem:[#allocation30_spill] sm:$0xff] %v18791_v37  ;;  %v17524_v33 = vpack.i.bf16 %v10592_v40, %v21719_v26  ;;  %17233 = vmatpush3.bf16.xpose.msra.mxu1 %v18720_v13  ;;  %14827 = vrot.lane.b32.xlu1 %v12696_v36, %s17888_s5  ;;  %v16222_v47 = vpop.f32.mrb[34].mxu0  ;;  %v17242_v13 = vpack.c.bf16 %v18817_v0, %v18814_v10  ;;  %v383_v40 = vld [vmem:[%s17974_s28 + $0x5d0] sm:$0xff] }
 0x182   : > { %14699 = vrot.lane.b32.xlu0 %v12694_v2, %s17886_s30  ;;  %v12697_v24 = vcombine.low %v18752_v20, %v16222_v47  ;;  %v12698_v8 = vcombine.high %v18752_v20, %v16222_v47  ;;  %v16229_v58 = vpop.f32.mrb[34].mxu1  ;;  %v3069_v15 = vpop.f32.mrb[35].mxu0  ;;  %16605 = vmatprep.mubr.f32.mxu1 %v18700_v7 }
 0x183   : > { %v12713_v11 = vcombine.low %v16215_v30, %v16229_v58  ;;  %v12714_v36 = vcombine.high %v16215_v30, %v16229_v58  ;;  %v10597_v48 = vcombine.low %v2919_v17, %v3069_v15  ;;  %v10598_v63 = vcombine.high %v2919_v17, %v3069_v15  ;;  %v3144_v2 = vpop.f32.mrb[35].mxu1  ;;  %17239 = vmatprep.subr.bf16.mxu1 %v17238_v50 }
 0x184   : > { %v12705_v20 = vrot.slane %v12697_v24, %v18111_v61  ;;  %v12712_v54 = vrot.slane %v12698_v8, %v18111_v61  ;;  %v10613_v35 = vcombine.low %v2994_v56, %v3144_v2  ;;  %v10614_v7 = vcombine.high %v2994_v56, %v3144_v2  ;;  %v387_v2 = vld [vmem:[%s17974_s28 + $0x5f0] sm:$0xff] }
 0x185   : > { %v12721_v26 = vrot.slane %v12713_v11, %v18111_v61  ;;  %v12728_v47 = vrot.slane %v12714_v36, %v18111_v61  ;;  %v18844_v27 = vrot.slane %v10597_v48, %v18111_v61  ;;  %v18847_v30 = vrot.slane %v10598_v63, %v18111_v61  ;;  %17520 = vrot.lane.b32.xlu1 %v17519_v55, %s17890_s7  ;;  %v18874_v48 = vld [vmem:[%s17974_s28 + $0x5e8] sm:$0x1f] }
 0x186   : > { %v18851_v17 = vrot.slane %v10613_v35, %v18111_v61  ;;  %v18854_v24 = vrot.slane %v10614_v7, %v18111_v61  ;;  %17515 = vrot.lane.b32.xlu0 %v17514_v22, %s17889_s6  ;;  %16599 = vmatmul.mubr.f32.vlgmr.msra.gmra.mrb[88].mxu0 %v18697_v4  ;;  %v17246_v56 = vpack.c.bf16 %v18837_v39, %v383_v40  ;;  %v18893_v35 = vld [vmem:[%s17974_s28 + $0x618] sm:$0x1f] }
 0x187   : > { %v12761_v8 = vcombine.low %v12705_v20, %v12721_v26  ;;  %v12762_v58 = vcombine.high %v12705_v20, %v12721_v26  ;;  %v12777_v15 = vcombine.low %v12712_v54, %v12728_v47  ;;  %17237 = vmatpush3.bf16.xpose.msra.mxu0 %v18730_v21  ;;  %16612 = vmatprep.mubr.f32.mxu0 %v18708_v59  ;;  %v18882_v20 = vld [vmem:[%s17974_s28 + $0x600] sm:$0xff]  ;;  %v18887_v54 = vld [vmem:[%s17974_s28 + $0x608] sm:$0x1f] }
 0x188   : > { %16606 = vmatmul.mubr.f32.vlgmr.msra.gmra.mrb[88].mxu1 %v18703_v31  ;;  %v10661_v55 = vcombine.low %v18844_v27, %v18851_v17  ;;  %v10662_v22 = vcombine.high %v18844_v27, %v18851_v17  ;;  %v385_v27 = vld [vmem:[%s17974_s28 + $0x5e0] sm:$0xff]  ;;  %17243 = vmatprep.subr.bf16.mxu0 %v17242_v13 }
 0x189   : > { %17241 = vmatpush3.bf16.xpose.msra.mxu1 %v17238_v50  ;;  %17525 = vrot.lane.b32.xlu1 %v17524_v33, %s21675_s8  ;;  %v16236_v31 = vpop.f32.mrb[36].mxu0  ;;  %v18878_v50 = vld [vmem:[%s17974_s28 + $0x5f8] sm:$0x1f]  ;;  %v17250_v33 = vpack.c.bf16 %v18874_v48, %v385_v27  ;;  %v18898_v26 = vrot.slane %v12761_v8, %v18155_v43 }
 0x18a   : > { %v16243_v21 = vpop.f32.mrb[36].mxu1  ;;  %v3219_v36 = vpop.f32.mrb[37].mxu0  ;;  %16619 = vmatprep.mubr.f32.mxu1 %v18772_v3  ;;  %17247 = vmatprep.subr.bf16.mxu1 %v17246_v56  ;;  %v17254_v59 = vpack.c.bf16 %v18878_v50, %v387_v2  ;;  %v18890_v3 = vld [vmem:[%s17974_s28 + $0x610] sm:$0xff] }
 0x18b   : > { %v3294_v63 = vpop.f32.mrb[37].mxu1  ;;  %21720 = vst [vmem:[#allocation31_spill] sm:$0xff] %v18898_v26  ;;  %v18906_v47 = vpack.c.bf16 %v18893_v35, %v18890_v3 }
 0x18e   : > { %16613 = vmatmul.mubr.f32.vlgmr.msra.gmra.mrb[90].mxu0 %v18711_v60  ;;  %v18902_v60 = vpack.c.bf16 %v18887_v54, %v18882_v20 }
 0x18f   : > { %17245 = vmatpush3.bf16.xpose.msra.mxu0 %v17242_v13  ;;  %16626 = vmatprep.mubr.f32.mxu0 %v18814_v10  ;;  %v18909_v10 = vrot.slane %v12762_v58, %v18155_v43 }
 0x190   : > { %16620 = vmatmul.mubr.f32.vlgmr.msra.gmra.mrb[90].mxu1 %v18775_v23  ;;  %17251 = vmatprep.subr.bf16.mxu0 %v17250_v33 }
 0x191   : > { %17249 = vmatpush3.bf16.xpose.msra.mxu1 %v17246_v56  ;;  %v16250_v7 = vpop.f32.mrb[38].mxu0  ;;  %16633 = vmatprep.mubr.f32.mxu1 %v383_v40  ;;  %v18912_v40 = vrot.slane %v12777_v15, %v18155_v43 }
 0x192   : > { %v12729_v17 = vcombine.low %v16236_v31, %v16250_v7  ;;  %v12730_v23 = vcombine.high %v16236_v31, %v16250_v7  ;;  %v16257_v13 = vpop.f32.mrb[38].mxu1  ;;  %v3369_v56 = vpop.f32.mrb[39].mxu0  ;;  %17255 = vmatprep.subr.bf16.mxu1 %v17254_v59  ;;  %v18917_v7 = vrot.slane %v10661_v55, %v18155_v43 }
 0x193   : > { %v12745_v8 = vcombine.low %v16243_v21, %v16257_v13  ;;  %v12746_v44 = vcombine.high %v16243_v21, %v16257_v13  ;;  %v3444_v53 = vpop.f32.mrb[39].mxu1  ;;  %v10629_v49 = vcombine.low %v3219_v36, %v3369_v56  ;;  %v10630_v6 = vcombine.high %v3219_v36, %v3369_v56 }
 0x194   : > { %v12737_v45 = vrot.slane %v12729_v17, %v18111_v61  ;;  %v12744_v11 = vrot.slane %v12730_v23, %v18111_v61  ;;  %v10645_v4 = vcombine.low %v3294_v63, %v3444_v53  ;;  %v10646_v31 = vcombine.high %v3294_v63, %v3444_v53 }
 0x195   : > { %v12753_v58 = vrot.slane %v12745_v8, %v18111_v61  ;;  %v12760_v57 = vrot.slane %v12746_v44, %v18111_v61  ;;  %v10637_v15 = vrot.slane %v10629_v49, %v18111_v61  ;;  %v18923_v21 = vrot.slane %v10662_v22, %v18155_v43 }
 0x196   : > { %v10653_v36 = vrot.slane %v10645_v4, %v18111_v61  ;;  %v10660_v17 = vrot.slane %v10646_v31, %v18111_v61  ;;  %v10644_v23 = vrot.slane %v10630_v6, %v18111_v61  ;;  %16627 = vmatmul.mubr.f32.vlgmr.msra.gmra.mrb[92].mxu0 %v18817_v0  ;;  %v21721_v4 = vcombine.low %v18847_v30, %v18854_v24  ;;  %v18962_v31 = vld [vmem:[%s17974_s28 + $0x630] sm:$0xff] }
 0x197   : > { %v12785_v53 = vcombine.low %v12737_v45, %v12753_v58  ;;  %v12786_v55 = vcombine.high %v12737_v45, %v12753_v58  ;;  %v12801_v63 = vcombine.low %v12744_v11, %v12760_v57  ;;  %17253 = vmatpush3.bf16.xpose.msra.mxu0 %v17250_v33  ;;  %16640 = vmatprep.mubr.f32.mxu0 %v385_v27  ;;  %v18965_v58 = vld [vmem:[%s17974_s28 + $0x638] sm:$0x1f] }
 0x198   : > { %16634 = vmatmul.mubr.f32.vlgmr.msra.gmra.mrb[92].mxu1 %v18837_v39  ;;  %v10693_v44 = vcombine.low %v10637_v15, %v10653_v36  ;;  %v10694_v49 = vcombine.high %v10637_v15, %v10653_v36  ;;  %v10709_v13 = vcombine.low %v10644_v23, %v10660_v17  ;;  %v10710_v22 = vcombine.high %v10644_v23, %v10660_v17  ;;  %v18943_v39 = vld [vmem:[%s17974_s28 + $0x628] sm:$0x1f] }
 0x199   : > { %17257 = vmatpush3.bf16.xpose.msra.mxu1 %v17254_v59  ;;  %v18934_v6 = vrot.slane %v21721_v4, %v18155_v43  ;;  %v16264_v0 = vpop.f32.mrb[40].mxu0  ;;  %v18937_v57 = vrot.slane %v12785_v53, %v18155_v43  ;;  %16647 = vmatprep.mubr.f32.mxu1 %v387_v2  ;;  %v18940_v45 = vrot.slane %v12786_v55, %v18155_v43  ;;  %v18959_v2 = vld [vmem:[%s17974_s28 + $0x620] sm:$0xff] }
 0x19a   : > { %v18946_v11 = vrot.slane %v10693_v44, %v18155_v43  ;;  %v18949_v33 = vrot.slane %v10694_v49, %v18155_v43  ;;  %v18952_v59 = vrot.slane %v10709_v13, %v18155_v43  ;;  %v18955_v56 = vrot.slane %v10710_v22, %v18155_v43  ;;  %v16271_v8 = vpop.f32.mrb[40].mxu1  ;;  %v3519_v27 = vpop.f32.mrb[41].mxu0  ;;  %17259 = vmatprep.subr.bf16.mxu0 %v18902_v60  ;;  %v19014_v49 = vld [vmem:[%s17974_s28 + $0x648] sm:$0x1f] }
 0x19b   : > { %21722 = vst [vmem:[#allocation32_spill] sm:$0xff] %v18934_v6  ;;  %21723 = vst [vmem:[#allocation33_spill] sm:$0xff] %v18937_v57  ;;  %v3594_v15 = vpop.f32.mrb[41].mxu1  ;;  %v12810_v36 = vcombine.high %v18898_v26, %v18937_v57  ;;  %17263 = vmatprep.subr.bf16.mxu1 %v18906_v47  ;;  %v12811_v17 = vcombine.low %v18909_v10, %v18940_v45  ;;  %v12812_v23 = vcombine.high %v18909_v10, %v18940_v45 }
 0x19c   : > { %21724 = vst [vmem:[#allocation34_spill] sm:$0xff] %v18952_v59  ;;  %21725 = vst [vmem:[#allocation35_spill] sm:$0xff] %v18955_v56  ;;  %v12808_v53 = vrot.slane %v12801_v63, %v18155_v43  ;;  %v21726_v55 = vcombine.high %v18847_v30, %v18854_v24  ;;  %v17266_v10 = vpack.c.bf16 %v18943_v39, %v18959_v2  ;;  %v19018_v24 = vld [vmem:[%s17974_s28 + $0x658] sm:$0x1f] }
 0x19d   : > { %14637 = vrot.lane.b32.xlu1 %v12810_v36, %s17885_s29  ;;  %v17270_v63 = vpack.c.bf16 %v18965_v58, %v18962_v31 }
 0x19e   : > { %v18979_v44 = vrot.slane %v21726_v55, %v18155_v43  ;;  %v12813_v30 = vcombine.low %v18912_v40, %v12808_v53  ;;  %16641 = vmatmul.mubr.f32.vlgmr.msra.gmra.mrb[94].mxu0 %v18874_v48 }
 0x19f   : > { %17261 = vmatpush3.bf16.xpose.msra.mxu0 %v18902_v60  ;;  %16654 = vmatprep.mubr.f32.mxu0 %v18882_v20  ;;  %v397_v60 = vld [vmem:[%s17974_s28 + $0x640] sm:$0xff] }
 0x1a0   : > { %21727 = vst [vmem:[#allocation36_spill] sm:$0xff] %v18979_v44  ;;  %16648 = vmatmul.mubr.f32.vlgmr.msra.gmra.mrb[94].mxu1 %v18878_v50  ;;  %17267 = vmatprep.subr.bf16.mxu0 %v17266_v10 }
 0x1a1   : > { %17265 = vmatpush3.bf16.xpose.msra.mxu1 %v18906_v47  ;;  %14701 = vrot.lane.b32.xlu1 %v12811_v17, %s17886_s30  ;;  %v16278_v40 = vpop.f32.mrb[42].mxu0  ;;  %v399_v17 = vld [vmem:[%s17974_s28 + $0x650] sm:$0xff] }
 0x1a2   : > { %16661 = vmatprep.mubr.f32.mxu1 %v18890_v3  ;;  %v12814_v53 = vcombine.low %v16264_v0, %v16278_v40  ;;  %v12815_v55 = vcombine.high %v16264_v0, %v16278_v40  ;;  %v16285_v50 = vpop.f32.mrb[42].mxu1  ;;  %v3669_v45 = vpop.f32.mrb[43].mxu0  ;;  %17271 = vmatprep.subr.bf16.mxu1 %v17270_v63 }
 0x1a3   : > { %v12830_v48 = vcombine.low %v16271_v8, %v16285_v50  ;;  %v12831_v4 = vcombine.high %v16271_v8, %v16285_v50  ;;  %v10733_v47 = vcombine.low %v3519_v27, %v3669_v45  ;;  %v10734_v36 = vcombine.high %v3519_v27, %v3669_v45  ;;  %v3744_v20 = vpop.f32.mrb[43].mxu1 }
 0x1a4   : > { %v19021_v22 = vrot.slane %v12814_v53, %v18111_v61  ;;  %v19024_v3 = vrot.slane %v12815_v55, %v18111_v61  ;;  %v10749_v0 = vcombine.low %v3594_v15, %v3744_v20  ;;  %v10750_v40 = vcombine.high %v3594_v15, %v3744_v20  ;;  %v19072_v20 = vld [vmem:[%s17974_s28 + $0x678] sm:$0x1f] }
 0x1a5   : > { %v19027_v13 = vrot.slane %v12830_v48, %v18111_v61  ;;  %v19030_v8 = vrot.slane %v12831_v4, %v18111_v61  ;;  %v19033_v27 = vrot.slane %v10733_v47, %v18111_v61  ;;  %v19036_v45 = vrot.slane %v10734_v36, %v18111_v61  ;;  %14765 = vrot.lane.b32.xlu1 %v12812_v23, %s17887_s4  ;;  %v19068_v23 = vld [vmem:[%s17974_s28 + $0x668] sm:$0x1f]  ;;  %v403_v47 = vld [vmem:[%s17974_s28 + $0x670] sm:$0xff] }
 0x1a6   : > { %v19040_v53 = vrot.slane %v10749_v0, %v18111_v61  ;;  %v19043_v55 = vrot.slane %v10750_v40, %v18111_v61  ;;  %16655 = vmatmul.mubr.f32.vlgmr.msra.gmra.mrb[96].mxu0 %v18887_v54  ;;  %v17274_v15 = vpack.c.bf16 %v19014_v49, %v397_v60  ;;  %v17278_v4 = vpack.c.bf16 %v19018_v24, %v399_v17  ;;  %v401_v40 = vld [vmem:[%s17974_s28 + $0x660] sm:$0xff] }
 0x1a7   : > { %v12879_v36 = vcombine.high %v19021_v22, %v19027_v13  ;;  %17269 = vmatpush3.bf16.xpose.msra.mxu0 %v17266_v10  ;;  %16668 = vmatprep.mubr.f32.mxu0 %v18959_v2  ;;  %v17286_v2 = vpack.c.bf16 %v19072_v20, %v403_v47 }
 0x1a8   : > { %16662 = vmatmul.mubr.f32.vlgmr.msra.gmra.mrb[96].mxu1 %v18893_v35  ;;  %17275 = vmatprep.subr.bf16.mxu0 %v17274_v15 }
 0x1a9   : > { %17273 = vmatpush3.bf16.xpose.msra.mxu1 %v17270_v63  ;;  %14829 = vrot.lane.b32.xlu1 %v12813_v30, %s17888_s5  ;;  %v16292_v0 = vpop.f32.mrb[44].mxu0  ;;  %v17282_v63 = vpack.c.bf16 %v19068_v23, %v401_v40  ;;  %v19082_v30 = vld [vmem:[%s17974_s28 + $0x688] sm:$0x1f] }
 0x1aa   : > { %v16299_v35 = vpop.f32.mrb[44].mxu1  ;;  %v3819_v10 = vpop.f32.mrb[45].mxu0  ;;  %16675 = vmatprep.mubr.f32.mxu1 %v18962_v31  ;;  %17279 = vmatprep.subr.bf16.mxu1 %v17278_v4  ;;  %v19079_v31 = vld [vmem:[%s17974_s28 + $0x680] sm:$0xff] }
 0x1ab   : > { %v3894_v50 = vpop.f32.mrb[45].mxu1  ;;  %v19086_v42 = vpack.c.bf16 %v19082_v30, %v19079_v31 }
 0x1ae   : > { %16669 = vmatmul.mubr.f32.vlgmr.msra.gmra.mrb[98].mxu0 %v18943_v39 }
 0x1af   : > { %17277 = vmatpush3.bf16.xpose.msra.mxu0 %v17274_v15  ;;  %16682 = vmatprep.mubr.f32.mxu0 %v397_v60  ;;  %v19092_v15 = vld [vmem:[%s17974_s28 + $0x698] sm:$0x1f] }
 0x1b0   : > { %16676 = vmatmul.mubr.f32.vlgmr.msra.gmra.mrb[98].mxu1 %v18965_v58  ;;  %17283 = vmatprep.subr.bf16.mxu0 %v17282_v63  ;;  %v19089_v58 = vld [vmem:[%s17974_s28 + $0x690] sm:$0xff] }
 0x1b1   : > { %17281 = vmatpush3.bf16.xpose.msra.mxu1 %v17278_v4  ;;  %v16306_v54 = vpop.f32.mrb[46].mxu0  ;;  %16689 = vmatprep.mubr.f32.mxu1 %v399_v17  ;;  %v17294_v37 = vpack.c.bf16 %v19092_v15, %v19089_v58 }
 0x1b2   : > { %v12846_v48 = vcombine.low %v16292_v0, %v16306_v54  ;;  %v12847_v34 = vcombine.high %v16292_v0, %v16306_v54  ;;  %v16313_v51 = vpop.f32.mrb[46].mxu1  ;;  %v3969_v39 = vpop.f32.mrb[47].mxu0  ;;  %17287 = vmatprep.subr.bf16.mxu1 %v17286_v2 }
 0x1b3   : > { %v12862_v56 = vcombine.low %v16299_v35, %v16313_v51  ;;  %v12863_v44 = vcombine.high %v16299_v35, %v16313_v51  ;;  %v4044_v4 = vpop.f32.mrb[47].mxu1  ;;  %v10765_v60 = vcombine.low %v3819_v10, %v3969_v39  ;;  %v10766_v59 = vcombine.high %v3819_v10, %v3969_v39 }
 0x1b4   : > { %v12854_v17 = vrot.slane %v12846_v48, %v18111_v61  ;;  %v12861_v54 = vrot.slane %v12847_v34, %v18111_v61  ;;  %v10781_v0 = vcombine.low %v3894_v50, %v4044_v4  ;;  %v10782_v6 = vcombine.high %v3894_v50, %v4044_v4 }
 0x1b5   : > { %v12870_v57 = vrot.slane %v12862_v56, %v18111_v61  ;;  %v12877_v26 = vrot.slane %v12863_v44, %v18111_v61  ;;  %v10773_v38 = vrot.slane %v10765_v60, %v18111_v61  ;;  %v10780_v10 = vrot.slane %v10766_v59, %v18111_v61 }
 0x1b6   : > { %v10789_v51 = vrot.slane %v10781_v0, %v18111_v61  ;;  %v10796_v35 = vrot.slane %v10782_v6, %v18111_v61  ;;  %16683 = vmatmul.mubr.f32.vlgmr.msra.gmra.mrb[100].mxu0 %v19014_v49  ;;  %v12893_v34 = vrot.slane %v12879_v36, %v18155_v43  ;;  %v21728_v59 = vcombine.low %v19021_v22, %v19027_v13 }
 0x1b7   : > { %v12902_v48 = vcombine.low %v12854_v17, %v12870_v57  ;;  %v12903_v50 = vcombine.high %v12854_v17, %v12870_v57  ;;  %v12918_v56 = vcombine.low %v12861_v54, %v12877_v26  ;;  %17285 = vmatpush3.bf16.xpose.msra.mxu0 %v17282_v63  ;;  %16696 = vmatprep.mubr.f32.mxu0 %v401_v40 }
 0x1b8   : > { %16690 = vmatmul.mubr.f32.vlgmr.msra.gmra.mrb[100].mxu1 %v19018_v24  ;;  %v10829_v44 = vcombine.low %v10773_v38, %v10789_v51  ;;  %v10830_v39 = vcombine.high %v10773_v38, %v10789_v51  ;;  %v10845_v4 = vcombine.low %v10780_v10, %v10796_v35  ;;  %v10846_v60 = vcombine.high %v10780_v10, %v10796_v35  ;;  %v19147_v35 = vld [vmem:[%s17974_s28 + $0x6a0] sm:$0xff]  ;;  %v19150_v10 = vld [vmem:[%s17974_s28 + $0x6a8] sm:$0x1f] }
 0x1b9   : > { %17289 = vmatpush3.bf16.xpose.msra.mxu1 %v17286_v2  ;;  %v19107_v0 = vpop.f32.mrb[48].mxu0  ;;  %v12917_v6 = vrot.slane %v12903_v50, %v18155_v43  ;;  %v19114_v49 = vrot.slane %v21728_v59, %v18155_v43  ;;  %v19117_v26 = vrot.slane %v12902_v48, %v18155_v43  ;;  %16703 = vmatprep.mubr.f32.mxu1 %v403_v47 }
 0x1ba   : > { %v21731_v38 = vcombine.low %v19033_v27, %v19040_v53  ;;  %v19126_v24 = vrot.slane %v10829_v44, %v18155_v43  ;;  %v10844_v13 = vrot.slane %v10830_v39, %v18155_v43  ;;  %v19129_v22 = vpop.f32.mrb[48].mxu1  ;;  %v19131_v36 = vpop.f32.mrb[49].mxu0  ;;  %17291 = vmatprep.subr.bf16.mxu0 %v19086_v42  ;;  %v21733_v47 = vcombine.high %v19033_v27, %v19040_v53  ;;  %v19166_v39 = vld [vmem:[%s17974_s28 + $0x6b0] sm:$0xff] }
 0x1bb   : > { %21729 = vst [vmem:[#allocation37_spill] sm:$0xff] %v19114_v49  ;;  %21730 = vst [vmem:[#allocation38_spill] sm:$0xff] %v19117_v26  ;;  %v19138_v63 = vpop.f32.mrb[49].mxu1  ;;  %v12929_v2 = vcombine.high %v12893_v34, %v12917_v6  ;;  %v12927_v17 = vcombine.high %v19114_v49, %v19117_v26  ;;  %17295 = vmatprep.subr.bf16.mxu1 %v17294_v37  ;;  %v21734_v54 = vcombine.low %v19024_v3, %v19030_v8 }
 0x1bc   : > { %v19123_v57 = vrot.slane %v21731_v38, %v18155_v43  ;;  %21732 = vst [vmem:[#allocation39_spill] sm:$0xff] %v19126_v24  ;;  %v10812_v40 = vrot.slane %v21733_v47, %v18155_v43  ;;  %v19153_v27 = vrot.slane %v10845_v4, %v18155_v43  ;;  %v19156_v53 = vrot.slane %v10846_v60, %v18155_v43  ;;  %v19169_v4 = vld [vmem:[%s17974_s28 + $0x6b8] sm:$0x1f]  ;;  %v19181_v38 = vld [vmem:[%s17974_s28 + $0x6c0] sm:$0xff] }
 0x1bd   : > { %v12901_v51 = vrot.slane %v21734_v54, %v18155_v43  ;;  %v12925_v50 = vrot.slane %v12918_v56, %v18155_v43  ;;  %14767 = vrot.lane.b32.xlu0 %v12929_v2, %s17887_s4  ;;  %14639 = vrot.lane.b32.xlu1 %v12927_v17, %s17885_s29  ;;  %v12928_v3 = vcombine.low %v12893_v34, %v12917_v6 }
 0x1be   : > { %21735 = vst [vmem:[#allocation40_spill] sm:$0xff] %v19153_v27  ;;  %21736 = vst [vmem:[#allocation41_spill] sm:$0xff] %v19156_v53  ;;  %v10863_v8 = vcombine.low %v10812_v40, %v10844_v13  ;;  %v10862_v44 = vcombine.high %v19123_v57, %v19126_v24  ;;  %v21737_v56 = vcombine.low %v19036_v45, %v19043_v55  ;;  %16697 = vmatmul.mubr.f32.vlgmr.msra.gmra.mrb[102].mxu0 %v19068_v23 }
 0x1bf   : > { %v12930_v34 = vcombine.low %v12901_v51, %v12925_v50  ;;  %v17298_v6 = vpack.c.bf16 %v19150_v10, %v19147_v35  ;;  %v10864_v59 = vcombine.high %v10812_v40, %v10844_v13  ;;  %v21739_v47 = vcombine.high %v19036_v45, %v19043_v55  ;;  %17293 = vmatpush3.bf16.xpose.msra.mxu0 %v19086_v42  ;;  %v19198_v40 = vld [vmem:[%s17974_s28 + $0x6c8] sm:$0x1f]  ;;  %v19201_v51 = vld [vmem:[%s17974_s28 + $0x6d0] sm:$0xff]  ;;  %v19204_v50 = vld [vmem:[%s17974_s28 + $0x6d8] sm:$0x1f] }
 0x1c0   : > { %v19175_v60 = vrot.slane %v21737_v56, %v18155_v43  ;;  %16704 = vmatmul.mubr.f32.vlgmr.msra.gmra.mrb[102].mxu1 %v19072_v20  ;;  %v21741_v23 = vcombine.low %v18923_v21, %v18949_v33  ;;  %v21742_v54 = vcombine.high %v18917_v7, %v18946_v11  ;;  %16710 = vmatprep.mubr.f32.mxu0 %v19079_v31 }
 0x1c1   : > { %v19187_v2 = vrot.slane %v21739_v47, %v18155_v43  ;;  %17297 = vmatpush3.bf16.xpose.msra.mxu1 %v17294_v37  ;;  %v17302_v42 = vpack.c.bf16 %v19169_v4, %v19166_v39  ;;  %v21743_v45 = vcombine.high %v18923_v21, %v18949_v33  ;;  %14831 = vrot.lane.b32.xlu0 %v12930_v34, %s17888_s5 }
 0x1c2   : > { %21738 = vst [vmem:[#allocation42_spill] sm:$0xff] %v19175_v60  ;;  %v17534_v17 = vpack.i.bf16 %v10863_v8, %v21741_v23  ;;  %v17529_v13 = vpack.i.bf16 %v10862_v44, %v21742_v54  ;;  %14703 = vrot.lane.b32.xlu1 %v12928_v3, %s17886_s30  ;;  %v16334_v8 = vpop.f32.mrb[50].mxu0  ;;  %v16341_v56 = vpop.f32.mrb[50].mxu1  ;;  %16717 = vmatprep.mubr.f32.mxu1 %v19089_v58 }
 0x1c3   : > { %21740 = vst [vmem:[#allocation43_spill] sm:$0xff] %v19187_v2  ;;  %v17539_v55 = vpack.i.bf16 %v10864_v59, %v21743_v45  ;;  %v12931_v21 = vcombine.low %v19107_v0, %v16334_v8  ;;  %v12932_v33 = vcombine.high %v19107_v0, %v16334_v8  ;;  %v4269_v59 = vpop.f32.mrb[51].mxu0  ;;  %v17306_v3 = vpack.c.bf16 %v19198_v40, %v19181_v38  ;;  %v4344_v44 = vpop.f32.mrb[51].mxu1 }
 0x1c4   : > { %v17310_v34 = vpack.c.bf16 %v19204_v50, %v19201_v51  ;;  %v12947_v47 = vcombine.low %v19129_v22, %v16341_v56  ;;  %v12948_v23 = vcombine.high %v19129_v22, %v16341_v56  ;;  %v10869_v54 = vcombine.low %v19131_v36, %v4269_v59  ;;  %17299 = vmatprep.subr.bf16.mxu0 %v17298_v6 }
 0x1c5   : > { %v10870_v45 = vcombine.high %v19131_v36, %v4269_v59  ;;  %v19234_v0 = vrot.slane %v12931_v21, %v18111_v61  ;;  %v19237_v58 = vrot.slane %v12932_v33, %v18111_v61  ;;  %v10885_v8 = vcombine.low %v19138_v63, %v4344_v44  ;;  %17303 = vmatprep.subr.bf16.mxu1 %v17302_v42 }
 0x1c6   : > { %v10886_v31 = vcombine.high %v19138_v63, %v4344_v44  ;;  %v12955_v37 = vrot.slane %v12947_v47, %v18111_v61  ;;  %v12962_v22 = vrot.slane %v12948_v23, %v18111_v61  ;;  %v19244_v56 = vrot.slane %v10869_v54, %v18111_v61  ;;  %17535 = vrot.lane.b32.xlu0 %v17534_v17, %s17890_s7  ;;  %v19276_v23 = vld [vmem:[%s17974_s28 + $0x6e0] sm:$0xff]  ;;  %v19279_v54 = vld [vmem:[%s17974_s28 + $0x6e8] sm:$0x1f] }
 0x1c7   : > { %v19247_v36 = vrot.slane %v10870_v45, %v18111_v61  ;;  %v19251_v21 = vrot.slane %v10885_v8, %v18111_v61  ;;  %17530 = vrot.lane.b32.xlu1 %v17529_v13, %s17889_s6  ;;  %16711 = vmatmul.mubr.f32.vlgmr.msra.gmra.mrb[104].mxu0 %v19082_v30  ;;  %v19294_v8 = vld [vmem:[%s17974_s28 + $0x710] sm:$0xff] }
 0x1c8   : > { %v19254_v33 = vrot.slane %v10886_v31, %v18111_v61  ;;  %v12995_v44 = vcombine.low %v19234_v0, %v12955_v37  ;;  %v12996_v59 = vcombine.high %v19234_v0, %v12955_v37  ;;  %v13011_v17 = vcombine.low %v19237_v58, %v12962_v22  ;;  %16718 = vmatmul.mubr.f32.vlgmr.msra.gmra.mrb[104].mxu1 %v19092_v15  ;;  %v19288_v0 = vld [vmem:[%s17974_s28 + $0x700] sm:$0xff]  ;;  %v19291_v58 = vld [vmem:[%s17974_s28 + $0x708] sm:$0x1f]  ;;  %v19299_v22 = vld [vmem:[%s17974_s28 + $0x718] sm:$0x1f] }
 0x1c9   : > { %17301 = vmatpush3.bf16.xpose.msra.mxu0 %v17298_v6  ;;  %v10933_v31 = vcombine.low %v19244_v56, %v19251_v21  ;;  %v10934_v30 = vcombine.high %v19244_v56, %v19251_v21  ;;  %17305 = vmatpush3.bf16.xpose.msra.mxu1 %v17302_v42  ;;  %v16348_v15 = vpop.f32.mrb[52].mxu0  ;;  %v419_v42 = vld [vmem:[%s17974_s28 + $0x6f0] sm:$0xff]  ;;  %v19302_v56 = vld [vmem:[%s17974_s28 + $0x720] sm:$0xff]  ;;  %v19305_v21 = vld [vmem:[%s17974_s28 + $0x728] sm:$0x1f]  ;;  %v19311_v63 = vpack.c.bf16 %v19291_v58, %v19288_v0 }
 0x1ca   : > { %17540 = vrot.lane.b32.xlu0 %v17539_v55, %s21675_s8  ;;  %16724 = vmatprep.mubr.f32.mxu0 %v19147_v35  ;;  %v16355_v6 = vpop.f32.mrb[52].mxu1  ;;  %v4419_v47 = vpop.f32.mrb[53].mxu0  ;;  %v19283_v55 = vld [vmem:[%s17974_s28 + $0x6f8] sm:$0x1f]  ;;  %v17314_v35 = vpack.c.bf16 %v19279_v54, %v19276_v23  ;;  %v19319_v48 = vpack.c.bf16 %v19299_v22, %v19294_v8  ;;  %v19326_v13 = vrot.slane %v12996_v59, %v18155_v43 }
 0x1cb   : > { %16731 = vmatprep.mubr.f32.mxu1 %v19166_v39  ;;  %v4494_v45 = vpop.f32.mrb[53].mxu1  ;;  %17307 = vmatprep.subr.bf16.mxu0 %v17306_v3  ;;  %v17318_v39 = vpack.c.bf16 %v19283_v55, %v419_v42 }
 0x1cc   : > { %17311 = vmatprep.subr.bf16.mxu1 %v17310_v34 }
 0x1d0   : > { %16725 = vmatmul.mubr.f32.vlgmr.msra.gmra.mrb[106].mxu0 %v19150_v10  ;;  %16732 = vmatmul.mubr.f32.vlgmr.msra.gmra.mrb[106].mxu1 %v19169_v4  ;;  %v19315_v10 = vrot.slane %v12995_v44, %v18155_v43  ;;  %v19323_v4 = vpack.c.bf16 %v19305_v21, %v19302_v56 }
 0x1d1   : > { %17309 = vmatpush3.bf16.xpose.msra.mxu0 %v17306_v3  ;;  %17313 = vmatpush3.bf16.xpose.msra.mxu1 %v17310_v34  ;;  %v16362_v20 = vpop.f32.mrb[54].mxu0 }
 0x1d2   : > { %16738 = vmatprep.mubr.f32.mxu0 %v19181_v38  ;;  %16745 = vmatprep.mubr.f32.mxu1 %v19201_v51  ;;  %21744 = vst [vmem:[#allocation44_spill] sm:$0xff] %v19315_v10  ;;  %v12963_v38 = vcombine.low %v16348_v15, %v16362_v20  ;;  %v12964_v3 = vcombine.high %v16348_v15, %v16362_v20  ;;  %v16369_v34 = vpop.f32.mrb[54].mxu1  ;;  %v4569_v37 = vpop.f32.mrb[55].mxu0 }
 0x1d3   : > { %17315 = vmatprep.subr.bf16.mxu0 %v17314_v35  ;;  %17319 = vmatprep.subr.bf16.mxu1 %v17318_v39  ;;  %v19329_v51 = vrot.slane %v13011_v17, %v18155_v43  ;;  %v12979_v44 = vcombine.low %v16355_v6, %v16369_v34  ;;  %v12980_v53 = vcombine.high %v16355_v6, %v16369_v34  ;;  %v4644_v2 = vpop.f32.mrb[55].mxu1 }
 0x1d4   : > { %v10901_v27 = vcombine.low %v4419_v47, %v4569_v37  ;;  %v10902_v60 = vcombine.high %v4419_v47, %v4569_v37  ;;  %v12971_v26 = vrot.slane %v12963_v38, %v18111_v61  ;;  %v12978_v49 = vrot.slane %v12964_v3, %v18111_v61 }
 0x1d5   : > { %v10917_v1 = vcombine.low %v4494_v45, %v4644_v2  ;;  %v10918_v20 = vcombine.high %v4494_v45, %v4644_v2  ;;  %v19334_v15 = vrot.slane %v10933_v31, %v18155_v43  ;;  %v12987_v59 = vrot.slane %v12979_v44, %v18111_v61 }
 0x1d6   : > { %v12994_v9 = vrot.slane %v12980_v53, %v18111_v61  ;;  %v10909_v17 = vrot.slane %v10901_v27, %v18111_v61  ;;  %v19340_v6 = vrot.slane %v10934_v30, %v18155_v43  ;;  %v10916_v38 = vrot.slane %v10902_v60, %v18111_v61 }
 0x1d7   : > { %v10925_v37 = vrot.slane %v10917_v1, %v18111_v61  ;;  %v10932_v47 = vrot.slane %v10918_v20, %v18111_v61  ;;  %v13019_v2 = vcombine.low %v12971_v26, %v12987_v59  ;;  %v13020_v31 = vcombine.high %v12971_v26, %v12987_v59  ;;  %v19427_v20 = vld [vmem:[%s17974_s28 + $0x758] sm:$0x1f] }
 0x1d8   : > { %16739 = vmatmul.mubr.f32.vlgmr.msra.gmra.mrb[108].mxu0 %v19198_v40  ;;  %v13035_v45 = vcombine.low %v12978_v49, %v12994_v9  ;;  %16746 = vmatmul.mubr.f32.vlgmr.msra.gmra.mrb[108].mxu1 %v19204_v50  ;;  %v21745_v1 = vcombine.low %v19247_v36, %v19254_v33 }
 0x1d9   : > { %17317 = vmatpush3.bf16.xpose.msra.mxu0 %v17314_v35  ;;  %v10965_v53 = vcombine.low %v10909_v17, %v10925_v37  ;;  %v10966_v3 = vcombine.high %v10909_v17, %v10925_v37  ;;  %v10981_v27 = vcombine.low %v10916_v38, %v10932_v47  ;;  %v10982_v34 = vcombine.high %v10916_v38, %v10932_v47  ;;  %v16376_v60 = vpop.f32.mrb[56].mxu0  ;;  %v19379_v37 = vld [vmem:[%s17974_s28 + $0x730] sm:$0xff]  ;;  %v19382_v47 = vld [vmem:[%s17974_s28 + $0x738] sm:$0x1f] }
 0x1da   : > { %17321 = vmatpush3.bf16.xpose.msra.mxu1 %v17318_v39  ;;  %v19351_v30 = vrot.slane %v21745_v1, %v18155_v43  ;;  %v19354_v40 = vrot.slane %v13019_v2, %v18155_v43  ;;  %16752 = vmatprep.mubr.f32.mxu0 %v19276_v23  ;;  %v13034_v9 = vrot.slane %v13020_v31, %v18155_v43  ;;  %v16383_v39 = vpop.f32.mrb[56].mxu1  ;;  %v4719_v44 = vpop.f32.mrb[57].mxu0 }
 0x1db   : > { %16759 = vmatprep.mubr.f32.mxu1 %v419_v42  ;;  %v19359_v49 = vrot.slane %v10965_v53, %v18155_v43  ;;  %v19362_v26 = vrot.slane %v10966_v3, %v18155_v43  ;;  %v19365_v50 = vrot.slane %v10981_v27, %v18155_v43  ;;  %v19368_v35 = vrot.slane %v10982_v34, %v18155_v43  ;;  %v4794_v23 = vpop.f32.mrb[57].mxu1  ;;  %v19481_v3 = vld [vmem:[%s17974_s28 + $0x760] sm:$0xff] }
 0x1dc   : > { %21746 = vst [vmem:[#allocation45_spill] sm:$0xff] %v19351_v30  ;;  %21747 = vst [vmem:[#allocation46_spill] sm:$0xff] %v19354_v40  ;;  %17323 = vmatprep.subr.bf16.mxu0 %v19311_v63  ;;  %v13044_v42 = vcombine.high %v19315_v10, %v19354_v40  ;;  %17327 = vmatprep.subr.bf16.mxu1 %v19319_v48  ;;  %v13045_v59 = vcombine.low %v19326_v13, %v13034_v9  ;;  %v19509_v10 = vld [vmem:[%s17974_s28 + $0x798] sm:$0x1f] }
 0x1dd   : > { %21748 = vst [vmem:[#allocation47_spill] sm:$0xff] %v19365_v50  ;;  %21749 = vst [vmem:[#allocation48_spill] sm:$0xff] %v19368_v35  ;;  %v13046_v17 = vcombine.high %v19326_v13, %v13034_v9  ;;  %v21750_v38 = vcombine.high %v19247_v36, %v19254_v33  ;;  %v13042_v53 = vrot.slane %v13035_v45, %v18155_v43  ;;  %v19423_v36 = vld [vmem:[%s17974_s28 + $0x748] sm:$0x1f] }
 0x1de   : > { %14641 = vrot.lane.b32.xlu0 %v13044_v42, %s17885_s29  ;;  %v17334_v45 = vpack.c.bf16 %v19382_v47, %v19379_v37  ;;  %v19503_v50 = vld [vmem:[%s17974_s28 + $0x788] sm:$0x1f] }
 0x1df   : > { %v19388_v2 = vrot.slane %v21750_v38, %v18155_v43  ;;  %v13047_v34 = vcombine.low %v19329_v51, %v13042_v53 }
 0x1e0   : > { %16753 = vmatmul.mubr.f32.vlgmr.msra.gmra.mrb[110].mxu0 %v19279_v54  ;;  %v19416_v54 = vpop.permute.xlu1 %14629 }
 0x1e1   : > { %21751 = vst [vmem:[#allocation49_spill] sm:$0xff] %v19388_v2  ;;  %16760 = vmatmul.mubr.f32.vlgmr.msra.gmra.mrb[110].mxu1 %v19283_v55  ;;  %17325 = vmatpush3.bf16.xpose.msra.mxu0 %v19311_v63  ;;  %v16390_v51 = vpop.f32.mrb[58].mxu0  ;;  %v19500_v2 = vld [vmem:[%s17974_s28 + $0x780] sm:$0xff] }
 0x1e2   : > { %17329 = vmatpush3.bf16.xpose.msra.mxu1 %v19319_v48  ;;  %16766 = vmatprep.mubr.f32.mxu0 %v19288_v0  ;;  %v13048_v42 = vcombine.low %v16376_v60, %v16390_v51  ;;  %v13049_v38 = vcombine.high %v16376_v60, %v16390_v51  ;;  %v16397_v53 = vpop.f32.mrb[58].mxu1  ;;  %v4869_v55 = vpop.f32.mrb[59].mxu0  ;;  %v429_v48 = vld [vmem:[%s17974_s28 + $0x740] sm:$0xff] }
 0x1e3   : > { %14705 = vrot.lane.b32.xlu0 %v13045_v59, %s17886_s30  ;;  %16773 = vmatprep.mubr.f32.mxu1 %v19294_v8  ;;  %v13064_v63 = vcombine.low %v16383_v39, %v16397_v53  ;;  %v13065_v0 = vcombine.high %v16383_v39, %v16397_v53  ;;  %v11005_v9 = vcombine.low %v4719_v44, %v4869_v55  ;;  %v4944_v33 = vpop.f32.mrb[59].mxu1  ;;  %v431_v59 = vld [vmem:[%s17974_s28 + $0x750] sm:$0xff] }
 0x1e4   : > { %17331 = vmatprep.subr.bf16.mxu0 %v19323_v4  ;;  %17335 = vmatprep.subr.bf16.mxu1 %v17334_v45  ;;  %v11006_v1 = vcombine.high %v4719_v44, %v4869_v55  ;;  %v19430_v8 = vrot.slane %v13048_v42, %v18111_v61  ;;  %v19433_v60 = vrot.slane %v13049_v38, %v18111_v61 }
 0x1e5   : > { %v11021_v51 = vcombine.low %v4794_v23, %v4944_v33  ;;  %v11022_v31 = vcombine.high %v4794_v23, %v4944_v33  ;;  %v19436_v27 = vrot.slane %v13064_v63, %v18111_v61  ;;  %v19439_v39 = vrot.slane %v13065_v0, %v18111_v61  ;;  %v435_v0 = vld [vmem:[%s17974_s28 + $0x770] sm:$0xff] }
 0x1e6   : > { %v19442_v44 = vrot.slane %v11005_v9, %v18111_v61  ;;  %v19445_v53 = vrot.slane %v11006_v1, %v18111_v61  ;;  %v17338_v23 = vpack.c.bf16 %v19423_v36, %v429_v48  ;;  %v17342_v33 = vpack.c.bf16 %v19427_v20, %v431_v59 }
 0x1e7   : > { %14769 = vrot.lane.b32.xlu0 %v13046_v17, %s17887_s4  ;;  %v19449_v42 = vrot.slane %v11021_v51, %v18111_v61  ;;  %v19452_v38 = vrot.slane %v11022_v31, %v18111_v61  ;;  %v19484_v17 = vld [vmem:[%s17974_s28 + $0x768] sm:$0x1f] }
 0x1e8   : > { %16767 = vmatmul.mubr.f32.vlgmr.msra.gmra.mrb[112].mxu0 %v19291_v58  ;;  %v19465_v58 = vpop.permute.xlu1 %14693 }
 0x1e9   : > { %16774 = vmatmul.mubr.f32.vlgmr.msra.gmra.mrb[112].mxu1 %v19299_v22  ;;  %17333 = vmatpush3.bf16.xpose.msra.mxu0 %v19323_v4  ;;  %v19475_v22 = vpop.permute.xlu0 %14759  ;;  %v16404_v4 = vpop.f32.mrb[60].mxu0 }
 0x1ea   : > { %17337 = vmatpush3.bf16.xpose.msra.mxu1 %v17334_v45  ;;  %21752 = vst [vmem:[#allocation50_spill] sm:$0xff] %v19475_v22  ;;  %16780 = vmatprep.mubr.f32.mxu0 %v19302_v56  ;;  %v16411_v51 = vpop.f32.mrb[60].mxu1  ;;  %v5019_v13 = vpop.f32.mrb[61].mxu0  ;;  %v19488_v45 = vld [vmem:[%s17974_s28 + $0x778] sm:$0x1f] }
 0x1eb   : > { %14833 = vrot.lane.b32.xlu0 %v13047_v34, %s17888_s5  ;;  %16787 = vmatprep.mubr.f32.mxu1 %v19379_v37  ;;  %v5094_v63 = vpop.f32.mrb[61].mxu1  ;;  %v17346_v34 = vpack.c.bf16 %v19484_v17, %v19481_v3  ;;  %v17350_v56 = vpack.c.bf16 %v19488_v45, %v435_v0 }
 0x1ec   : > { %17339 = vmatprep.subr.bf16.mxu0 %v17338_v23  ;;  %17343 = vmatprep.subr.bf16.mxu1 %v17342_v33  ;;  %v19494_v37 = vpop.permute.xlu1 %14757 }
 0x1ed   : > { %v19496_v55 = vpop.permute.xlu0 %14823 }
 0x1ee   : > { %21753 = vst [vmem:[#allocation51_spill] sm:$0xff] %v19496_v55 }
 0x1f0   : > { %16781 = vmatmul.mubr.f32.vlgmr.msra.gmra.mrb[114].mxu0 %v19305_v21  ;;  %v19513_v22 = vpop.permute.xlu1 %14821 }
 0x1f1   : > { %16788 = vmatmul.mubr.f32.vlgmr.msra.gmra.mrb[114].mxu1 %v19382_v47  ;;  %17341 = vmatpush3.bf16.xpose.msra.mxu0 %v17338_v23  ;;  %v16418_v9 = vpop.f32.mrb[62].mxu0  ;;  %v19515_v16 = vpop.permute.xlu0 %17500 }
 0x1f2   : > { %17345 = vmatpush3.bf16.xpose.msra.mxu1 %v17342_v33  ;;  %16794 = vmatprep.mubr.f32.mxu0 %v429_v48  ;;  %v13080_v1 = vcombine.low %v16404_v4, %v16418_v9  ;;  %v13081_v21 = vcombine.high %v16404_v4, %v16418_v9  ;;  %v16425_v31 = vpop.f32.mrb[62].mxu1  ;;  %v5169_v35 = vpop.f32.mrb[63].mxu0  ;;  %v19506_v48 = vld [vmem:[%s17974_s28 + $0x790] sm:$0xff]  ;;  %21754 = vst [vmem:[#allocation52_spill] sm:$0xff] %v19515_v16 }
 0x1f3   : > { %16801 = vmatprep.mubr.f32.mxu1 %v431_v59  ;;  %17347 = vmatprep.subr.bf16.mxu0 %v17346_v34  ;;  %v13096_v30 = vcombine.low %v16411_v51, %v16425_v31  ;;  %v13097_v40 = vcombine.high %v16411_v51, %v16425_v31  ;;  %v5244_v47 = vpop.f32.mrb[63].mxu1  ;;  %v11037_v23 = vcombine.low %v5019_v13, %v5169_v35 }
 0x1f4   : > { %17351 = vmatprep.subr.bf16.mxu1 %v17350_v56  ;;  %v11038_v33 = vcombine.high %v5019_v13, %v5169_v35  ;;  %v13088_v59 = vrot.slane %v13080_v1, %v18111_v61  ;;  %v13095_v9 = vrot.slane %v13081_v21, %v18111_v61  ;;  %v11053_v4 = vcombine.low %v5094_v63, %v5244_v47  ;;  %v19541_v19 = vpop.permute.xlu1 %14631 }
 0x1f5   : > { %v11054_v55 = vcombine.high %v5094_v63, %v5244_v47  ;;  %v13104_v31 = vrot.slane %v13096_v30, %v18111_v61  ;;  %v13111_v35 = vrot.slane %v13097_v40, %v18111_v61  ;;  %v11045_v13 = vrot.slane %v11037_v23, %v18111_v61  ;;  %v19529_v47 = vld [vmem:[%s17974_s28 + $0x7a0] sm:$0xff]  ;;  %v19532_v40 = vld [vmem:[%s17974_s28 + $0x7a8] sm:$0x1f]  ;;  %21755 = vst [vmem:[#allocation53_spill] sm:$0xff] %v19541_v19 }
 0x1f6   : > { %v17354_v1 = vpack.c.bf16 %v19503_v50, %v19500_v2  ;;  %v11061_v51 = vrot.slane %v11053_v4, %v18111_v61  ;;  %v11052_v63 = vrot.slane %v11038_v33, %v18111_v61  ;;  %v17358_v30 = vpack.c.bf16 %v19509_v10, %v19506_v48  ;;  %v19539_v33 = vld [vmem:[%s17974_s28 + $0x7b8] sm:$0x1f] }
 0x1f7   : > { %v11068_v21 = vrot.slane %v11054_v55, %v18111_v61  ;;  %v13136_v16 = vcombine.low %v13088_v59, %v13104_v31  ;;  %v13137_v23 = vcombine.high %v13088_v59, %v13104_v31  ;;  %v13152_v62 = vcombine.low %v13095_v9, %v13111_v35  ;;  %v19536_v55 = vld [vmem:[%s17974_s28 + $0x7b0] sm:$0xff]  ;;  %v19554_v59 = vld [vmem:[%s17974_s28 + $0x7c8] sm:$0x1f] }
 0x1f8   : > { %16795 = vmatmul.mubr.f32.vlgmr.msra.gmra.mrb[116].mxu0 %v19423_v36  ;;  %v11101_v36 = vcombine.low %v11045_v13, %v11061_v51  ;;  %v11102_v4 = vcombine.high %v11045_v13, %v11061_v51  ;;  %v21756_v9 = vcombine.low %v19442_v44, %v19449_v42  ;;  %v19575_v51 = vpack.c.bf16 %v19539_v33, %v19536_v55  ;;  %v19628_v24 = vpop.permute.xlu1 %14695 }
 0x1f9   : > { %16802 = vmatmul.mubr.f32.vlgmr.msra.gmra.mrb[116].mxu1 %v19427_v20  ;;  %17349 = vmatpush3.bf16.xpose.msra.mxu0 %v17346_v34  ;;  %v11117_v32 = vcombine.low %v11052_v63, %v11068_v21  ;;  %v11118_v5 = vcombine.high %v11052_v63, %v11068_v21  ;;  %v19543_v46 = vpop.f32.mrb[64].mxu0  ;;  %v19548_v20 = vpack.c.bf16 %v19532_v40, %v19529_v47  ;;  %v19551_v34 = vld [vmem:[%s17974_s28 + $0x7c0] sm:$0xff]  ;;  %v19577_v21 = vpop.permute.xlu0 %17505 }
 0x1fa   : > { %17353 = vmatpush3.bf16.xpose.msra.mxu1 %v17350_v56  ;;  %16808 = vmatprep.mubr.f32.mxu0 %v19481_v3  ;;  %v19560_v56 = vrot.slane %v21756_v9, %v18155_v43  ;;  %v19563_v31 = vrot.slane %v11101_v36, %v18155_v43  ;;  %v19565_v35 = vpop.f32.mrb[64].mxu1  ;;  %v19567_v3 = vpop.f32.mrb[65].mxu0  ;;  %21758 = vst [vmem:[#allocation54_spill] sm:$0xff] %v19577_v21 }
 0x1fb   : > { %16815 = vmatprep.mubr.f32.mxu1 %v435_v0  ;;  %v21757_v0 = vcombine.high %v19430_v8, %v19436_v27  ;;  %17355 = vmatprep.subr.bf16.mxu0 %v17354_v1  ;;  %v19580_v63 = vrot.slane %v11102_v4, %v18155_v43  ;;  %v19582_v36 = vpop.f32.mrb[65].mxu1  ;;  %v13151_v9 = vrot.slane %v13137_v23, %v18155_v43 }
 0x1fc   : > { %v21760_v19 = vcombine.low %v19430_v8, %v19436_v27  ;;  %17359 = vmatprep.subr.bf16.mxu1 %v17358_v30  ;;  %v21763_v21 = vcombine.high %v19442_v44, %v19449_v42  ;;  %v19601_v41 = vrot.slane %v11117_v32, %v18155_v43  ;;  %v21767_v32 = vcombine.low %v19445_v53, %v19452_v38 }
 0x1fd   : > { %v13127_v13 = vrot.slane %v21757_v0, %v18155_v43  ;;  %21759 = vst [vmem:[#allocation55_spill] sm:$0xff] %v19580_v63  ;;  %v19592_v0 = vrot.slane %v13136_v16, %v18155_v43  ;;  %v19610_v16 = vrot.slane %v11118_v5, %v18155_v43  ;;  %v11134_v23 = vcombine.high %v19560_v56, %v19563_v31 }
 0x1fe   : > { %v19589_v18 = vrot.slane %v21760_v19, %v18155_v43  ;;  %v19598_v4 = vrot.slane %v21763_v21, %v18155_v43  ;;  %21765 = vst [vmem:[#allocation59_spill] sm:$0xff] %v19601_v41  ;;  %v19607_v19 = vpack.c.bf16 %v19554_v59, %v19551_v34  ;;  %v19620_v42 = vrot.slane %v21767_v32, %v18155_v43 }
 0x1ff   : > { %21762 = vst [vmem:[#allocation57_spill] sm:$0xff] %v19592_v0  ;;  %21766 = vst [vmem:[#allocation60_spill] sm:$0xff] %v19610_v16  ;;  %v13163_v27 = vcombine.high %v13127_v13, %v13151_v9  ;;  %v19623_v21 = vrot.slane %v13152_v62, %v18155_v43  ;;  %v13162_v5 = vcombine.low %v13127_v13, %v13151_v9 }
 0x200   : > { %21761 = vst [vmem:[#allocation56_spill] sm:$0xff] %v19589_v18  ;;  %21764 = vst [vmem:[#allocation58_spill] sm:$0xff] %v19598_v4  ;;  %v13161_v8 = vcombine.high %v19589_v18, %v19592_v0  ;;  %16809 = vmatmul.mubr.f32.vlgmr.msra.gmra.mrb[118].mxu0 %v19484_v17  ;;  %v21770_v44 = vcombine.low %v19433_v60, %v19439_v39  ;;  %v21772_v32 = vcombine.high %v19445_v53, %v19452_v38  ;;  %v19654_v38 = vpop.permute.xlu0 %17510 }
 0x201   : > { %21768 = vst [vmem:[#allocation61_spill] sm:$0xff] %v19620_v42  ;;  %21769 = vst [vmem:[#allocation62_spill] sm:$0xff] %v19623_v21  ;;  %14771 = vrot.lane.b32.xlu1 %v13163_v27, %s17887_s4  ;;  %v11135_v17 = vcombine.low %v19598_v4, %v19580_v63  ;;  %16816 = vmatmul.mubr.f32.vlgmr.msra.gmra.mrb[118].mxu1 %v19488_v45  ;;  %v21774_v60 = vcombine.high %v19334_v15, %v19359_v49  ;;  %v16446_v9 = vpop.f32.mrb[66].mxu0 }
 0x202   : > { %v19634_v0 = vrot.slane %v21770_v44, %v18155_v43  ;;  %v19640_v62 = vrot.slane %v21772_v32, %v18155_v43  ;;  %14643 = vrot.lane.b32.xlu0 %v13161_v8, %s17885_s29  ;;  %17357 = vmatpush3.bf16.xpose.msra.mxu0 %v17354_v1  ;;  %v21775_v27 = vcombine.low %v19340_v6, %v19362_v26  ;;  %v5469_v32 = vpop.f32.mrb[67].mxu0  ;;  %v19678_v1 = vld [vmem:[%s17974_s28 + $0x7d0] sm:$0xff] }
 0x203   : > { %v17544_v39 = vpack.i.bf16 %v11134_v23, %v21774_v60  ;;  %17361 = vmatpush3.bf16.xpose.msra.mxu1 %v17358_v30  ;;  %16822 = vmatprep.mubr.f32.mxu0 %v19500_v2  ;;  %v13165_v23 = vcombine.low %v19543_v46, %v16446_v9  ;;  %v13166_v44 = vcombine.high %v19543_v46, %v16446_v9  ;;  %v16453_v30 = vpop.f32.mrb[66].mxu1 }
 0x204   : > { %21771 = vst [vmem:[#allocation63_spill] sm:$0xff] %v19634_v0  ;;  %21773 = vst [vmem:[#allocation64_spill] sm:$0xff] %v19640_v62  ;;  %v17549_v8 = vpack.i.bf16 %v11135_v17, %v21775_v27  ;;  %16829 = vmatprep.mubr.f32.mxu1 %v19506_v48  ;;  %17363 = vmatprep.subr.bf16.mxu0 %v19548_v20  ;;  %v19670_v17 = vpop.permute.xlu1 %14763  ;;  %v13181_v60 = vcombine.low %v19565_v35, %v16453_v30  ;;  %v5544_v9 = vpop.f32.mrb[67].mxu1  ;;  %v19681_v48 = vld [vmem:[%s17974_s28 + $0x7d8] sm:$0x1f] }
 0x205   : > { %21776 = vst [vmem:[#allocation65_spill] sm:$0xff] %v19670_v17  ;;  %17545 = vrot.lane.b32.xlu1 %v17544_v39, %s17889_s6  ;;  %v13182_v27 = vcombine.high %v19565_v35, %v16453_v30  ;;  %v11141_v46 = vcombine.low %v19567_v3, %v5469_v32  ;;  %v19684_v45 = vrot.slane %v13165_v23, %v18111_v61  ;;  %v19692_v35 = vpop.permute.xlu0 %14633 }
 0x206   : > { %14707 = vrot.lane.b32.xlu0 %v13162_v5, %s17886_s30  ;;  %v19687_v2 = vrot.slane %v13166_v44, %v18111_v61  ;;  %v11142_v5 = vcombine.high %v19567_v3, %v5469_v32  ;;  %v11157_v39 = vcombine.low %v19582_v36, %v5544_v9  ;;  %17367 = vmatprep.subr.bf16.mxu1 %v19575_v51 }
 0x207   : > { %21777 = vst [vmem:[#allocation66_spill] sm:$0xff] %v19692_v35  ;;  %v19695_v30 = vrot.slane %v13181_v60, %v18111_v61  ;;  %v19698_v53 = vrot.slane %v13182_v27, %v18111_v61  ;;  %v11149_v23 = vrot.slane %v11141_v46, %v18111_v61  ;;  %v11158_v13 = vcombine.high %v19582_v36, %v5544_v9  ;;  %v19736_v36 = vld [vmem:[%s17974_s28 + $0x7e0] sm:$0xff] }
 0x208   : > { %v19703_v44 = vrot.slane %v11142_v5, %v18111_v61  ;;  %v11165_v3 = vrot.slane %v11157_v39, %v18111_v61  ;;  %v17374_v32 = vpack.c.bf16 %v19681_v48, %v19678_v1  ;;  %v19722_v39 = vpop.permute.xlu1 %14827 }
 0x209   : > { %v13229_v60 = vcombine.low %v19684_v45, %v19695_v30  ;;  %v19717_v46 = vrot.slane %v11158_v13, %v18111_v61  ;;  %17550 = vrot.lane.b32.xlu1 %v17549_v8, %s17890_s7  ;;  %16823 = vmatmul.mubr.f32.vlgmr.msra.gmra.mrb[120].mxu0 %v19503_v50  ;;  %21778 = vst [vmem:[#allocation67_spill] sm:$0xff] %v19722_v39  ;;  %v16460_v8 = vpop.f32.mrb[68].mxu0 }
 0x20a   : > { %v11205_v9 = vcombine.low %v11149_v23, %v11165_v3  ;;  %v11206_v5 = vcombine.high %v11149_v23, %v11165_v3  ;;  %16830 = vmatmul.mubr.f32.vlgmr.msra.gmra.mrb[120].mxu1 %v19509_v10  ;;  %17365 = vmatpush3.bf16.xpose.msra.mxu0 %v19548_v20  ;;  %v16467_v50 = vpop.f32.mrb[68].mxu1  ;;  %v5619_v23 = vpop.f32.mrb[69].mxu0  ;;  %v19742_v20 = vld [vmem:[%s17974_s28 + $0x7f0] sm:$0xff] }
 0x20b   : > { %v11221_v21 = vcombine.low %v19703_v44, %v19717_v46  ;;  %v11222_v13 = vcombine.high %v19703_v44, %v19717_v46  ;;  %17369 = vmatpush3.bf16.xpose.msra.mxu1 %v19575_v51  ;;  %16836 = vmatprep.mubr.f32.mxu0 %v19529_v47  ;;  %v19732_v10 = vpop.permute.xlu0 %14697  ;;  %v5694_v3 = vpop.f32.mrb[69].mxu1  ;;  %v19739_v44 = vld [vmem:[%s17974_s28 + $0x7e8] sm:$0x1f]  ;;  %v19745_v51 = vld [vmem:[%s17974_s28 + $0x7f8] sm:$0x1f] }
 0x20c   : > { %16843 = vmatprep.mubr.f32.mxu1 %v19536_v55  ;;  %17371 = vmatprep.subr.bf16.mxu0 %v19607_v19  ;;  %v19747_v46 = vpop.permute.xlu1 %17520  ;;  %v17378_v47 = vpack.c.bf16 %v19739_v44, %v19736_v36  ;;  %v15023_v55 = vsel %vm15022_vm0, %v19416_v54, %v19465_v58  ;;  %v17382_v27 = vpack.c.bf16 %v19745_v51, %v19742_v20 }
 0x20d   : > { %17375 = vmatprep.subr.bf16.mxu1 %v17374_v32  ;;  %v19760_v0 = vsel %vm15039_vm1, %v15023_v55, %v19494_v37  ;;  %v19765_v16 = vrot.slane %v11205_v9, %v18155_v43 }
 0x20f   : > { %v19762_v18 = vpop.permute.xlu0 %14761 }
 0x211   : > { %16837 = vmatmul.mubr.f32.vlgmr.msra.gmra.mrb[122].mxu0 %v19532_v40  ;;  %v16474_v58 = vpop.f32.mrb[70].mxu0  ;;  %v19769_v40 = vrot.slane %v13229_v60, %v18155_v43 }
 0x212   : > { %16844 = vmatmul.mubr.f32.vlgmr.msra.gmra.mrb[122].mxu1 %v19539_v33  ;;  %17373 = vmatpush3.bf16.xpose.msra.mxu0 %v19607_v19  ;;  %v19772_v33 = vrot.slane %v11206_v5, %v18155_v43  ;;  %v13197_v62 = vcombine.low %v16460_v8, %v16474_v58  ;;  %v13198_v41 = vcombine.high %v16460_v8, %v16474_v58  ;;  %v16481_v42 = vpop.f32.mrb[70].mxu1  ;;  %v5769_v37 = vpop.f32.mrb[71].mxu0 }
 0x213   : > { %17377 = vmatpush3.bf16.xpose.msra.mxu1 %v17374_v32  ;;  %16850 = vmatprep.mubr.f32.mxu0 %v19551_v34  ;;  %v13213_v9 = vcombine.low %v16467_v50, %v16481_v42  ;;  %v13214_v55 = vcombine.high %v16467_v50, %v16481_v42  ;;  %v5844_v63 = vpop.f32.mrb[71].mxu1  ;;  %v11173_v19 = vcombine.low %v5619_v23, %v5769_v37  ;;  %v19778_v8 = vpop.permute.xlu1 %17525 }
 0x214   : > { %16857 = vmatprep.mubr.f32.mxu1 %v19678_v1  ;;  %v11174_v32 = vcombine.high %v5619_v23, %v5769_v37  ;;  %17379 = vmatprep.subr.bf16.mxu0 %v17378_v47  ;;  %v13205_v60 = vrot.slane %v13197_v62, %v18111_v61  ;;  %v13212_v4 = vrot.slane %v13198_v41, %v18111_v61 }
 0x215   : > { %v11189_v5 = vcombine.low %v5694_v3, %v5844_v63  ;;  %v11190_v39 = vcombine.high %v5694_v3, %v5844_v63  ;;  %17383 = vmatprep.subr.bf16.mxu1 %v17382_v27  ;;  %21779 = vst [vmem:[#allocation68_spill] sm:$0xff] %v19778_v8  ;;  %v13221_v34 = vrot.slane %v13213_v9, %v18111_v61 }
 0x216   : > { %v13228_v1 = vrot.slane %v13214_v55, %v18111_v61  ;;  %v11181_v42 = vrot.slane %v11173_v19, %v18111_v61  ;;  %v21780_v50 = vcombine.high %v19684_v45, %v19695_v30  ;;  %v11229_v41 = vrot.slane %v11221_v21, %v18155_v43  ;;  %v19794_v19 = vpop.permute.xlu0 %14825 }
 0x217   : > { %v11197_v63 = vrot.slane %v11189_v5, %v18111_v61  ;;  %v11204_v62 = vrot.slane %v11190_v39, %v18111_v61  ;;  %v11188_v3 = vrot.slane %v11174_v32, %v18111_v61  ;;  %v11236_v58 = vrot.slane %v11222_v13, %v18155_v43  ;;  %v19797_v21 = vpop.permute.xlu1 %14637 }
 0x218   : > { %v19787_v23 = vrot.slane %v21780_v50, %v18155_v43  ;;  %v13253_v37 = vcombine.low %v13205_v60, %v13221_v34  ;;  %v13254_v9 = vcombine.high %v13205_v60, %v13221_v34  ;;  %v13269_v55 = vcombine.low %v13212_v4, %v13228_v1  ;;  %21781 = vst [vmem:[#allocation69_spill] sm:$0xff] %v19797_v21  ;;  %v21880_v21 = vld [vmem:[#allocation10_spill] sm:$0xff] }
 0x219   : > { %v11237_v17 = vcombine.low %v11181_v42, %v11197_v63  ;;  %v11238_v8 = vcombine.high %v11181_v42, %v11197_v63  ;;  %v11253_v45 = vcombine.low %v11188_v3, %v11204_v62  ;;  %v11254_v30 = vcombine.high %v11188_v3, %v11204_v62  ;;  %16851 = vmatmul.mubr.f32.vlgmr.msra.gmra.mrb[124].mxu0 %v19554_v59  ;;  %v19800_v39 = vpop.f32.mrb[72].mxu0  ;;  %v15073_v59 = vld [vmem:[%s21584_s2] sm:$0xff] }
 0x21a   : > { %16858 = vmatmul.mubr.f32.vlgmr.msra.gmra.mrb[124].mxu1 %v19681_v48  ;;  %17381 = vmatpush3.bf16.xpose.msra.mxu0 %v17378_v47  ;;  %v13261_v13 = vrot.slane %v13253_v37, %v18155_v43  ;;  %v19804_v32 = vrot.slane %v13254_v9, %v18155_v43  ;;  %v21782_v4 = vcombine.low %v19687_v2, %v19698_v53  ;;  %v15074_v48 = vld [vmem:[%s21584_s2 + $0x8] sm:$0xff]  ;;  %v19826_v2 = vpop.f32.mrb[72].mxu1  ;;  %v19828_v1 = vpop.f32.mrb[73].mxu0  ;;  %v21673_v3 = vmov 0.0|0.0  }
 0x21b   : > { %v19819_v47 = vrot.slane %v11237_v17, %v18155_v43  ;;  %v19822_v5 = vrot.slane %v11238_v8, %v18155_v43  ;;  %v11261_v34 = vrot.slane %v11253_v45, %v18155_v43  ;;  %v11268_v53 = vrot.slane %v11254_v30, %v18155_v43  ;;  %17385 = vmatpush3.bf16.xpose.msra.mxu1 %v17382_v27  ;;  %v19830_v42 = vpop.f32.mrb[73].mxu1  ;;  %v19844_v37 = vpop.permute.xlu0 %14635 }
 0x21c   : > { %v19810_v60 = vrot.slane %v21782_v4, %v18155_v43  ;;  %v13278_v50 = vcombine.high %v19769_v40, %v13261_v13  ;;  %16864 = vmatprep.mubr.f32.mxu0 %v19736_v36  ;;  %16871 = vmatprep.mubr.f32.mxu1 %v19742_v20  ;;  %v13279_v17 = vcombine.low %v19787_v23, %v19804_v32 }
 0x21d   : > { %v11272_v63 = vcombine.high %v19772_v33, %v19822_v5  ;;  %v11274_v62 = vcombine.high %v11229_v41, %v11261_v34  ;;  %17386 = vmatprep.subr.bf16.mxu0 %v21673_v3  ;;  %v17387_v36 = vpack.c.bf16 %v15074_v48, %v15073_v59  ;;  %v13277_v20 = vcombine.low %v19769_v40, %v13261_v13  ;;  %v19860_v40 = vpop.permute.xlu1 %14701 }
 0x21e   : > { %14645 = vrot.lane.b32.xlu0 %v13278_v50, %s17885_s29  ;;  %v19849_v9 = vrot.slane %v13269_v55, %v18155_v43  ;;  %v11273_v45 = vcombine.low %v11229_v41, %v11261_v34  ;;  %v11275_v30 = vcombine.low %v11236_v58, %v11268_v53  ;;  %v21783_v4 = vcombine.high %v19340_v6, %v19362_v26 }
 0x21f   : > { %v21784_v8 = vcombine.high %v18201_v12, %v18227_v28  ;;  %v11276_v59 = vcombine.high %v11236_v58, %v11268_v53  ;;  %v21785_v50 = vmov 0.0|0.0   ;;  %21786 = vst [vmem:[#allocation70_spill] sm:$0xff] %v19860_v40  ;;  %v21787_v41 = vcombine.low %v18180_v52, %v18211_v25  ;;  %v15075_v53 = vld [vmem:[%s21584_s2 + $0x10] sm:$0xff]  ;;  %v15076_v52 = vld [vmem:[%s21584_s2 + $0x18] sm:$0xff] }
 0x220   : > { %v17559_v27 = vpack.i.bf16 %v11272_v63, %v21783_v4  ;;  %17420 = vmatprep.subr.bf16.mxu1 %v21785_v50  ;;  %v13281_v6 = vcombine.low %v19810_v60, %v19849_v9  ;;  %v21788_v26 = vcombine.low %v18201_v12, %v18227_v28  ;;  %v21789_v58 = vcombine.low %v18204_v14, %v18230_v29 }
 0x221   : > { %v17569_v3 = vpack.i.bf16 %v11274_v62, %v21784_v8  ;;  %v17554_v55 = vpack.i.bf16 %v13277_v20, %v21787_v41  ;;  %v15057_v25 = vsel %vm15056_vm2, %v19760_v0, %v19513_v22  ;;  %16865 = vmatmul.mubr.f32.vlgmr.msra.gmra.mrb[126].mxu0 %v19739_v44  ;;  %v21790_v12 = vcombine.high %v18204_v14, %v18230_v29  ;;  %v16502_v63 = vpop.f32.mrb[74].mxu0  ;;  %v19900_v29 = vpop.permute.xlu0 %14699 }
 0x222   : > { %v19870_v13 = vpack.i.bf16 %v11273_v45, %v21788_v26  ;;  %v19875_v34 = vpack.i.bf16 %v11275_v30, %v21789_v58  ;;  %17560 = vrot.lane.b32.xlu1 %v17559_v27, %s21675_s8  ;;  %16872 = vmatmul.mubr.f32.vlgmr.msra.gmra.mrb[126].mxu1 %v19745_v51  ;;  %v13282_v22 = vcombine.low %v19800_v39, %v16502_v63  ;;  %v16509_v44 = vpop.f32.mrb[74].mxu1  ;;  %v6069_v27 = vpop.f32.mrb[75].mxu0  ;;  %s21835_s8 = smov 39  }
 0x223   : > { %v19891_v28 = vpack.i.bf16 %v11276_v59, %v21790_v12  ;;  %15441 = vmatprep.mubr.msk.f32.mxu0 %vm15095_vm3, %v15057_v25  ;;  %14709 = vrot.lane.b32.xlu0 %v13279_v17, %s17886_s30  ;;  %v13283_v0 = vcombine.high %v19800_v39, %v16502_v63  ;;  %v17390_v14 = vpack.c.bf16 %v15076_v52, %v15075_v53  ;;  %v6144_v30 = vpop.f32.mrb[75].mxu1  ;;  %v15077_v39 = vld [vmem:[%s21584_s2 + $0x20] sm:$0xff]  ;;  %v15078_v17 = vld [vmem:[%s21584_s2 + $0x28] sm:$0xff] }
 0x224   : > { %17388 = vmatpush1.bf16.msra.mxu0 %v17387_v36  ;;  %v13298_v62 = vcombine.low %v19826_v2, %v16509_v44  ;;  %v13299_v20 = vcombine.high %v19826_v2, %v16509_v44  ;;  %v11277_v51 = vcombine.low %v19828_v1, %v6069_v27  ;;  %v11278_v45 = vcombine.high %v19828_v1, %v6069_v27  ;;  %v19918_v1 = vpop.permute.xlu1 %14765 }
 0x225   : > { %17389 = vmatprep.subr.bf16.mxu0 %v21785_v50  ;;  %v13290_v4 = vrot.slane %v13282_v22, %v18111_v61  ;;  %v13297_v59 = vrot.slane %v13283_v0, %v18111_v61  ;;  %v11293_v2 = vcombine.low %v19830_v42, %v6144_v30  ;;  %v11294_v41 = vcombine.high %v19830_v42, %v6144_v30 }
 0x226   : > { %17570 = vrot.lane.b32.xlu1 %v17569_v3, %s17893_s10  ;;  %21791 = vst [vmem:[#allocation71_spill] sm:$0xff] %v19918_v1  ;;  %v13306_v26 = vrot.slane %v13298_v62, %v18111_v61  ;;  %v13313_v58 = vrot.slane %v13299_v20, %v18111_v61  ;;  %v11285_v53 = vrot.slane %v11277_v51, %v18111_v61  ;;  %v15079_v20 = vld [vmem:[%s21584_s2 + $0x30] sm:$0xff]  ;;  %v21879_v1 = vld [vmem:[#allocation8_spill] sm:$0xff] }
 0x227   : > { %v11292_v52 = vrot.slane %v11278_v45, %v18111_v61  ;;  %17431 = vmatpush1.bf16.msra.mxu1 %v17387_v36  ;;  %v11301_v25 = vrot.slane %v11293_v2, %v18111_v61  ;;  %v11308_v12 = vrot.slane %v11294_v41, %v18111_v61  ;;  %v21792_v42 = vcombine.high %v19787_v23, %v19804_v32  ;;  %v15080_v23 = vld [vmem:[%s21584_s2 + $0x38] sm:$0xff]  ;;  %v19938_v32 = vpop.permute.xlu0 %17515  ;;  %v15085_v41 = vld [vmem:[%s21584_s2 + $0x60] sm:$0xff] }
 0x228   : > { %17391 = vmatpush1.bf16.msra.mxu0 %v17390_v14  ;;  %v17393_v3 = vpack.c.bf16 %v15078_v17, %v15077_v39  ;;  %v13346_v63 = vcombine.low %v13290_v4, %v13306_v26  ;;  %v13347_v22 = vcombine.high %v13290_v4, %v13306_v26  ;;  %v13362_v0 = vcombine.low %v13297_v59, %v13313_v58  ;;  %v19945_v39 = vpop.permute.xlu1 %14829  ;;  %v15081_v59 = vld [vmem:[%s21584_s2 + $0x40] sm:$0xff]  ;;  %v15084_v2 = vld [vmem:[%s21584_s2 + $0x58] sm:$0xff]  ;;  %v15086_v26 = vld [vmem:[%s21584_s2 + $0x68] sm:$0xff] }
 0x229   : > { %14773 = vrot.lane.b32.xlu0 %v21792_v42, %s17887_s4  ;;  %17392 = vmatprep.subr.bf16.mxu0 %v21785_v50  ;;  %v11341_v44 = vcombine.low %v11285_v53, %v11301_v25  ;;  %v11342_v36 = vcombine.high %v11285_v53, %v11301_v25  ;;  %v11357_v27 = vcombine.low %v11292_v52, %v11308_v12  ;;  %v16516_v51 = vpop.f32.mrb[76].mxu0  ;;  %v15088_v42 = vld [vmem:[%s21584_s2 + $0x78] sm:$0xff] }
 0x22a   : > { %17421 = vmatprep.subr.bf16.mxu1 %v21785_v50  ;;  %v11358_v62 = vcombine.high %v11292_v52, %v11308_v12  ;;  %v19941_v45 = vpop.f32.mrb[76].mxu1  ;;  %v19943_v30 = vpop.f32.mrb[77].mxu0  ;;  %21793 = vst [vmem:[#allocation72_spill] sm:$0xff] %v19945_v39  ;;  %v17396_v4 = vpack.c.bf16 %v15080_v23, %v15079_v20  ;;  %v15087_v12 = vld [vmem:[%s21584_s2 + $0x70] sm:$0xff]  ;;  %v19987_v60 = vrot.slane %v13347_v22, %v18155_v43  ;;  %v21878_v39 = vld [vmem:[#allocation50_spill] sm:$0xff] }
 0x22b   : > { %17432 = vmatpush1.bf16.msra.mxu1 %v17390_v14  ;;  %v19947_v17 = vpop.f32.mrb[77].mxu1  ;;  %v15083_v14 = vld [vmem:[%s21584_s2 + $0x50] sm:$0xff]  ;;  %v19990_v9 = vrot.slane %v13346_v63, %v18155_v43  ;;  %v19999_v20 = vrot.slane %v11341_v44, %v18155_v43  ;;  %v20002_v23 = vrot.slane %v11342_v36, %v18155_v43  ;;  %v15089_v36 = vld [vmem:[%s21584_s2 + $0x80] sm:$0xff]  ;;  %v21881_v40 = vcombine.low %v21879_v1, %v21880_v21 }
 0x22c   : > { %17394 = vmatpush1.bf16.msra.mxu0 %v17393_v3  ;;  %17422 = vmatprep.subr.bf16.mxu1 %v21785_v50  ;;  %v19978_v25 = vpack.c.bf16 %v15084_v2, %v15083_v14  ;;  %v20008_v22 = vrot.slane %v11358_v62, %v18155_v43  ;;  %v20012_v2 = vpack.c.bf16 %v15088_v42, %v15087_v12  ;;  %v15091_v12 = vld [vmem:[%s21584_s2 + $0x90] sm:$0xff]  ;;  %v15092_v42 = vld [vmem:[%s21584_s2 + $0x98] sm:$0xff] }
 0x22d   : > { %17555 = vrot.lane.b32.xlu0 %v17554_v55, %s17894_s24  ;;  %17395 = vmatprep.subr.bf16.mxu0 %v21785_v50  ;;  %v15082_v55 = vld [vmem:[%s21584_s2 + $0x48] sm:$0xff]  ;;  %v21882_v21 = vld [vmem:[#allocation51_spill] sm:$0xff] }
 0x22e   : > { %v17399_v52 = vpack.c.bf16 %v15082_v55, %v15081_v59  ;;  %v20005_v59 = vrot.slane %v11357_v27, %v18155_v43  ;;  %v15090_v27 = vld [vmem:[%s21584_s2 + $0x88] sm:$0xff] }
 0x22f   : > { %17433 = vmatpush1.bf16.msra.mxu1 %v17393_v3  ;;  %v19974_v58 = vpop.permute.xlu0 %14767  ;;  %v19976_v53 = vpop.permute.xlu1 %14639  ;;  %v19996_v3 = vpack.c.bf16 %v15086_v26, %v15085_v41 }
 0x230   : > { %17423 = vmatprep.subr.bf16.mxu1 %v21785_v50  ;;  %21794 = vst [vmem:[#allocation73_spill] sm:$0xff] %v19974_v58  ;;  %21795 = vst [vmem:[#allocation74_spill] sm:$0xff] %v19976_v53  ;;  %17397 = vmatpush1.bf16.msra.mxu0 %v17396_v4  ;;  %v20045_v58 = vpack.c.bf16 %v15090_v27, %v15089_v36 }
 0x231   : > { %14837 = vrot.lane.b32.xlu0 %v13281_v6, %s17888_s5  ;;  %v19993_v6 = vrot.slane %v13362_v0, %v18155_v43  ;;  %17398 = vmatprep.subr.bf16.mxu0 %v21785_v50  ;;  %v16530_v63 = vpop.f32.mrb[78].mxu0 }
 0x232   : > { %v13314_v0 = vcombine.low %v16516_v51, %v16530_v63  ;;  %v13315_v55 = vcombine.high %v16516_v51, %v16530_v63  ;;  %v6369_v14 = vpop.f32.mrb[79].mxu0 }
 0x233   : > { %17434 = vmatpush1.bf16.msra.mxu1 %v17396_v4  ;;  %v16537_v44 = vpop.f32.mrb[78].mxu1  ;;  %v20023_v4 = vpop.permute.xlu0 %14831  ;;  %v11309_v41 = vcombine.low %v19943_v30, %v6369_v14  ;;  %v11310_v26 = vcombine.high %v19943_v30, %v6369_v14 }
 0x234   : > { %17424 = vmatprep.subr.bf16.mxu1 %v21785_v50  ;;  %v13330_v62 = vcombine.low %v19941_v45, %v16537_v44  ;;  %v6444_v51 = vpop.f32.mrb[79].mxu1  ;;  %21796 = vst [vmem:[#allocation75_spill] sm:$0xff] %v20023_v4  ;;  %17400 = vmatpush1.bf16.msra.mxu0 %v17399_v52  ;;  %v13322_v63 = vrot.slane %v13314_v0, %v18111_v61  ;;  %v20039_v48 = vpop.permute.xlu1 %14703 }
 0x235   : > { %17565 = vrot.lane.b32.xlu0 %v19870_v13, %s17895_s11  ;;  %v13331_v13 = vcombine.high %v19941_v45, %v16537_v44  ;;  %v20035_v45 = vrot.slane %v13315_v55, %v18111_v61  ;;  %v11325_v44 = vcombine.low %v19947_v17, %v6444_v51  ;;  %v11326_v8 = vcombine.high %v19947_v17, %v6444_v51 }
 0x236   : > { %21797 = vst [vmem:[#allocation76_spill] sm:$0xff] %v20039_v48  ;;  %17401 = vmatprep.subr.bf16.mxu0 %v21785_v50  ;;  %v13338_v30 = vrot.slane %v13330_v62, %v18111_v61  ;;  %v11317_v4 = vrot.slane %v11309_v41, %v18111_v61  ;;  %v11324_v53 = vrot.slane %v11310_v26, %v18111_v61 }
 0x237   : > { %v13345_v14 = vrot.slane %v13331_v13, %v18111_v61  ;;  %17435 = vmatpush1.bf16.msra.mxu1 %v17399_v52  ;;  %v11333_v0 = vrot.slane %v11325_v44, %v18111_v61  ;;  %v11340_v55 = vrot.slane %v11326_v8, %v18111_v61  ;;  %v20052_v17 = vpack.c.bf16 %v15092_v42, %v15091_v12 }
 0x238   : > { %v13370_v62 = vcombine.low %v13322_v63, %v13338_v30  ;;  %v13371_v13 = vcombine.high %v13322_v63, %v13338_v30  ;;  %v17536_v36 = vpop.permute.xlu0 %17535  ;;  %17403 = vmatpush1.bf16.msra.mxu0 %v19978_v25  ;;  %17425 = vmatprep.subr.bf16.mxu1 %v21785_v50 }
 0x239   : > { %17575 = vrot.lane.b32.xlu0 %v19875_v34, %s17896_s9  ;;  %v13386_v51 = vcombine.low %v20035_v45, %v13345_v14  ;;  %v11373_v52 = vcombine.low %v11317_v4, %v11333_v0  ;;  %v11374_v8 = vcombine.high %v11317_v4, %v11333_v0  ;;  %v11389_v27 = vcombine.low %v11324_v53, %v11340_v55  ;;  %v17531_v26 = vpop.permute.xlu1 %17530  ;;  %v20058_v48 = vpop.f32.mrb[80].mxu0 }
 0x23a   : > { %v11390_v41 = vcombine.high %v11324_v53, %v11340_v55  ;;  %17404 = vmatprep.subr.bf16.mxu0 %v21785_v50  ;;  %v17538_v34 = vunpack.i.h.bf16 %v17536_v36  ;;  %v17537_v12 = vunpack.i.l.bf16 %v17536_v36  ;;  %v17533_v42 = vunpack.i.h.bf16 %v17531_v26  ;;  %v20073_v14 = vpop.f32.mrb[81].mxu0  ;;  %v21800_v55 = vld [vmem:[#allocation39_spill] sm:$0xff] }
 0x23b   : > { %v17532_v44 = vunpack.i.l.bf16 %v17531_v26  ;;  %17436 = vmatpush1.bf16.msra.mxu1 %v19978_v25  ;;  %v20062_v63 = vrot.slane %v11373_v52, %v18155_v43  ;;  %v20065_v45 = vrot.slane %v11374_v8, %v18155_v43  ;;  %v11397_v4 = vrot.slane %v11389_v27, %v18155_v43  ;;  %v16551_v30 = vpop.f32.mrb[80].mxu1 }
 0x23c   : > { %v20069_v53 = vrot.slane %v11390_v41, %v18155_v43  ;;  %v21799_v25 = vcombine.low %v18917_v7, %v18946_v11  ;;  %v21801_v36 = vcombine.low %v19123_v57, %v21800_v55  ;;  %v20083_v8 = vpop.f32.mrb[81].mxu1  ;;  %v17541_v27 = vpop.permute.xlu0 %17540  ;;  %v13385_v41 = vrot.slane %v13371_v13, %v18155_v43  ;;  %17406 = vmatpush1.bf16.msra.mxu0 %v19996_v3 }
 0x23d   : > { %21798 = vst [vmem:[#allocation77_spill] sm:$0xff] %v20062_v63  ;;  %17580 = vrot.lane.b32.xlu0 %v19891_v28, %s17897_s17  ;;  %v13378_v28 = vrot.slane %v13370_v62, %v18155_v43  ;;  %v17543_v7 = vunpack.i.h.bf16 %v17541_v27  ;;  %v17542_v11 = vunpack.i.l.bf16 %v17541_v27  ;;  %17407 = vmatprep.subr.bf16.mxu0 %v21785_v50 }
 0x23e   : > { %v14874_v0 = vsel %vm14869_vm4, %v21799_v25, %v17532_v44  ;;  %v14875_v52 = vsel %vm14869_vm4, %v21801_v36, %v17533_v42  ;;  %17426 = vmatprep.subr.bf16.mxu1 %v21785_v50  ;;  %v13397_v42 = vcombine.high %v19987_v60, %v13385_v41  ;;  %v13396_v62 = vcombine.low %v19987_v60, %v13385_v41  ;;  %v21804_v36 = vld [vmem:[#allocation7_spill] sm:$0xff] }
 0x23f   : > { %v14891_v44 = vsel %vm14886_vm5, %v14874_v0, %v17537_v12  ;;  %v14892_v57 = vsel %vm14886_vm5, %v14875_v52, %v17538_v34  ;;  %v13395_v13 = vcombine.high %v19990_v9, %v13378_v28  ;;  %17437 = vmatpush1.bf16.msra.mxu1 %v19996_v3  ;;  %v13394_v12 = vcombine.low %v19990_v9, %v13378_v28  ;;  %v21805_v52 = vld [vmem:[#allocation9_spill] sm:$0xff] }
 0x240   : > { %v20099_v25 = vsel %vm14903_vm6, %v14891_v44, %v17542_v11  ;;  %v20102_v55 = vsel %vm14903_vm6, %v14892_v57, %v17543_v7  ;;  %v13393_v0 = vrot.slane %v13386_v51, %v18155_v43  ;;  %17427 = vmatprep.subr.bf16.mxu1 %v21785_v50  ;;  %14775 = vrot.lane.b32.xlu1 %v13397_v42, %s17887_s4  ;;  %v21808_v57 = vld [vmem:[#allocation13_spill] sm:$0xff]  ;;  %v21809_v42 = vld [vmem:[#allocation11_spill] sm:$0xff] }
 0x241   : > { %21802 = vst [vmem:[#allocation39_spill] sm:$0xff] %v20099_v25  ;;  %21803 = vst [vmem:[#allocation78_spill] sm:$0xff] %v20102_v55  ;;  %14647 = vrot.lane.b32.xlu0 %v13395_v13, %s17885_s29  ;;  %v11406_v60 = vcombine.high %v19999_v20, %v20062_v63  ;;  %v11409_v3 = vcombine.low %v20005_v59, %v11397_v4  ;;  %v11407_v34 = vcombine.low %v20002_v23, %v20065_v45  ;;  %v16558_v7 = vpop.f32.mrb[82].mxu0 }
 0x242   : > { %v21806_v9 = vcombine.low %v21804_v36, %v21805_v52  ;;  %v13398_v51 = vcombine.low %v19993_v6, %v13393_v0  ;;  %v11410_v41 = vcombine.high %v20005_v59, %v11397_v4  ;;  %v11411_v28 = vcombine.low %v20008_v22, %v20069_v53  ;;  %17409 = vmatpush1.bf16.msra.mxu0 %v20012_v2  ;;  %v6669_v52 = vpop.f32.mrb[83].mxu0 }
 0x243   : > { %v21807_v11 = vcombine.high %v19765_v16, %v19819_v47  ;;  %v21810_v13 = vcombine.low %v21808_v57, %v21809_v42  ;;  %v11412_v59 = vcombine.high %v20008_v22, %v20069_v53  ;;  %17410 = vmatprep.subr.bf16.mxu0 %v21785_v50  ;;  %v13399_v4 = vcombine.low %v20058_v48, %v16558_v7  ;;  %v16565_v36 = vpop.f32.mrb[82].mxu1 }
 0x244   : > { %v17584_v27 = vpack.i.bf16 %v13394_v12, %v21806_v9  ;;  %v21811_v12 = vcombine.low %v19772_v33, %v19822_v5  ;;  %v13400_v0 = vcombine.high %v20058_v48, %v16558_v7  ;;  %17438 = vmatpush1.bf16.msra.mxu1 %v20012_v2  ;;  %v13415_v5 = vcombine.low %v16551_v30, %v16565_v36  ;;  %v6744_v53 = vpop.f32.mrb[83].mxu1 }
 0x245   : > { %v17589_v44 = vpack.i.bf16 %v11406_v60, %v21807_v11  ;;  %v17599_v26 = vpack.i.bf16 %v11409_v3, %v21810_v13  ;;  %v21812_v60 = vcombine.high %v21808_v57, %v21809_v42  ;;  %v21813_v3 = vld [vmem:[#allocation14_spill] sm:$0xff]  ;;  %v21814_v11 = vld [vmem:[#allocation12_spill] sm:$0xff]  ;;  %14711 = vrot.lane.b32.xlu0 %v13396_v62, %s17886_s30  ;;  %v13416_v22 = vcombine.high %v16551_v30, %v16565_v36 }
 0x246   : > { %v17594_v6 = vpack.i.bf16 %v11407_v34, %v21811_v12  ;;  %v21815_v13 = vcombine.low %v21813_v3, %v21814_v11  ;;  %17585 = vrot.lane.b32.xlu1 %v17584_v27, %s17894_s24  ;;  %v11413_v48 = vcombine.low %v20073_v14, %v6669_v52  ;;  %v13407_v34 = vrot.slane %v13399_v4, %v18111_v61 }
 0x247   : > { %v17604_v9 = vpack.i.bf16 %v11410_v41, %v21812_v60  ;;  %v13414_v7 = vrot.slane %v13400_v0, %v18111_v61  ;;  %v11414_v41 = vcombine.high %v20073_v14, %v6669_v52  ;;  %v11429_v57 = vcombine.low %v20083_v8, %v6744_v53  ;;  %17412 = vmatpush1.bf16.msra.mxu0 %v20045_v58  ;;  %v15094_v14 = vld [vmem:[%s21584_s2 + $0xa8] sm:$0x1] }
 0x248   : > { %v17609_v33 = vpack.i.bf16 %v11411_v28, %v21815_v13  ;;  %v13423_v2 = vrot.slane %v13415_v5, %v18111_v61  ;;  %v13430_v62 = vrot.slane %v13416_v22, %v18111_v61  ;;  %v11421_v27 = vrot.slane %v11413_v48, %v18111_v61  ;;  %17413 = vmatprep.subr.bf16.mxu0 %v21785_v50  ;;  %v15093_v28 = vld [vmem:[%s21584_s2 + $0xa0] sm:$0xff] }
 0x249   : > { %v11430_v30 = vcombine.high %v20083_v8, %v6744_v53  ;;  %v11428_v42 = vrot.slane %v11414_v41, %v18111_v61  ;;  %v11437_v12 = vrot.slane %v11429_v57, %v18111_v61  ;;  %v21816_v4 = vcombine.high %v21813_v3, %v21814_v11  ;;  %17428 = vmatprep.subr.bf16.mxu1 %v21785_v50  ;;  %v16572_v48 = vpop.f32.mrb[84].mxu0 }
 0x24a   : > { %v11408_v8 = vcombine.high %v20002_v23, %v20065_v45  ;;  %v13463_v36 = vcombine.low %v13407_v34, %v13423_v2  ;;  %v13464_v52 = vcombine.high %v13407_v34, %v13423_v2  ;;  %v13479_v60 = vcombine.low %v13414_v7, %v13430_v62  ;;  %14839 = vrot.lane.b32.xlu1 %v13398_v51, %s17888_s5  ;;  %v6819_v51 = vpop.f32.mrb[85].mxu0 }
 0x24b   : > { %v17614_v0 = vpack.i.bf16 %v11412_v59, %v21816_v4  ;;  %v11444_v13 = vrot.slane %v11430_v30, %v18111_v61  ;;  %v11477_v5 = vcombine.low %v11421_v27, %v11437_v12  ;;  %v11478_v22 = vcombine.high %v11421_v27, %v11437_v12  ;;  %17590 = vrot.lane.b32.xlu0 %v17589_v44, %s17889_s6  ;;  %v16579_v34 = vpop.f32.mrb[84].mxu1 }
 0x24c   : > { %17415 = vmatpush1.bf16.msra.mxu0 %v20052_v17  ;;  %v17417_v3 = vpack.c.bf16 %v15094_v14, %v15093_v28  ;;  %17439 = vmatpush1.bf16.msra.mxu1 %v20045_v58  ;;  %v6894_v44 = vpop.f32.mrb[85].mxu1  ;;  %v13471_v41 = vrot.slane %v13463_v36, %v18155_v43 }
 0x24d   : > { %v11493_v59 = vcombine.low %v11428_v42, %v11444_v13  ;;  %v11494_v11 = vcombine.high %v11428_v42, %v11444_v13  ;;  %17416 = vmatprep.subr.bf16.mxu0 %v21785_v50  ;;  %17429 = vmatprep.subr.bf16.mxu1 %v21785_v50  ;;  %v20193_v58 = vrot.slane %v11477_v5, %v18155_v43 }
 0x24e   : > { %17600 = vrot.lane.b32.xlu1 %v17599_v26, %s17895_s11  ;;  %v20200_v57 = vrot.slane %v11478_v22, %v18155_v43 }
 0x24f   : > { %17595 = vrot.lane.b32.xlu0 %v17594_v6, %s17890_s7  ;;  %21820 = vst [vmem:[#allocation9_spill] sm:$0xff] %v20193_v58  ;;  %v20197_v6 = vrot.slane %v13464_v52, %v18155_v43  ;;  %v11508_v22 = vrot.slane %v11494_v11, %v18155_v43 }
 0x250   : > { %17419 = vmatpush1.bf16.msk.msra.mxu0 %vm20176_vm9, %v17417_v3  ;;  %17440 = vmatpush1.bf16.msra.mxu1 %v20052_v17  ;;  %v20188_v7 = vpop.permute.xlu0 %14641 }
 0x251   : > { %21819 = vst [vmem:[#allocation7_spill] sm:$0xff] %v20188_v7  ;;  %17430 = vmatprep.subr.bf16.mxu1 %v21785_v50  ;;  %v16586_v26 = vpop.f32.mrb[86].mxu0  ;;  %v20203_v50 = vrot.slane %v13479_v60, %v18155_v43  ;;  %v11501_v60 = vrot.slane %v11493_v59, %v18155_v43 }
 0x252   : > { %17605 = vrot.lane.b32.xlu1 %v17604_v9, %s17893_s10  ;;  %v13431_v17 = vcombine.low %v16572_v48, %v16586_v26  ;;  %v13432_v9 = vcombine.high %v16572_v48, %v16586_v26  ;;  %v6969_v62 = vpop.f32.mrb[87].mxu0 }
 0x253   : > { %17610 = vrot.lane.b32.xlu0 %v17609_v33, %s17896_s9  ;;  %v16593_v2 = vpop.f32.mrb[86].mxu1  ;;  %v11445_v14 = vcombine.low %v6819_v51, %v6969_v62  ;;  %v11446_v42 = vcombine.high %v6819_v51, %v6969_v62 }
 0x254   : > { %17441 = vmatpush1.bf16.msk.msra.mxu1 %vm20176_vm9, %v17417_v3  ;;  %v13447_v33 = vcombine.low %v16579_v34, %v16593_v2  ;;  %v13448_v27 = vcombine.high %v16579_v34, %v16593_v2  ;;  %v7044_v30 = vpop.f32.mrb[87].mxu1  ;;  %v13439_v12 = vrot.slane %v13431_v17, %v18111_v61  ;;  %v13446_v4 = vrot.slane %v13432_v9, %v18111_v61 }
 0x255   : > { %v14706_v28 = vpop.permute.xlu0 %14705  ;;  %v11461_v36 = vcombine.low %v6894_v44, %v7044_v30  ;;  %v11462_v52 = vcombine.high %v6894_v44, %v7044_v30  ;;  %v11460_v53 = vrot.slane %v11446_v42, %v18111_v61 }
 0x256   : > { %17615 = vrot.lane.b32.xlu1 %v17614_v0, %s17897_s17  ;;  %v13455_v13 = vrot.slane %v13447_v33, %v18111_v61  ;;  %v13462_v5 = vrot.slane %v13448_v27, %v18111_v61  ;;  %v11453_v0 = vrot.slane %v11445_v14, %v18111_v61  ;;  %v15029_v59 = vsel %vm15022_vm0, %v20188_v7, %v14706_v28 }
 0x257   : > { %v11469_v3 = vrot.slane %v11461_v36, %v18111_v61  ;;  %v11476_v48 = vrot.slane %v11462_v52, %v18111_v61 }
 0x258   : > { %v13487_v34 = vcombine.low %v13439_v12, %v13455_v13  ;;  %v13488_v51 = vcombine.high %v13439_v12, %v13455_v13  ;;  %v13503_v26 = vcombine.low %v13446_v4, %v13462_v5 }
 0x259   : > { %v14770_v44 = vpop.permute.xlu0 %14769  ;;  %v11509_v17 = vcombine.low %v11453_v0, %v11469_v3  ;;  %v11510_v9 = vcombine.high %v11453_v0, %v11469_v3  ;;  %v11525_v2 = vcombine.low %v11460_v53, %v11476_v48  ;;  %v11526_v62 = vcombine.high %v11460_v53, %v11476_v48  ;;  %v16600_v11 = vpop.f32.mrb[88].mxu0 }
 0x25a   : > { %v15046_v33 = vsel %vm15039_vm1, %v15029_v59, %v14770_v44  ;;  %v13495_v27 = vrot.slane %v13487_v34, %v18155_v43  ;;  %v13502_v30 = vrot.slane %v13488_v51, %v18155_v43  ;;  %v20224_v14 = vrot.slane %v13503_v26, %v18155_v43  ;;  %v7119_v52 = vpop.f32.mrb[89].mxu0  ;;  %v21823_v44 = vld [vmem:[#allocation15_spill] sm:$0xff] }
 0x25b   : > { %v20227_v42 = vrot.slane %v11509_v17, %v18155_v43  ;;  %v20230_v28 = vrot.slane %v11510_v9, %v18155_v43  ;;  %v11533_v12 = vrot.slane %v11525_v2, %v18155_v43  ;;  %v11540_v4 = vrot.slane %v11526_v62, %v18155_v43  ;;  %v16607_v36 = vpop.f32.mrb[88].mxu1  ;;  %v21824_v17 = vld [vmem:[#allocation19_spill] sm:$0xff] }
 0x25c   : > { %v7194_v13 = vpop.f32.mrb[89].mxu1  ;;  %v13512_v0 = vcombine.high %v13471_v41, %v13495_v27  ;;  %v13513_v3 = vcombine.low %v20197_v6, %v13502_v30  ;;  %v13514_v48 = vcombine.high %v20197_v6, %v13502_v30  ;;  %v13511_v53 = vcombine.low %v13471_v41, %v13495_v27  ;;  %v21826_v27 = vld [vmem:[#allocation17_spill] sm:$0xff] }
 0x25d   : > { %21821 = vst [vmem:[#allocation13_spill] sm:$0xff] %v20227_v42  ;;  %v14834_v5 = vpop.permute.xlu0 %14833  ;;  %v11545_v26 = vcombine.low %v11501_v60, %v11533_v12  ;;  %v11546_v59 = vcombine.high %v11501_v60, %v11533_v12  ;;  %v21825_v9 = vcombine.low %v21823_v44, %v21824_v17  ;;  %v13515_v62 = vcombine.low %v20203_v50, %v20224_v14  ;;  %v21827_v30 = vld [vmem:[#allocation21_spill] sm:$0xff]  ;;  %v21830_v14 = vld [vmem:[#allocation18_spill] sm:$0xff] }
 0x25e   : > { %v20239_v51 = vsel %vm15056_vm2, %v15046_v33, %v14834_v5  ;;  %14649 = vrot.lane.b32.xlu1 %v13512_v0, %s17885_s29  ;;  %v11544_v41 = vcombine.high %v20200_v57, %v20230_v28  ;;  %v11547_v6 = vcombine.low %v11508_v22, %v11540_v4  ;;  %v21828_v34 = vcombine.low %v21826_v27, %v21827_v30 }
 0x25f   : > { %21822 = vst [vmem:[#allocation11_spill] sm:$0xff] %v20239_v51  ;;  %v17619_v2 = vpack.i.bf16 %v13511_v53, %v21825_v9  ;;  %v21829_v60 = vcombine.high %v21826_v27, %v21827_v30  ;;  %v11548_v5 = vcombine.high %v11508_v22, %v11540_v4  ;;  %v21831_v53 = vld [vmem:[#allocation22_spill] sm:$0xff] }
 0x260   : > { %v17629_v33 = vpack.i.bf16 %v11545_v26, %v21828_v34  ;;  %v17624_v50 = vpack.i.bf16 %v11544_v41, %v11408_v8  ;;  %v21832_v44 = vcombine.low %v21830_v14, %v21831_v53  ;;  %v21833_v22 = vcombine.high %v21830_v14, %v21831_v53 }
 0x261   : > { %v17634_v12 = vpack.i.bf16 %v11546_v59, %v21829_v60  ;;  %v16614_v26 = vpop.f32.mrb[90].mxu0 }
 0x262   : > { %v20263_v17 = vpack.i.bf16 %v11547_v6, %v21832_v44  ;;  %17630 = vrot.lane.b32.xlu0 %v17629_v33, %s17895_s11  ;;  %v20271_v4 = vpack.i.bf16 %v11548_v5, %v21833_v22  ;;  %14713 = vrot.lane.b32.xlu1 %v13513_v3, %s17886_s30  ;;  %v13516_v23 = vcombine.low %v16600_v11, %v16614_v26  ;;  %v7269_v59 = vpop.f32.mrb[91].mxu0 }
 0x263   : > { %v13517_v45 = vcombine.high %v16600_v11, %v16614_v26  ;;  %v16621_v8 = vpop.f32.mrb[90].mxu1  ;;  %v11549_v6 = vcombine.low %v7119_v52, %v7269_v59  ;;  %v11550_v27 = vcombine.high %v7119_v52, %v7269_v59 }
 0x264   : > { %v13532_v9 = vcombine.low %v16607_v36, %v16621_v8  ;;  %v13533_v41 = vcombine.high %v16607_v36, %v16621_v8  ;;  %v7344_v30 = vpop.f32.mrb[91].mxu1  ;;  %v13524_v60 = vrot.slane %v13516_v23, %v18111_v61 }
 0x265   : > { %v13531_v33 = vrot.slane %v13517_v45, %v18111_v61  ;;  %v11565_v44 = vcombine.low %v7194_v13, %v7344_v30  ;;  %v11566_v14 = vcombine.high %v7194_v13, %v7344_v30  ;;  %v11557_v11 = vrot.slane %v11549_v6, %v18111_v61 }
 0x266   : > { %17635 = vrot.lane.b32.xlu0 %v17634_v12, %s17893_s10  ;;  %v13540_v3 = vrot.slane %v13532_v9, %v18111_v61  ;;  %v13547_v5 = vrot.slane %v13533_v41, %v18111_v61  ;;  %v11564_v53 = vrot.slane %v11550_v27, %v18111_v61  ;;  %14777 = vrot.lane.b32.xlu1 %v13514_v48, %s17887_s4 }
 0x267   : > { %v11573_v36 = vrot.slane %v11565_v44, %v18111_v61  ;;  %v11580_v52 = vrot.slane %v11566_v14, %v18111_v61 }
 0x268   : > { %v13580_v22 = vcombine.low %v13524_v60, %v13540_v3  ;;  %v13581_v26 = vcombine.high %v13524_v60, %v13540_v3  ;;  %v13596_v23 = vcombine.low %v13531_v33, %v13547_v5 }
 0x269   : > { %v11613_v13 = vcombine.low %v11557_v11, %v11573_v36  ;;  %v11614_v45 = vcombine.high %v11557_v11, %v11573_v36  ;;  %v11629_v12 = vcombine.low %v11564_v53, %v11580_v52  ;;  %v11630_v8 = vcombine.high %v11564_v53, %v11580_v52  ;;  %v16628_v59 = vpop.f32.mrb[92].mxu0 }
 0x26a   : > { %17620 = vrot.lane.b32.xlu1 %v17619_v2, %s17894_s24  ;;  %v7419_v41 = vpop.f32.mrb[93].mxu0  ;;  %v20290_v30 = vrot.slane %v13581_v26, %v18155_v43  ;;  %v20293_v60 = vrot.slane %v13580_v22, %v18155_v43  ;;  %v20296_v33 = vrot.slane %v13596_v23, %v18155_v43 }
 0x26b   : > { %v16635_v9 = vpop.f32.mrb[92].mxu1  ;;  %v20299_v2 = vrot.slane %v11613_v13, %v18155_v43  ;;  %v20302_v44 = vrot.slane %v11614_v45, %v18155_v43 }
 0x26c   : > { %v7494_v6 = vpop.f32.mrb[93].mxu1 }
 0x26d   : > { %21836 = vst [vmem:[#allocation12_spill] sm:$0xff] %v20299_v2 }
 0x26e   : > { %14841 = vrot.lane.b32.xlu1 %v13515_v62, %s17888_s5  ;;  %v20305_v62 = vrot.slane %v11629_v12, %v18155_v43 }
 0x271   : > { %v16642_v14 = vpop.f32.mrb[94].mxu0 }
 0x272   : > { %17625 = vrot.lane.b32.xlu1 %v17624_v50, %s21835_s8  ;;  %v20308_v50 = vrot.slane %v11630_v8, %v18155_v43  ;;  %v13548_v5 = vcombine.low %v16628_v59, %v16642_v14  ;;  %v13549_v11 = vcombine.high %v16628_v59, %v16642_v14  ;;  %v7569_v22 = vpop.f32.mrb[95].mxu0 }
 0x273   : > { %v14772_v48 = vpop.permute.xlu1 %14771  ;;  %v16649_v3 = vpop.f32.mrb[94].mxu1  ;;  %v11581_v13 = vcombine.low %v7419_v41, %v7569_v22  ;;  %v11582_v34 = vcombine.high %v7419_v41, %v7569_v22 }
 0x274   : > { %v20286_v27 = vpop.permute.xlu0 %14643  ;;  %v13564_v53 = vcombine.low %v16635_v9, %v16649_v3  ;;  %v13565_v36 = vcombine.high %v16635_v9, %v16649_v3  ;;  %v7644_v52 = vpop.f32.mrb[95].mxu1  ;;  %v13556_v45 = vrot.slane %v13548_v5, %v18111_v61  ;;  %v13563_v12 = vrot.slane %v13549_v11, %v18111_v61 }
 0x275   : > { %21834 = vst [vmem:[#allocation14_spill] sm:$0xff] %v20286_v27  ;;  %v11597_v26 = vcombine.low %v7494_v6, %v7644_v52  ;;  %v11598_v23 = vcombine.high %v7494_v6, %v7644_v52  ;;  %v11589_v52 = vrot.slane %v11581_v13, %v18111_v61 }
 0x276   : > { %v13572_v0 = vrot.slane %v13564_v53, %v18111_v61  ;;  %v13579_v8 = vrot.slane %v13565_v36, %v18111_v61  ;;  %17640 = vrot.lane.b32.xlu1 %v20263_v17, %s17896_s9  ;;  %v21837_v53 = vcombine.low %v19560_v56, %v19563_v31  ;;  %v11596_v17 = vrot.slane %v11582_v34, %v18111_v61 }
 0x277   : > { %v17546_v51 = vpop.permute.xlu1 %17545  ;;  %v11605_v59 = vrot.slane %v11597_v26, %v18111_v61  ;;  %v11612_v9 = vrot.slane %v11598_v23, %v18111_v61 }
 0x278   : > { %v14708_v7 = vpop.permute.xlu0 %14707  ;;  %v17548_v6 = vunpack.i.h.bf16 %v17546_v51  ;;  %v13604_v14 = vcombine.low %v13556_v45, %v13572_v0  ;;  %v13605_v3 = vcombine.high %v13556_v45, %v13572_v0  ;;  %v13620_v5 = vcombine.low %v13563_v12, %v13579_v8 }
 0x279   : > { %v15030_v41 = vsel %vm15022_vm0, %v20286_v27, %v14708_v7  ;;  %v17547_v11 = vunpack.i.l.bf16 %v17546_v51  ;;  %v21839_v7 = vcombine.low %v19334_v15, %v19359_v49  ;;  %v16656_v51 = vpop.f32.mrb[96].mxu0  ;;  %v11645_v34 = vcombine.low %v11589_v52, %v11605_v59 }
 0x27a   : > { %v14877_v36 = vsel %vm14869_vm4, %v21837_v53, %v17548_v6  ;;  %v20327_v22 = vsel %vm15039_vm1, %v15030_v41, %v14772_v48  ;;  %17645 = vrot.lane.b32.xlu1 %v20271_v4, %s17897_s17  ;;  %v13619_v56 = vrot.slane %v13605_v3, %v18155_v43  ;;  %v13612_v31 = vrot.slane %v13604_v14, %v18155_v43  ;;  %v7719_v8 = vpop.f32.mrb[97].mxu0 }
 0x27b   : > { %21838 = vst [vmem:[#allocation15_spill] sm:$0xff] %v20327_v22  ;;  %v14876_v26 = vsel %vm14869_vm4, %v21839_v7, %v17547_v11  ;;  %v17551_v0 = vpop.permute.xlu1 %17550  ;;  %v13627_v23 = vrot.slane %v13620_v5, %v18155_v43  ;;  %v11646_v13 = vcombine.high %v11589_v52, %v11605_v59  ;;  %v11661_v48 = vcombine.low %v11596_v17, %v11612_v9  ;;  %v16663_v12 = vpop.f32.mrb[96].mxu1 }
 0x27c   : > { %v11662_v45 = vcombine.high %v11596_v17, %v11612_v9  ;;  %v17553_v15 = vunpack.i.h.bf16 %v17551_v0  ;;  %v17552_v49 = vunpack.i.l.bf16 %v17551_v0  ;;  %v7794_v41 = vpop.f32.mrb[97].mxu1  ;;  %v13631_v6 = vcombine.high %v20290_v30, %v13619_v56 }
 0x27d   : > { %v13629_v4 = vcombine.high %v20293_v60, %v13612_v31  ;;  %v20341_v11 = vrot.slane %v11645_v34, %v18155_v43  ;;  %v20344_v14 = vrot.slane %v11646_v13, %v18155_v43  ;;  %v11669_v3 = vrot.slane %v11661_v48, %v18155_v43 }
 0x27e   : > { %v11676_v59 = vrot.slane %v11662_v45, %v18155_v43  ;;  %v20349_v9 = vsel %vm14886_vm5, %v14876_v26, %v17552_v49  ;;  %v20352_v5 = vsel %vm14886_vm5, %v14877_v36, %v17553_v15  ;;  %14779 = vrot.lane.b32.xlu0 %v13631_v6, %s17887_s4  ;;  %v13630_v53 = vcombine.low %v20290_v30, %v13619_v56  ;;  %v21842_v30 = vld [vmem:[#allocation23_spill] sm:$0xff]  ;;  %v21843_v56 = vld [vmem:[#allocation26_spill] sm:$0xff]  ;;  %v21846_v49 = vld [vmem:[#allocation25_spill] sm:$0xff] }
 0x27f   : > { %21840 = vst [vmem:[#allocation19_spill] sm:$0xff] %v20341_v11  ;;  %21841 = vst [vmem:[#allocation17_spill] sm:$0xff] %v20352_v5  ;;  %14651 = vrot.lane.b32.xlu1 %v13629_v4, %s17885_s29  ;;  %v13628_v17 = vcombine.low %v20293_v60, %v13612_v31  ;;  %v13632_v7 = vcombine.low %v20296_v33, %v13627_v23  ;;  %v11678_v26 = vcombine.high %v20299_v2, %v20341_v11  ;;  %v21868_v11 = vld [vmem:[#allocation5_spill] sm:$0xff] }
 0x280   : > { %v11681_v0 = vcombine.low %v20305_v62, %v11669_v3  ;;  %v11679_v36 = vcombine.low %v20302_v44, %v20344_v14  ;;  %v11682_v34 = vcombine.high %v20305_v62, %v11669_v3  ;;  %v11683_v13 = vcombine.low %v20308_v50, %v11676_v59  ;;  %v21847_v62 = vld [vmem:[#allocation28_spill] sm:$0xff] }
 0x281   : > { %v21844_v48 = vcombine.low %v21842_v30, %v21843_v56  ;;  %v21845_v60 = vcombine.high %v20193_v58, %v20227_v42  ;;  %v11684_v31 = vcombine.high %v20308_v50, %v11676_v59  ;;  %v16670_v15 = vpop.f32.mrb[98].mxu0  ;;  %v21848_v6 = vcombine.low %v21846_v49, %v21847_v62  ;;  %v21851_v56 = vld [vmem:[#allocation30_spill] sm:$0xff]  ;;  %v21852_v50 = vld [vmem:[#allocation29_spill] sm:$0xff] }
 0x282   : > { %v21849_v3 = vcombine.low %v20200_v57, %v20230_v28  ;;  %v21850_v30 = vcombine.high %v21846_v49, %v21847_v62  ;;  %v21853_v59 = vcombine.low %v21851_v56, %v21852_v50  ;;  %v7869_v23 = vpop.f32.mrb[99].mxu0 }
 0x283   : > { %v17649_v45 = vpack.i.bf16 %v13628_v17, %v21844_v48  ;;  %v17654_v33 = vpack.i.bf16 %v11678_v26, %v21845_v60  ;;  %14715 = vrot.lane.b32.xlu1 %v13630_v53, %s17886_s30  ;;  %v17664_v4 = vpack.i.bf16 %v11681_v0, %v21848_v6  ;;  %v13633_v53 = vcombine.low %v16656_v51, %v16670_v15  ;;  %v16677_v52 = vpop.f32.mrb[98].mxu1 }
 0x284   : > { %v17659_v17 = vpack.i.bf16 %v11679_v36, %v21849_v3  ;;  %v17669_v26 = vpack.i.bf16 %v11682_v34, %v21850_v30  ;;  %v17674_v48 = vpack.i.bf16 %v11683_v13, %v21853_v59  ;;  %v13634_v60 = vcombine.high %v16656_v51, %v16670_v15  ;;  %v7944_v49 = vpop.f32.mrb[99].mxu1 }
 0x285   : > { %17650 = vrot.lane.b32.xlu0 %v17649_v45, %s17894_s24  ;;  %v21854_v0 = vcombine.high %v21851_v56, %v21852_v50  ;;  %v13649_v57 = vcombine.low %v16663_v12, %v16677_v52  ;;  %v13650_v28 = vcombine.high %v16663_v12, %v16677_v52  ;;  %v11685_v36 = vcombine.low %v7719_v8, %v7869_v23 }
 0x286   : > { %v11686_v3 = vcombine.high %v7719_v8, %v7869_v23  ;;  %v13641_v34 = vrot.slane %v13633_v53, %v18111_v61  ;;  %v13648_v62 = vrot.slane %v13634_v60, %v18111_v61  ;;  %v11701_v13 = vcombine.low %v7794_v41, %v7944_v49 }
 0x287   : > { %v17679_v6 = vpack.i.bf16 %v11684_v31, %v21854_v0  ;;  %v11702_v30 = vcombine.high %v7794_v41, %v7944_v49  ;;  %v13657_v45 = vrot.slane %v13649_v57, %v18111_v61  ;;  %v13664_v51 = vrot.slane %v13650_v28, %v18111_v61  ;;  %17655 = vrot.lane.b32.xlu1 %v17654_v33, %s17889_s6  ;;  %v21856_v49 = vld [vmem:[#allocation54_spill] sm:$0xff] }
 0x288   : > { %v11693_v15 = vrot.slane %v11685_v36, %v18111_v61  ;;  %v20400_v56 = vrot.slane %v11686_v3, %v18111_v61  ;;  %v11709_v12 = vrot.slane %v11701_v13, %v18111_v61  ;;  %v21855_v36 = vld [vmem:[#allocation52_spill] sm:$0xff] }
 0x289   : > { %v20405_v8 = vrot.slane %v11702_v30, %v18111_v61  ;;  %14843 = vrot.lane.b32.xlu0 %v13632_v7, %s17888_s5  ;;  %v13697_v52 = vcombine.low %v13641_v34, %v13657_v45  ;;  %v13698_v41 = vcombine.high %v13641_v34, %v13657_v45  ;;  %v13713_v31 = vcombine.low %v13648_v62, %v13664_v51  ;;  %v16684_v33 = vpop.f32.mrb[100].mxu0 }
 0x28a   : > { %v11749_v23 = vcombine.low %v11693_v15, %v11709_v12  ;;  %v11750_v50 = vcombine.high %v11693_v15, %v11709_v12  ;;  %v8019_v0 = vpop.f32.mrb[101].mxu0 }
 0x28b   : > { %v11765_v59 = vcombine.low %v20400_v56, %v20405_v8  ;;  %17660 = vrot.lane.b32.xlu1 %v17659_v17, %s17890_s7  ;;  %v16691_v60 = vpop.f32.mrb[100].mxu1  ;;  %v13705_v15 = vrot.slane %v13697_v52, %v18155_v43 }
 0x28c   : > { %v8094_v57 = vpop.f32.mrb[101].mxu1 }
 0x28d   : > { %17665 = vrot.lane.b32.xlu0 %v17664_v4, %s17895_s11 }
 0x28f   : > { %17675 = vrot.lane.b32.xlu1 %v17674_v48, %s17896_s9 }
 0x290   : > { %v20416_v7 = vpop.permute.xlu0 %14645 }
 0x291   : > { %17670 = vrot.lane.b32.xlu0 %v17669_v26, %s17893_s10  ;;  %v16698_v28 = vpop.f32.mrb[102].mxu0 }
 0x292   : > { %v13665_v4 = vcombine.low %v16684_v33, %v16698_v28  ;;  %v13666_v13 = vcombine.high %v16684_v33, %v16698_v28  ;;  %v8169_v26 = vpop.f32.mrb[103].mxu0 }
 0x293   : > { %v16705_v17 = vpop.f32.mrb[102].mxu1 }
 0x294   : > { %v20421_v62 = vpop.permute.xlu1 %17560  ;;  %v13681_v30 = vcombine.low %v16691_v60, %v16705_v17  ;;  %v13682_v45 = vcombine.high %v16691_v60, %v16705_v17  ;;  %v8244_v51 = vpop.f32.mrb[103].mxu1  ;;  %v13673_v12 = vrot.slane %v13665_v4, %v18111_v61  ;;  %v13680_v3 = vrot.slane %v13666_v13, %v18111_v61 }
 0x295   : > { %17680 = vrot.lane.b32.xlu0 %v17679_v6, %s17897_s17  ;;  %v17562_v48 = vunpack.i.l.bf16 %v20421_v62  ;;  %v11733_v34 = vcombine.low %v8094_v57, %v8244_v51  ;;  %v11734_v53 = vcombine.high %v8094_v57, %v8244_v51  ;;  %v14710_v6 = vpop.permute.xlu0 %14709  ;;  %v20434_v60 = vrot.slane %v13698_v41, %v18155_v43 }
 0x296   : > { %v13689_v27 = vrot.slane %v13681_v30, %v18111_v61  ;;  %v13696_v22 = vrot.slane %v13682_v45, %v18111_v61  ;;  %v11717_v17 = vcombine.low %v8019_v0, %v8169_v26  ;;  %v11718_v4 = vcombine.high %v8019_v0, %v8169_v26 }
 0x297   : > { %v20431_v33 = vsel %vm14903_vm6, %v20349_v9, %v17562_v48  ;;  %v11741_v52 = vrot.slane %v11733_v34, %v18111_v61  ;;  %v11748_v28 = vrot.slane %v11734_v53, %v18111_v61  ;;  %v20439_v30 = vrot.slane %v13713_v31, %v18155_v43 }
 0x298   : > { %21857 = vst [vmem:[#allocation21_spill] sm:$0xff] %v20431_v33  ;;  %v13721_v13 = vcombine.low %v13673_v12, %v13689_v27  ;;  %v13722_v57 = vcombine.high %v13673_v12, %v13689_v27  ;;  %v13737_v51 = vcombine.low %v13680_v3, %v13696_v22  ;;  %v20442_v45 = vrot.slane %v11749_v23, %v18155_v43 }
 0x299   : > { %v20445_v9 = vrot.slane %v11750_v50, %v18155_v43  ;;  %v11725_v41 = vrot.slane %v11717_v17, %v18111_v61  ;;  %v11732_v34 = vrot.slane %v11718_v4, %v18111_v61  ;;  %v11773_v53 = vrot.slane %v11765_v59, %v18155_v43 }
 0x29a   : > { %v16712_v0 = vpop.f32.mrb[104].mxu0  ;;  %v13729_v27 = vrot.slane %v13721_v13, %v18155_v43  ;;  %v20452_v22 = vrot.slane %v13722_v57, %v18155_v43  ;;  %v20455_v31 = vrot.slane %v13737_v51, %v18155_v43 }
 0x29b   : > { %v14774_v48 = vpop.permute.xlu0 %14773  ;;  %v11781_v23 = vcombine.low %v11725_v41, %v11741_v52  ;;  %v11782_v3 = vcombine.high %v11725_v41, %v11741_v52  ;;  %v11797_v50 = vcombine.low %v11732_v34, %v11748_v28  ;;  %v11798_v26 = vcombine.high %v11732_v34, %v11748_v28  ;;  %v16719_v12 = vpop.f32.mrb[104].mxu1 }
 0x29c   : > { %v8319_v17 = vpop.f32.mrb[105].mxu0  ;;  %v8394_v5 = vpop.f32.mrb[105].mxu1  ;;  %v13746_v4 = vcombine.high %v13705_v15, %v13729_v27  ;;  %v13747_v59 = vcombine.low %v20434_v60, %v20452_v22  ;;  %v13748_v13 = vcombine.high %v20434_v60, %v20452_v22  ;;  %v13745_v33 = vcombine.low %v13705_v15, %v13729_v27  ;;  %v21859_v60 = vld [vmem:[#allocation31_spill] sm:$0xff]  ;;  %v21860_v27 = vld [vmem:[#allocation33_spill] sm:$0xff] }
 0x29d   : > { %v20462_v57 = vrot.slane %v11781_v23, %v18155_v43  ;;  %v20465_v51 = vrot.slane %v11782_v3, %v18155_v43  ;;  %v11805_v52 = vrot.slane %v11797_v50, %v18155_v43  ;;  %v11812_v28 = vrot.slane %v11798_v26, %v18155_v43 }
 0x29e   : > { %v21858_v34 = vcombine.high %v20400_v56, %v20405_v8  ;;  %v15031_v15 = vsel %vm15022_vm0, %v20416_v7, %v14710_v6  ;;  %14653 = vrot.lane.b32.xlu0 %v13746_v4, %s17885_s29  ;;  %v21861_v22 = vcombine.low %v21859_v60, %v21860_v27  ;;  %v21862_v27 = vld [vmem:[#allocation32_spill] sm:$0xff]  ;;  %v21867_v6 = vunpack.i.l.bf16 %v21855_v36  ;;  %v21869_v4 = vld [vmem:[#allocation6_spill] sm:$0xff] }
 0x29f   : > { %v20469_v41 = vpop.permute.xlu0 %17555  ;;  %v11817_v26 = vcombine.low %v11773_v53, %v11805_v52  ;;  %v11818_v25 = vcombine.high %v11773_v53, %v11805_v52  ;;  %v11816_v56 = vcombine.high %v20445_v9, %v20465_v51  ;;  %v21870_v2 = vcombine.low %v21868_v11, %v21869_v4 }
 0x2a0   : > { %v11780_v55 = vrot.slane %v21858_v34, %v18155_v43  ;;  %v17684_v23 = vpack.i.bf16 %v13745_v33, %v21861_v22  ;;  %v15048_v33 = vsel %vm15039_vm1, %v15031_v15, %v14774_v48  ;;  %v21863_v22 = vld [vmem:[#allocation34_spill] sm:$0xff] }
 0x2a1   : > { %v21864_v3 = vcombine.low %v21862_v27, %v21863_v22  ;;  %v21865_v53 = vcombine.high %v21862_v27, %v21863_v22  ;;  %v14870_v48 = vsel %vm14869_vm4, %v21870_v2, %v21867_v6  ;;  %v21872_v27 = vld [vmem:[#allocation35_spill] sm:$0xff] }
 0x2a2   : > { %v11819_v8 = vcombine.low %v11780_v55, %v11812_v28  ;;  %v11820_v34 = vcombine.high %v11780_v55, %v11812_v28  ;;  %v21866_v55 = vcombine.high %v20302_v44, %v20344_v14  ;;  %14717 = vrot.lane.b32.xlu0 %v13747_v59, %s17886_s30 }
 0x2a3   : > { %v14838_v60 = vpop.permute.xlu0 %14837  ;;  %v17694_v50 = vpack.i.bf16 %v11817_v26, %v21864_v3  ;;  %v17699_v52 = vpack.i.bf16 %v11818_v25, %v21865_v53  ;;  %v16726_v3 = vpop.f32.mrb[106].mxu0  ;;  %v21871_v26 = vld [vmem:[#allocation36_spill] sm:$0xff] }
 0x2a4   : > { %v20501_v28 = vpack.i.bf16 %v11816_v56, %v21866_v55  ;;  %v15065_v15 = vsel %vm15056_vm2, %v15048_v33, %v14838_v60  ;;  %v21873_v25 = vcombine.low %v21871_v26, %v21872_v27  ;;  %v21874_v44 = vcombine.high %v21871_v26, %v21872_v27  ;;  %v16733_v6 = vpop.f32.mrb[106].mxu1  ;;  %v8469_v4 = vpop.f32.mrb[107].mxu0 }
 0x2a5   : > { %v21875_v56 = vunpack.i.l.bf16 %v21856_v49  ;;  %17695 = vrot.lane.b32.xlu1 %v17694_v50, %s17895_s11  ;;  %15449 = vmatprep.mubr.msk.f32.mxu1 %vm15095_vm3, %v15065_v15  ;;  %v13750_v2 = vcombine.low %v16712_v0, %v16726_v3  ;;  %v13751_v59 = vcombine.high %v16712_v0, %v16726_v3  ;;  %v13766_v33 = vcombine.low %v16719_v12, %v16733_v6  ;;  %v8544_v60 = vpop.f32.mrb[107].mxu1 }
 0x2a6   : > { %v20514_v22 = vpack.i.bf16 %v11819_v8, %v21873_v25  ;;  %v20519_v14 = vpack.i.bf16 %v11820_v34, %v21874_v44  ;;  %v13767_v8 = vcombine.high %v16719_v12, %v16733_v6  ;;  %v11821_v53 = vcombine.low %v8319_v17, %v8469_v4  ;;  %14781 = vrot.lane.b32.xlu0 %v13748_v13, %s17887_s4 }
 0x2a7   : > { %v14887_v11 = vsel %vm14886_vm5, %v14870_v48, %v21875_v56  ;;  %v11822_v55 = vcombine.high %v8319_v17, %v8469_v4  ;;  %v20527_v34 = vrot.slane %v13750_v2, %v18111_v61  ;;  %v20530_v26 = vrot.slane %v13751_v59, %v18111_v61  ;;  %v20532_v50 = vpop.permute.xlu0 %17565  ;;  %v20562_v59 = vpop.permute.xlu1 %17570 }
 0x2a8   : > { %v11837_v48 = vcombine.low %v8394_v5, %v8544_v60  ;;  %v11838_v27 = vcombine.high %v8394_v5, %v8544_v60  ;;  %v17512_v15 = vunpack.i.l.bf16 %v19654_v38  ;;  %v20536_v0 = vrot.slane %v13766_v33, %v18111_v61  ;;  %v21876_v33 = vld [vmem:[#allocation53_spill] sm:$0xff] }
 0x2a9   : > { %v20539_v12 = vrot.slane %v13767_v8, %v18111_v61  ;;  %v17567_v17 = vunpack.i.l.bf16 %v20532_v50  ;;  %v20550_v5 = vrot.slane %v11821_v53, %v18111_v61  ;;  %v20553_v44 = vrot.slane %v11822_v55, %v18111_v61  ;;  %17700 = vrot.lane.b32.xlu1 %v17699_v52, %s17893_s10 }
 0x2aa   : > { %v20544_v3 = vrot.slane %v11837_v48, %v18111_v61  ;;  %v20547_v25 = vrot.slane %v11838_v27, %v18111_v61  ;;  %v14904_v60 = vsel %vm14903_vm6, %v14887_v11, %v17512_v15  ;;  %17685 = vrot.lane.b32.xlu0 %v17684_v23, %s17894_s24  ;;  %v17572_v2 = vunpack.i.l.bf16 %v20562_v59 }
 0x2ab   : > { %v20572_v8 = vpop.permute.xlu0 %17575  ;;  %v16740_v53 = vpop.f32.mrb[108].mxu0  ;;  %v14921_v55 = vsel %vm14920_vm10, %v14904_v60, %v17567_v17  ;;  %v15024_v6 = vsel %vm15022_vm0, %v21876_v33, %v19628_v24  ;;  %v17503_v23 = vunpack.i.h.bf16 %v21855_v36  ;;  %v21877_v60 = vcombine.low %v20439_v30, %v20455_v31 }
 0x2ac   : > { %v17577_v48 = vunpack.i.l.bf16 %v20572_v8  ;;  %v16747_v27 = vpop.f32.mrb[108].mxu1  ;;  %v8619_v4 = vpop.f32.mrb[109].mxu0  ;;  %v14938_v15 = vsel %vm14937_vm11, %v14921_v55, %v17572_v2  ;;  %v17508_v56 = vunpack.i.h.bf16 %v21856_v49  ;;  %v17557_v13 = vunpack.i.l.bf16 %v20469_v41 }
 0x2ad   : > { %v8694_v52 = vpop.f32.mrb[109].mxu1  ;;  %v15041_v36 = vsel %vm15039_vm1, %v15024_v6, %v21878_v39  ;;  %v14871_v30 = vsel %vm14869_vm4, %v21881_v40, %v17503_v23  ;;  %v17513_v6 = vunpack.i.h.bf16 %v19654_v38 }
 0x2ae   : > { %14845 = vrot.lane.b32.xlu0 %v21877_v60, %s17888_s5  ;;  %v14955_v24 = vsel %vm14954_vm12, %v14938_v15, %v17577_v48  ;;  %v14888_v39 = vsel %vm14886_vm5, %v14871_v30, %v17508_v56  ;;  %v15058_v40 = vsel %vm15056_vm2, %v15041_v36, %v21882_v21 }
 0x2af   : > { %v20582_v11 = vpop.permute.xlu0 %17580 }
 0x2b0   : > { %v17582_v17 = vunpack.i.l.bf16 %v20582_v11 }
 0x2b2   : > { %v14972_v2 = vsel %vm14971_vm13, %v14955_v24, %v17582_v17  ;;  %v20602_v31 = vpop.permute.xlu1 %14775  ;;  %17690 = vrot.lane.b32.xlu0 %v20501_v28, %s21835_s8 }
 0x2b3   : > { %v14989_v55 = vsel %vm14988_vm14, %v14972_v2, %v17557_v13  ;;  %v20604_v49 = vpop.permute.xlu0 %14647  ;;  %v16754_v13 = vpop.f32.mrb[110].mxu0 }
 0x2b4   : > { %v15006_v48 = vsel %vm15005_vm15, %v14989_v55, %v19416_v54  ;;  %v16761_v15 = vpop.f32.mrb[110].mxu1  ;;  %v13782_v1 = vcombine.low %v16740_v53, %v16754_v13  ;;  %v13783_v23 = vcombine.high %v16740_v53, %v16754_v13  ;;  %v8769_v24 = vpop.f32.mrb[111].mxu0 }
 0x2b5   : > { %15213 = vmatmul.mubr.f32.vlgmr.msra.gmra.mrb[128].mxu0 %v15006_v48  ;;  %v13798_v17 = vcombine.low %v16747_v27, %v16761_v15  ;;  %v13799_v60 = vcombine.high %v16747_v27, %v16761_v15  ;;  %v8844_v54 = vpop.f32.mrb[111].mxu1  ;;  %v11853_v55 = vcombine.low %v8619_v4, %v8769_v24  ;;  %v11854_v56 = vcombine.high %v8619_v4, %v8769_v24 }
 0x2b6   : > { %15442 = vmatprep.mubr.msk.f32.mxu0 %vm15095_vm3, %v15058_v40  ;;  %v11869_v2 = vcombine.low %v8694_v52, %v8844_v54  ;;  %v11870_v28 = vcombine.high %v8694_v52, %v8844_v54  ;;  %v13790_v38 = vrot.slane %v13782_v1, %v18111_v61  ;;  %v13797_v30 = vrot.slane %v13783_v23, %v18111_v61 }
 0x2b7   : > { %v13806_v48 = vrot.slane %v13798_v17, %v18111_v61  ;;  %v13813_v36 = vrot.slane %v13799_v60, %v18111_v61  ;;  %v20619_v21 = vpop.permute.xlu0 %14711  ;;  %17705 = vrot.lane.b32.xlu0 %v20514_v22, %s17896_s9  ;;  %v20626_v27 = vsel %vm14903_vm6, %v14888_v39, %v17513_v6  ;;  %v15025_v4 = vsel %vm15022_vm0, %v19692_v35, %v19732_v10 }
 0x2b8   : > { %v20621_v53 = vpop.permute.xlu1 %17585  ;;  %v11877_v52 = vrot.slane %v11869_v2, %v18111_v61  ;;  %v20633_v13 = vrot.slane %v11870_v28, %v18111_v61  ;;  %v20637_v15 = vsel %vm15039_vm1, %v15025_v4, %v19762_v18  ;;  %v17563_v22 = vunpack.i.h.bf16 %v20421_v62 }
 0x2b9   : > { %v13838_v40 = vcombine.low %v13790_v38, %v13806_v48  ;;  %v13839_v1 = vcombine.high %v13790_v38, %v13806_v48  ;;  %v13854_v23 = vcombine.low %v13797_v30, %v13813_v36  ;;  %v11861_v6 = vrot.slane %v11853_v55, %v18111_v61 }
 0x2ba   : > { %v20643_v10 = vrot.slane %v11854_v56, %v18111_v61  ;;  %v21883_v62 = vcombine.high %v20527_v34, %v20536_v0  ;;  %v21884_v48 = vcombine.low %v20527_v34, %v20536_v0  ;;  %v21885_v4 = vcombine.low %v20550_v5, %v20544_v3 }
 0x2bb   : > { %v13846_v60 = vrot.slane %v13838_v40, %v18155_v43  ;;  %17710 = vrot.lane.b32.xlu0 %v20519_v14, %s17897_s17  ;;  %v20651_v18 = vpop.f32.mrb[112].mxu0  ;;  %v13853_v2 = vrot.slane %v13839_v1, %v18155_v43  ;;  %v11917_v28 = vcombine.low %v11861_v6, %v11877_v52  ;;  %v11918_v55 = vcombine.high %v11861_v6, %v11877_v52 }
 0x2bc   : > { %v20647_v54 = vpop.permute.xlu1 %14839  ;;  %v13829_v24 = vrot.slane %v21883_v62, %v18155_v43  ;;  %v11933_v56 = vcombine.low %v20643_v10, %v20633_v13  ;;  %v20664_v14 = vpop.f32.mrb[112].mxu1  ;;  %v13822_v36 = vrot.slane %v21884_v48, %v18155_v43  ;;  %v20674_v52 = vrot.slane %v21885_v4, %v18155_v43 }
 0x2bd   : > { %v20662_v30 = vpop.permute.xlu0 %17590  ;;  %v20676_v40 = vpop.f32.mrb[113].mxu1  ;;  %v13861_v62 = vrot.slane %v13854_v23, %v18155_v43  ;;  %v20682_v17 = vrot.slane %v11917_v28, %v18155_v43  ;;  %v20685_v38 = vrot.slane %v11918_v55, %v18155_v43  ;;  %v17568_v48 = vunpack.i.h.bf16 %v20532_v50 }
 0x2be   : > { %v20678_v1 = vpop.f32.mrb[113].mxu0  ;;  %v13865_v6 = vcombine.high %v13829_v24, %v13853_v2  ;;  %v20688_v34 = vrot.slane %v11933_v56, %v18155_v43  ;;  %v17592_v0 = vunpack.i.l.bf16 %v20662_v30  ;;  %v13863_v39 = vcombine.high %v13822_v36, %v13846_v60 }
 0x2bf   : > { %21886 = vst [vmem:[#allocation18_spill] sm:$0xff] %v20682_v17  ;;  %v13864_v42 = vcombine.low %v13829_v24, %v13853_v2  ;;  %v21887_v23 = vcombine.low %v20530_v26, %v20539_v12  ;;  %v21888_v55 = vcombine.high %v20550_v5, %v20544_v3  ;;  %v21889_v50 = vcombine.low %v20553_v44, %v20547_v25  ;;  %v21892_v24 = vld [vmem:[#allocation38_spill] sm:$0xff] }
 0x2c0   : > { %v20692_v4 = vpop.permute.xlu1 %17600  ;;  %14783 = vrot.lane.b32.xlu1 %v13865_v6, %s17887_s4  ;;  %v13862_v6 = vcombine.low %v13822_v36, %v13846_v60  ;;  %14655 = vrot.lane.b32.xlu0 %v13863_v39, %s17885_s29  ;;  %v11950_v5 = vcombine.high %v20674_v52, %v20682_v17  ;;  %v17578_v39 = vunpack.i.h.bf16 %v20572_v8 }
 0x2c1   : > { %v13837_v28 = vrot.slane %v21887_v23, %v18155_v43  ;;  %v20703_v56 = vrot.slane %v21888_v55, %v18155_v43  ;;  %v20709_v58 = vrot.slane %v21889_v50, %v18155_v43  ;;  %v20713_v2 = vpop.permute.xlu0 %17595  ;;  %v17602_v26 = vunpack.i.l.bf16 %v20692_v4  ;;  %v21891_v50 = vld [vmem:[#allocation37_spill] sm:$0xff] }
 0x2c2   : > { %v17597_v12 = vunpack.i.l.bf16 %v20713_v2  ;;  %v21890_v23 = vcombine.low %v19765_v16, %v19819_v47  ;;  %v21893_v35 = vcombine.low %v21891_v50, %v21892_v24  ;;  %v21894_v16 = vcombine.high %v20442_v45, %v20462_v57 }
 0x2c3   : > { %v13866_v3 = vcombine.low %v13837_v28, %v13861_v62  ;;  %v11953_v60 = vcombine.low %v20709_v58, %v20688_v34  ;;  %v16782_v17 = vpop.f32.mrb[114].mxu0 }
 0x2c4   : > { %v14878_v55 = vsel %vm14869_vm4, %v21890_v23, %v17592_v0  ;;  %v17714_v63 = vpack.i.bf16 %v13862_v6, %v21893_v35  ;;  %v20733_v28 = vpop.permute.xlu1 %17605  ;;  %v17719_v47 = vpack.i.bf16 %v11950_v5, %v21894_v16  ;;  %v17583_v0 = vunpack.i.h.bf16 %v20582_v11  ;;  %14719 = vrot.lane.b32.xlu0 %v13864_v42, %s17886_s30 }
 0x2c5   : > { %v14895_v62 = vsel %vm14886_vm5, %v14878_v55, %v17597_v12  ;;  %v17607_v6 = vunpack.i.l.bf16 %v20733_v28  ;;  %v20743_v23 = vpop.permute.xlu0 %17610  ;;  %v13867_v8 = vcombine.low %v20651_v18, %v16782_v17  ;;  %v16789_v12 = vpop.f32.mrb[114].mxu1  ;;  %v15032_v5 = vsel %vm15022_vm0, %v20604_v49, %v20619_v21 }
 0x2c6   : > { %v14912_v24 = vsel %vm14903_vm6, %v14895_v62, %v17563_v22  ;;  %17715 = vrot.lane.b32.xlu1 %v17714_v63, %s17894_s24  ;;  %v14922_v55 = vsel %vm14920_vm10, %v20626_v27, %v17602_v26  ;;  %v17612_v11 = vunpack.i.l.bf16 %v20743_v23  ;;  %v13868_v22 = vcombine.high %v20651_v18, %v16782_v17  ;;  %v9144_v50 = vpop.f32.mrb[115].mxu1  ;;  %v9069_v62 = vpop.f32.mrb[115].mxu0 }
 0x2c7   : > { %v14939_v63 = vsel %vm14937_vm11, %v14922_v55, %v17607_v6  ;;  %v20757_v16 = vrot.slane %v13867_v8, %v18111_v61  ;;  %v13883_v35 = vcombine.low %v20664_v14, %v16789_v12  ;;  %v13884_v21 = vcombine.high %v20664_v14, %v16789_v12 }
 0x2c8   : > { %v14929_v36 = vsel %vm14920_vm10, %v14912_v24, %v17568_v48  ;;  %v20763_v27 = vrot.slane %v13868_v22, %v18111_v61  ;;  %v11973_v42 = vcombine.low %v20676_v40, %v9144_v50  ;;  %v11974_v17 = vcombine.high %v20676_v40, %v9144_v50  ;;  %v20767_v18 = vpop.permute.xlu1 %17615  ;;  %17720 = vrot.lane.b32.xlu0 %v17719_v47, %s17889_s6 }
 0x2c9   : > { %v14956_v26 = vsel %vm14954_vm12, %v14939_v63, %v17612_v11  ;;  %v20771_v6 = vrot.slane %v13883_v35, %v18111_v61  ;;  %v20774_v8 = vrot.slane %v13884_v21, %v18111_v61  ;;  %v17617_v14 = vunpack.i.l.bf16 %v20767_v18 }
 0x2ca   : > { %14847 = vrot.lane.b32.xlu1 %v13866_v3, %s17888_s5  ;;  %v20779_v48 = vrot.slane %v11973_v42, %v18111_v61  ;;  %v20782_v24 = vrot.slane %v11974_v17, %v18111_v61  ;;  %v11957_v40 = vcombine.low %v20678_v1, %v9069_v62  ;;  %v11958_v12 = vcombine.high %v20678_v1, %v9069_v62 }
 0x2cb   : > { %v13931_v35 = vcombine.low %v20757_v16, %v20771_v6  ;;  %v13932_v55 = vcombine.high %v20757_v16, %v20771_v6  ;;  %v13947_v3 = vcombine.low %v20763_v27, %v20774_v8  ;;  %v21895_v11 = vunpack.i.h.bf16 %v20562_v59  ;;  %v16796_v63 = vpop.f32.mrb[116].mxu0 }
 0x2cc   : > { %v20797_v50 = vrot.slane %v11957_v40, %v18111_v61  ;;  %v20800_v1 = vrot.slane %v11958_v12, %v18111_v61  ;;  %v14973_v62 = vsel %vm14971_vm13, %v14956_v26, %v17617_v14  ;;  %v17587_v16 = vunpack.i.l.bf16 %v20621_v53  ;;  %v16803_v17 = vpop.f32.mrb[116].mxu1  ;;  %v9219_v6 = vpop.f32.mrb[117].mxu0  ;;  %v21899_v12 = vld [vmem:[#allocation40_spill] sm:$0xff] }
 0x2cd   : > { %v14946_v22 = vsel %vm14937_vm11, %v14929_v36, %v21895_v11  ;;  %v21896_v21 = vcombine.high %v20643_v10, %v20633_v13  ;;  %v15049_v36 = vsel %vm15039_vm1, %v15032_v5, %v20602_v31  ;;  %v9294_v10 = vpop.f32.mrb[117].mxu1  ;;  %v21897_v40 = vunpack.i.h.bf16 %v20469_v41  ;;  %v21898_v5 = vld [vmem:[#allocation42_spill] sm:$0xff] }
 0x2ce   : > { %v14963_v47 = vsel %vm14954_vm12, %v14946_v22, %v17578_v39  ;;  %v12021_v39 = vcombine.low %v20797_v50, %v20779_v48  ;;  %v12022_v26 = vcombine.high %v20797_v50, %v20779_v48  ;;  %v12037_v14 = vcombine.low %v20800_v1, %v20782_v24 }
 0x2cf   : > { %v11948_v59 = vrot.slane %v21896_v21, %v18155_v43  ;;  %v14980_v42 = vsel %vm14971_vm13, %v14963_v47, %v17583_v0  ;;  %v12038_v13 = vcombine.high %v20800_v1, %v20782_v24  ;;  %v14990_v0 = vsel %vm14988_vm14, %v14973_v62, %v17587_v16  ;;  %v21913_v1 = vld [vmem:[#allocation45_spill] sm:$0xff] }
 0x2d0   : > { %v14997_v31 = vsel %vm14988_vm14, %v14980_v42, %v21897_v40  ;;  %v21900_v11 = vcombine.low %v21898_v5, %v21899_v12  ;;  %v21901_v22 = vcombine.low %v20445_v9, %v20465_v51  ;;  %v21902_v50 = vcombine.low %v20703_v56, %v20685_v38 }
 0x2d1   : > { %v15059_v41 = vsel %vm15056_vm2, %v20637_v15, %v19794_v19  ;;  %v21903_v62 = vcombine.high %v20553_v44, %v20547_v25  ;;  %v15066_v21 = vsel %vm15056_vm2, %v15049_v36, %v20647_v54  ;;  %v15007_v9 = vsel %vm15005_vm15, %v14990_v0, %v21876_v33  ;;  %v20857_v15 = vpop.permute.xlu1 %14649  ;;  %v21906_v54 = vld [vmem:[#allocation43_spill] sm:$0xff]  ;;  %v21907_v36 = vld [vmem:[#allocation41_spill] sm:$0xff] }
 0x2d2   : > { %v17729_v48 = vpack.i.bf16 %v11953_v60, %v21900_v11  ;;  %v17724_v47 = vpack.i.bf16 %v21902_v50, %v21901_v22  ;;  %v15014_v60 = vsel %vm15005_vm15, %v14997_v31, %v20416_v7  ;;  %v21904_v19 = vcombine.high %v21898_v5, %v21899_v12  ;;  %15218 = vmatmul.mubr.f32.gmra.mrb[130].mxu0 %v15007_v9 }
 0x2d3   : > { %v11916_v16 = vrot.slane %v21903_v62, %v18155_v43  ;;  %v21905_v51 = vcombine.high %v20709_v58, %v20688_v34  ;;  %15253 = vmatmul.mubr.f32.vlgmr.msra.gmra.mrb[128].mxu1 %v15014_v60  ;;  %v11952_v33 = vcombine.high %v20703_v56, %v20685_v38  ;;  %15443 = vmatprep.mubr.msk.f32.mxu0 %vm15095_vm3, %v15059_v41  ;;  %v16810_v31 = vpop.f32.mrb[118].mxu0  ;;  %v17517_v12 = vunpack.i.l.bf16 %v19938_v32 }
 0x2d4   : > { %17730 = vrot.lane.b32.xlu1 %v17729_v48, %s17895_s11  ;;  %17725 = vrot.lane.b32.xlu0 %v17724_v47, %s17890_s7  ;;  %v21908_v42 = vcombine.low %v21906_v54, %v21907_v36  ;;  %v21909_v58 = vcombine.high %v21906_v54, %v21907_v36  ;;  %v13899_v0 = vcombine.low %v16796_v63, %v16810_v31  ;;  %v9369_v5 = vpop.f32.mrb[119].mxu0  ;;  %v16817_v11 = vpop.f32.mrb[118].mxu1 }
 0x2d5   : > { %v17734_v25 = vpack.i.bf16 %v21905_v51, %v21904_v19  ;;  %v11955_v44 = vcombine.low %v11916_v16, %v11948_v59  ;;  %v11956_v7 = vcombine.high %v11916_v16, %v11948_v59  ;;  %15450 = vmatprep.mubr.msk.f32.mxu1 %vm15095_vm3, %v15066_v21  ;;  %v13900_v59 = vcombine.high %v16796_v63, %v16810_v31  ;;  %v20872_v48 = vpop.permute.xlu1 %14713  ;;  %v9444_v21 = vpop.f32.mrb[119].mxu1 }
 0x2d6   : > { %v11989_v22 = vcombine.low %v9219_v6, %v9369_v5  ;;  %v11990_v50 = vcombine.high %v9219_v6, %v9369_v5  ;;  %v13915_v47 = vcombine.low %v16803_v17, %v16817_v11  ;;  %v13916_v41 = vcombine.high %v16803_v17, %v16817_v11 }
 0x2d7   : > { %v17739_v40 = vpack.i.bf16 %v11955_v44, %v21908_v42  ;;  %v17744_v34 = vpack.i.bf16 %v11956_v7, %v21909_v58  ;;  %v13907_v62 = vrot.slane %v13899_v0, %v18111_v61  ;;  %v13914_v16 = vrot.slane %v13900_v59, %v18111_v61 }
 0x2d8   : > { %17735 = vrot.lane.b32.xlu1 %v17734_v25, %s17893_s10  ;;  %v13939_v60 = vrot.slane %v13931_v35, %v18155_v43  ;;  %v20878_v63 = vrot.slane %v13932_v55, %v18155_v43  ;;  %v12005_v9 = vcombine.low %v9294_v10, %v9444_v21  ;;  %v12006_v19 = vcombine.high %v9294_v10, %v9444_v21 }
 0x2d9   : > { %17740 = vrot.lane.b32.xlu0 %v17739_v40, %s17896_s9  ;;  %v13923_v51 = vrot.slane %v13915_v47, %v18111_v61  ;;  %v13930_v6 = vrot.slane %v13916_v41, %v18111_v61  ;;  %v11997_v17 = vrot.slane %v11989_v22, %v18111_v61  ;;  %v12004_v25 = vrot.slane %v11990_v50, %v18111_v61  ;;  %v20896_v7 = vpop.permute.xlu1 %14777 }
 0x2da   : > { %v20889_v35 = vrot.slane %v13947_v3, %v18155_v43  ;;  %v20892_v55 = vrot.slane %v12021_v39, %v18155_v43  ;;  %v12013_v10 = vrot.slane %v12005_v9, %v18111_v61  ;;  %v12020_v44 = vrot.slane %v12006_v19, %v18111_v61 }
 0x2db   : > { %v20899_v54 = vrot.slane %v12022_v26, %v18155_v43  ;;  %v13955_v36 = vcombine.low %v13907_v62, %v13923_v51  ;;  %v13956_v42 = vcombine.high %v13907_v62, %v13923_v51  ;;  %v13971_v40 = vcombine.low %v13914_v16, %v13930_v6 }
 0x2dc   : > { %17745 = vrot.lane.b32.xlu1 %v17744_v34, %s17897_s17  ;;  %v12053_v58 = vcombine.low %v11997_v17, %v12013_v10  ;;  %v12054_v34 = vcombine.high %v11997_v17, %v12013_v10  ;;  %v12069_v27 = vcombine.low %v12004_v25, %v12020_v44  ;;  %v12070_v8 = vcombine.high %v12004_v25, %v12020_v44  ;;  %v16824_v22 = vpop.f32.mrb[120].mxu0  ;;  %v21910_v10 = vld [vmem:[#allocation44_spill] sm:$0xff]  ;;  %v21911_v44 = vld [vmem:[#allocation46_spill] sm:$0xff] }
 0x2dd   : > { %v12045_v3 = vrot.slane %v12037_v14, %v18155_v43  ;;  %v13963_v39 = vrot.slane %v13955_v36, %v18155_v43  ;;  %v20907_v31 = vrot.slane %v13956_v42, %v18155_v43  ;;  %v20910_v26 = vrot.slane %v13971_v40, %v18155_v43  ;;  %v16831_v14 = vpop.f32.mrb[120].mxu1  ;;  %v20922_v47 = vpop.permute.xlu1 %17620 }
 0x2de   : > { %v20913_v0 = vrot.slane %v12053_v58, %v18155_v43  ;;  %v20916_v59 = vrot.slane %v12054_v34, %v18155_v43  ;;  %v12077_v5 = vrot.slane %v12069_v27, %v18155_v43  ;;  %v12084_v11 = vrot.slane %v12070_v8, %v18155_v43  ;;  %v20920_v50 = vpop.f32.mrb[121].mxu1  ;;  %v20935_v6 = vpop.f32.mrb[121].mxu0 }
 0x2df   : > { %v13980_v41 = vcombine.high %v13939_v60, %v13963_v39  ;;  %v13981_v62 = vcombine.low %v20878_v63, %v20907_v31  ;;  %v13982_v16 = vcombine.high %v20878_v63, %v20907_v31  ;;  %v13979_v21 = vcombine.low %v13939_v60, %v13963_v39 }
 0x2e0   : > { %v17593_v9 = vunpack.i.h.bf16 %v20662_v30  ;;  %v12052_v19 = vrot.slane %v12038_v13, %v18155_v43  ;;  %v12089_v17 = vcombine.low %v12045_v3, %v12077_v5  ;;  %v12090_v25 = vcombine.high %v12045_v3, %v12077_v5  ;;  %v21914_v13 = vld [vmem:[#allocation47_spill] sm:$0xff] }
 0x2e1   : > { %14657 = vrot.lane.b32.xlu1 %v13980_v41, %s17885_s29  ;;  %v21912_v63 = vcombine.low %v21910_v10, %v21911_v44  ;;  %v13983_v30 = vcombine.low %v20889_v35, %v20910_v26  ;;  %v12088_v24 = vcombine.high %v20899_v54, %v20916_v59  ;;  %v21915_v36 = vcombine.low %v21913_v1, %v21914_v13  ;;  %v20950_v27 = vpop.permute.xlu1 %14841  ;;  %v21917_v41 = vld [vmem:[#allocation49_spill] sm:$0xff]  ;;  %v21921_v44 = vld [vmem:[#allocation16_spill] sm:$0xff] }
 0x2e2   : > { %v12091_v40 = vcombine.low %v12052_v19, %v12084_v11  ;;  %v12092_v58 = vcombine.high %v12052_v19, %v12084_v11  ;;  %v21916_v8 = vcombine.high %v21913_v1, %v21914_v13  ;;  %v17598_v5 = vunpack.i.h.bf16 %v20713_v2  ;;  %v20963_v11 = vpop.permute.xlu0 %17630  ;;  %v21924_v13 = vld [vmem:[#allocation68_spill] sm:$0xff] }
 0x2e3   : > { %v17749_v60 = vpack.i.bf16 %v13979_v21, %v21912_v63  ;;  %v17759_v42 = vpack.i.bf16 %v12089_v17, %v21915_v36  ;;  %v20958_v39 = vpack.i.bf16 %v12088_v24, %v11952_v33  ;;  %v21918_v21 = vld [vmem:[#allocation48_spill] sm:$0xff]  ;;  %v20979_v56 = vsel %vm15022_vm0, %v19844_v37, %v19900_v29  ;;  %v21925_v29 = vld [vmem:[#allocation77_spill] sm:$0xff] }
 0x2e4   : > { %v17764_v3 = vpack.i.bf16 %v12090_v25, %v21916_v8  ;;  %v21919_v19 = vcombine.low %v21917_v41, %v21918_v21  ;;  %v21920_v25 = vcombine.high %v21917_v41, %v21918_v21  ;;  %v17523_v2 = vunpack.i.h.bf16 %v19747_v46  ;;  %v21922_v63 = vld [vmem:[#allocation20_spill] sm:$0xff]  ;;  %v16838_v8 = vpop.f32.mrb[122].mxu0 }
 0x2e5   : > { %17760 = vrot.lane.b32.xlu0 %v17759_v42, %s17895_s11  ;;  %v17522_v33 = vunpack.i.l.bf16 %v19747_v46  ;;  %v17518_v10 = vunpack.i.h.bf16 %v19938_v32  ;;  %14721 = vrot.lane.b32.xlu1 %v13981_v62, %s17886_s30  ;;  %v21923_v24 = vcombine.low %v21921_v44, %v21922_v63  ;;  %v17527_v36 = vunpack.i.l.bf16 %v21924_v13  ;;  %v16845_v41 = vpop.f32.mrb[122].mxu1  ;;  %v20997_v51 = vpop.permute.xlu1 %17625 }
 0x2e6   : > { %v20969_v17 = vpack.i.bf16 %v12091_v40, %v21919_v19  ;;  %v20974_v38 = vpack.i.bf16 %v12092_v58, %v21920_v25  ;;  %v21926_v42 = vcombine.low %v19999_v20, %v21925_v29  ;;  %v17603_v58 = vunpack.i.h.bf16 %v20692_v4  ;;  %v9744_v25 = vpop.f32.mrb[123].mxu1 }
 0x2e7   : > { %v14872_v1 = vsel %vm14869_vm4, %v21923_v24, %v17517_v12  ;;  %v13984_v21 = vcombine.low %v16824_v22, %v16838_v8  ;;  %v13985_v62 = vcombine.high %v16824_v22, %v16838_v8  ;;  %v14000_v19 = vcombine.low %v16831_v14, %v16845_v41  ;;  %v21018_v24 = vpop.permute.xlu0 %17635 }
 0x2e8   : > { %v14879_v40 = vsel %vm14869_vm4, %v21926_v42, %v17593_v9  ;;  %v14001_v32 = vcombine.high %v16831_v14, %v16845_v41  ;;  %v12109_v44 = vcombine.low %v20920_v50, %v9744_v25  ;;  %v12110_v63 = vcombine.high %v20920_v50, %v9744_v25  ;;  %v9669_v9 = vpop.f32.mrb[123].mxu0 }
 0x2e9   : > { %v14896_v12 = vsel %vm14886_vm5, %v14879_v40, %v17598_v5  ;;  %v17627_v20 = vunpack.i.l.bf16 %v20997_v51  ;;  %17765 = vrot.lane.b32.xlu0 %v17764_v3, %s17893_s10  ;;  %v21005_v4 = vrot.slane %v13984_v21, %v18111_v61  ;;  %v21008_v22 = vrot.slane %v13985_v62, %v18111_v61  ;;  %14785 = vrot.lane.b32.xlu1 %v13982_v16, %s17887_s4  ;;  %v21032_v41 = vpop.permute.xlu1 %17640 }
 0x2ea   : > { %v21011_v14 = vrot.slane %v14000_v19, %v18111_v61  ;;  %v21014_v5 = vrot.slane %v14001_v32, %v18111_v61  ;;  %v17608_v50 = vunpack.i.h.bf16 %v20733_v28  ;;  %v21021_v3 = vrot.slane %v12109_v44, %v18111_v61 }
 0x2eb   : > { %v14913_v29 = vsel %vm14903_vm6, %v14896_v12, %v17627_v20  ;;  %v12093_v42 = vcombine.low %v20935_v6, %v9669_v9  ;;  %v17632_v21 = vunpack.i.l.bf16 %v20963_v11  ;;  %v21036_v62 = vrot.slane %v12110_v63, %v18111_v61 }
 0x2ec   : > { %v14048_v40 = vcombine.low %v21005_v4, %v21011_v14  ;;  %v14049_v8 = vcombine.high %v21005_v4, %v21011_v14  ;;  %v14064_v16 = vcombine.low %v21008_v22, %v21014_v5  ;;  %v14930_v28 = vsel %vm14920_vm10, %v14913_v29, %v17603_v58 }
 0x2ed   : > { %v12094_v19 = vcombine.high %v20935_v6, %v9669_v9  ;;  %v21040_v32 = vrot.slane %v12093_v42, %v18111_v61  ;;  %v14889_v25 = vsel %vm14886_vm5, %v14872_v1, %v17522_v33  ;;  %v17613_v12 = vunpack.i.h.bf16 %v20743_v23  ;;  %17750 = vrot.lane.b32.xlu1 %v17749_v60, %s17894_s24  ;;  %v16852_v33 = vpop.f32.mrb[124].mxu0  ;;  %v21927_v1 = vld [vmem:[#allocation24_spill] sm:$0xff]  ;;  %v21928_v23 = vld [vmem:[#allocation27_spill] sm:$0xff] }
 0x2ee   : > { %v17637_v44 = vunpack.i.l.bf16 %v21018_v24  ;;  %v14947_v58 = vsel %vm14937_vm11, %v14930_v28, %v17608_v50  ;;  %v17642_v9 = vunpack.i.l.bf16 %v21032_v41  ;;  %v21929_v29 = vcombine.low %v21927_v1, %v21928_v23  ;;  %v16859_v28 = vpop.f32.mrb[124].mxu1  ;;  %v21070_v23 = vpop.f32.mrb[125].mxu0 }
 0x2ef   : > { %v21048_v20 = vrot.slane %v12094_v19, %v18111_v61  ;;  %v14906_v60 = vsel %vm14903_vm6, %v14889_v25, %v17527_v36  ;;  %v17618_v50 = vunpack.i.h.bf16 %v20767_v18  ;;  %v21061_v19 = vpop.permute.xlu1 %17645  ;;  %v14964_v31 = vsel %vm14954_vm12, %v14947_v58, %v17613_v12 }
 0x2f0   : > { %v14873_v42 = vsel %vm14869_vm4, %v21929_v29, %v17518_v10  ;;  %v17588_v34 = vunpack.i.h.bf16 %v20621_v53  ;;  %v14923_v6 = vsel %vm14920_vm10, %v14906_v60, %v17632_v21  ;;  %v9894_v10 = vpop.f32.mrb[125].mxu1  ;;  %v17528_v18 = vunpack.i.h.bf16 %v21924_v13  ;;  %v21932_v60 = vld [vmem:[#allocation67_spill] sm:$0xff] }
 0x2f1   : > { %v12173_v63 = vcombine.low %v21048_v20, %v21036_v62  ;;  %v12174_v1 = vcombine.high %v21048_v20, %v21036_v62  ;;  %v14940_v36 = vsel %vm14937_vm11, %v14923_v6, %v17637_v44  ;;  %v17647_v25 = vunpack.i.l.bf16 %v21061_v19  ;;  %14849 = vrot.lane.b32.xlu1 %v13983_v30, %s17888_s5  ;;  %v21086_v44 = vpop.permute.xlu0 %14779  ;;  %v21930_v6 = vld [vmem:[#allocation65_spill] sm:$0xff] }
 0x2f2   : > { %v14981_v12 = vsel %vm14971_vm13, %v14964_v31, %v17618_v50  ;;  %v15033_v53 = vsel %vm15022_vm0, %v20857_v15, %v20872_v48  ;;  %v17622_v21 = vunpack.i.l.bf16 %v20922_v47  ;;  %v14957_v58 = vsel %vm14954_vm12, %v14940_v36, %v17642_v9 }
 0x2f3   : > { %v14998_v13 = vsel %vm14988_vm14, %v14981_v12, %v17588_v34  ;;  %v15043_v31 = vsel %vm15039_vm1, %v20979_v56, %v21930_v6  ;;  %v15050_v35 = vsel %vm15039_vm1, %v15033_v53, %v20896_v7  ;;  %v21095_v30 = vpop.permute.xlu1 %14651  ;;  %v14974_v48 = vsel %vm14971_vm13, %v14957_v58, %v17647_v25  ;;  %v21931_v7 = vld [vmem:[#allocation66_spill] sm:$0xff] }
 0x2f4   : > { %v15015_v26 = vsel %vm15005_vm15, %v14998_v13, %v20604_v49  ;;  %v15067_v9 = vsel %vm15056_vm2, %v15050_v35, %v20950_v27  ;;  %v14991_v34 = vsel %vm14988_vm14, %v14974_v48, %v17622_v21  ;;  %v14890_v56 = vsel %vm14886_vm5, %v14873_v42, %v17523_v2  ;;  %v16866_v27 = vpop.f32.mrb[126].mxu0 }
 0x2f5   : > { %15258 = vmatmul.mubr.f32.gmra.mrb[130].mxu1 %v15015_v26  ;;  %v15008_v29 = vsel %vm15005_vm15, %v14991_v34, %v21931_v7  ;;  %17755 = vrot.lane.b32.xlu1 %v20958_v39, %s21835_s8  ;;  %v21110_v49 = vsel %vm14903_vm6, %v14890_v56, %v17528_v18  ;;  %v15060_v50 = vsel %vm15056_vm2, %v15043_v31, %v21932_v60  ;;  %v17633_v46 = vunpack.i.h.bf16 %v20963_v11  ;;  %v16873_v25 = vpop.f32.mrb[126].mxu1 }
 0x2f6   : > { %15451 = vmatprep.mubr.msk.f32.mxu1 %vm15095_vm3, %v15067_v9  ;;  %15223 = vmatmul.mubr.f32.gmra.mrb[132].mxu0 %v15008_v29  ;;  %v17638_v2 = vunpack.i.h.bf16 %v21018_v24  ;;  %v14016_v42 = vcombine.low %v16852_v33, %v16866_v27  ;;  %v14017_v36 = vcombine.high %v16852_v33, %v16866_v27  ;;  %v17623_v39 = vunpack.i.h.bf16 %v20922_v47  ;;  %v10044_v58 = vpop.f32.mrb[127].mxu1  ;;  %v9969_v33 = vpop.f32.mrb[127].mxu0  ;;  %v21941_v24 = vld [vmem:[#allocation61_spill] sm:$0xff] }
 0x2f7   : > { %15444 = vmatprep.mubr.msk.f32.mxu0 %vm15095_vm3, %v15060_v50  ;;  %v14716_v12 = vpop.permute.xlu1 %14715  ;;  %v17628_v18 = vunpack.i.h.bf16 %v20997_v51  ;;  %v14032_v53 = vcombine.low %v16859_v28, %v16873_v25  ;;  %v14033_v21 = vcombine.high %v16859_v28, %v16873_v25  ;;  %v21119_v13 = vpop.permute.xlu0 %17650  ;;  %v12141_v35 = vcombine.low %v9894_v10, %v10044_v58 }
 0x2f8   : > { %v14024_v6 = vrot.slane %v14016_v42, %v18111_v61  ;;  %v14031_v31 = vrot.slane %v14017_v36, %v18111_v61  ;;  %v12142_v26 = vcombine.high %v9894_v10, %v10044_v58  ;;  %v21129_v51 = vrot.slane %v14048_v40, %v18155_v43 }
 0x2f9   : > { %17770 = vrot.lane.b32.xlu1 %v20969_v17, %s17896_s9  ;;  %v17643_v28 = vunpack.i.h.bf16 %v21032_v41  ;;  %v14040_v48 = vrot.slane %v14032_v53, %v18111_v61  ;;  %v14047_v9 = vrot.slane %v14033_v21, %v18111_v61  ;;  %v12149_v34 = vrot.slane %v12141_v35, %v18111_v61 }
 0x2fa   : > { %v12156_v10 = vrot.slane %v12142_v26, %v18111_v61  ;;  %v12125_v56 = vcombine.low %v21070_v23, %v9969_v33  ;;  %v12126_v17 = vcombine.high %v21070_v23, %v9969_v33  ;;  %v21144_v40 = vrot.slane %v14049_v8, %v18155_v43 }
 0x2fb   : > { %v21138_v7 = vpop.permute.xlu1 %17655  ;;  %v14072_v29 = vcombine.low %v14024_v6, %v14040_v48  ;;  %v14073_v27 = vcombine.high %v14024_v6, %v14040_v48  ;;  %v14088_v60 = vcombine.low %v14031_v31, %v14047_v9  ;;  %v21146_v50 = vpop.permute.xlu0 %14843  ;;  %v21152_v42 = vrot.slane %v14064_v16, %v18155_v43  ;;  %v21935_v48 = vld [vmem:[#allocation9_spill] sm:$0xff] }
 0x2fc   : > { %v21933_v23 = vcombine.low %v21040_v32, %v21021_v3  ;;  %v12133_v4 = vrot.slane %v12125_v56, %v18111_v61  ;;  %v12140_v14 = vrot.slane %v12126_v17, %v18111_v61  ;;  %v21934_v8 = vcombine.high %v21040_v32, %v21021_v3  ;;  %v21936_v9 = vld [vmem:[#allocation13_spill] sm:$0xff] }
 0x2fd   : > { %17775 = vrot.lane.b32.xlu1 %v20974_v38, %s17897_s17  ;;  %v21169_v5 = vrot.slane %v14072_v29, %v18155_v43  ;;  %v14087_v16 = vrot.slane %v14073_v27, %v18155_v43  ;;  %v17657_v25 = vunpack.i.l.bf16 %v21138_v7  ;;  %v12181_v38 = vrot.slane %v12173_v63, %v18155_v43 }
 0x2fe   : > { %v21158_v36 = vrot.slane %v21933_v23, %v18155_v43  ;;  %v12172_v22 = vrot.slane %v21934_v8, %v18155_v43  ;;  %v12189_v53 = vcombine.low %v12133_v4, %v12149_v34  ;;  %v12190_v21 = vcombine.high %v12133_v4, %v12149_v34 }
 0x2ff   : > { %v12205_v58 = vcombine.low %v12140_v14, %v12156_v10  ;;  %v12206_v6 = vcombine.high %v12140_v14, %v12156_v10  ;;  %v21173_v61 = vpop.permute.xlu1 %17660  ;;  %v21183_v3 = vrot.slane %v12174_v1, %v18155_v43  ;;  %v17648_v32 = vunpack.i.h.bf16 %v21061_v19  ;;  %v21186_v31 = vpop.permute.xlu0 %17665 }
 0x300   : > { %v17662_v35 = vunpack.i.l.bf16 %v21173_v61  ;;  %v15034_v26 = vsel %vm15022_vm0, %v21095_v30, %v14716_v12  ;;  %v21192_v33 = vrot.slane %v12189_v53, %v18155_v43  ;;  %v12204_v63 = vrot.slane %v12190_v21, %v18155_v43 }
 0x301   : > { %v21937_v34 = vcombine.low %v21935_v48, %v21936_v9  ;;  %v17652_v20 = vunpack.i.l.bf16 %v21119_v13  ;;  %v12213_v19 = vrot.slane %v12205_v58, %v18155_v43  ;;  %v17667_v1 = vunpack.i.l.bf16 %v21186_v31 }
 0x302   : > { %v12221_v12 = vcombine.low %v21158_v36, %v21192_v33  ;;  %v14099_v17 = vcombine.high %v21144_v40, %v14087_v16  ;;  %v14097_v29 = vcombine.high %v21129_v51, %v21169_v5  ;;  %v14095_v23 = vrot.slane %v14088_v60, %v18155_v43 }
 0x303   : > { %v14880_v62 = vsel %vm14869_vm4, %v21937_v34, %v17657_v25  ;;  %v21209_v27 = vpop.permute.xlu1 %17675  ;;  %v12220_v4 = vrot.slane %v12206_v6, %v18155_v43  ;;  %v14924_v14 = vsel %vm14920_vm10, %v21110_v49, %v17667_v1  ;;  %v21218_v25 = vpop.permute.xlu0 %17670  ;;  %v14098_v60 = vcombine.low %v21144_v40, %v14087_v16  ;;  %v21938_v6 = vld [vmem:[#allocation58_spill] sm:$0xff]  ;;  %v21942_v1 = vld [vmem:[#allocation59_spill] sm:$0xff] }
 0x304   : > { %v14897_v10 = vsel %vm14886_vm5, %v14880_v62, %v17662_v35  ;;  %14787 = vrot.lane.b32.xlu0 %v14099_v17, %s17887_s4  ;;  %14659 = vrot.lane.b32.xlu1 %v14097_v29, %s17885_s29  ;;  %v17677_v53 = vunpack.i.l.bf16 %v21209_v27  ;;  %v12224_v43 = vcombine.high %v12172_v22, %v12204_v63  ;;  %v12225_v21 = vcombine.low %v12181_v38, %v12213_v19  ;;  %v21939_v35 = vld [vmem:[#allocation55_spill] sm:$0xff]  ;;  %s180_s29 = sand.u32 1, %s17873_s13  }
 0x305   : > { %v14914_v56 = vsel %vm14903_vm6, %v14897_v10, %v17628_v18  ;;  %v17672_v18 = vunpack.i.l.bf16 %v21218_v25  ;;  %v12222_v49 = vcombine.high %v21158_v36, %v21192_v33  ;;  %v21940_v48 = vcombine.high %v21938_v6, %v21939_v35  ;;  %v21958_v35 = vld [vmem:[#allocation63_spill] sm:$0xff] }
 0x306   : > { %v14931_v8 = vsel %vm14920_vm10, %v14914_v56, %v17633_v46  ;;  %v12226_v46 = vcombine.high %v12181_v38, %v12213_v19  ;;  %v12223_v16 = vcombine.low %v12172_v22, %v12204_v63  ;;  %v15051_v34 = vsel %vm15039_vm1, %v15034_v26, %v21086_v44 }
 0x307   : > { %v14948_v11 = vsel %vm14937_vm11, %v14931_v8, %v17638_v2  ;;  %v14941_v58 = vsel %vm14937_vm11, %v14924_v14, %v17672_v18  ;;  %v17794_v9 = vpack.i.bf16 %v12224_v43, %v21940_v48  ;;  %v21239_v62 = vpop.permute.xlu0 %17680  ;;  %v21943_v2 = vcombine.low %v21941_v24, %v21942_v1  ;;  %v21959_v48 = vld [vmem:[#allocation62_spill] sm:$0xff] }
 0x308   : > { %v14965_v40 = vsel %vm14954_vm12, %v14948_v11, %v17643_v28  ;;  %v21944_v19 = vcombine.high %v20892_v55, %v20913_v0  ;;  %v14958_v41 = vsel %vm14954_vm12, %v14941_v58, %v17677_v53  ;;  %14723 = vrot.lane.b32.xlu1 %v14098_v60, %s17886_s30  ;;  %v17682_v44 = vunpack.i.l.bf16 %v21239_v62  ;;  %v21948_v53 = vld [vmem:[#allocation69_spill] sm:$0xff]  ;;  %v21949_v60 = vld [vmem:[#allocation64_spill] sm:$0xff]  ;;  %s15434_s30 = sshll.u32 %s180_s29, 8 }
 0x309   : > { %v17799_v38 = vpack.i.bf16 %v12225_v21, %v21943_v2  ;;  %v14982_v56 = vsel %vm14971_vm13, %v14965_v40, %v17648_v32  ;;  %17795 = vrot.lane.b32.xlu0 %v17794_v9, %s21835_s8  ;;  %v21945_v22 = vcombine.high %v21941_v24, %v21942_v1  ;;  %v21946_v32 = vcombine.low %v20899_v54, %v20916_v59  ;;  %v21953_v21 = vld [vmem:[#allocation57_spill] sm:$0xff]  ;;  %s21462_s4 = scalar_lea.vmem [#allocation2], %s15434_s30 }
 0x30a   : > { %v17779_v10 = vpack.i.bf16 %v12222_v49, %v21944_v19  ;;  %v14999_v28 = vsel %vm14988_vm14, %v14982_v56, %v17623_v39  ;;  %v12228_v29 = vcombine.high %v21183_v3, %v12220_v4  ;;  %v14096_v14 = vcombine.low %v21129_v51, %v21169_v5  ;;  %v21950_v51 = vld [vmem:[#allocation60_spill] sm:$0xff]  ;;  %s15356_s27 = sshll.u32 %s21462_s4, 4  ;;  %s21535_s27 = int_to_ptr.vmem [resolvable:$true] %s15356_s27 }
 0x30b   : > { %v17804_v26 = vpack.i.bf16 %v12226_v46, %v21945_v22  ;;  %v15016_v63 = vsel %vm15005_vm15, %v14999_v28, %v20857_v15  ;;  %v17784_v17 = vpack.i.bf16 %v12223_v16, %v21946_v32  ;;  %v15068_v47 = vsel %vm15056_vm2, %v15051_v34, %v21146_v50  ;;  %v21947_v15 = vld [vmem:[#allocation70_spill] sm:$0xff]  ;;  %v21952_v50 = vld [vmem:[#allocation56_spill] sm:$0xff]  ;;  %v21955_v46 = vld [vmem:[#allocation71_spill] sm:$0xff]  ;;  %s17819_s19 = scalar_lea.vmem %s21535_s27, 4096  ;;  %p17826_p1 = scmp.lt.s32.totalorder %s21535_s27, %s17824_s25 }
 0x30c   : > { %15263 = vmatmul.mubr.f32.gmra.mrb[132].mxu1 %v15016_v63  ;;  %v14975_v39 = vsel %vm14971_vm13, %v14958_v41, %v17682_v44  ;;  %v12227_v8 = vcombine.low %v21183_v3, %v12220_v4  ;;  %v14100_v18 = vcombine.low %v21152_v42, %v14095_v23  ;;  %v15027_v54 = vsel %vm15022_vm0, %v21948_v53, %v21947_v15  ;;  %v21957_v4 = vld [vmem:[#allocation72_spill] sm:$0xff]  ;;  %p17820_p12 = scmp.ne.s32.totalorder %s21535_s27, %s17819_s19  ;;  %p17827_p2 = scmp.lt.s32.totalorder %s17825_s26, %s17819_s19 }
 0x30d   : > { %15452 = vmatprep.mubr.msk.f32.mxu1 %vm15095_vm3, %v15068_v47  ;;  %v14992_v59 = vsel %vm14988_vm14, %v14975_v39, %v17652_v20  ;;  %v21951_v5 = vcombine.high %v21949_v60, %v21950_v51  ;;  %v21954_v49 = vcombine.low %v21952_v50, %v21953_v21  ;;  %v15044_v3 = vsel %vm15039_vm1, %v15027_v54, %v21955_v46  ;;  %v21961_v19 = vld [vmem:[#allocation12_spill] sm:$0xff]  ;;  %v21965_v54 = vld [vmem:[#allocation74_spill] sm:$0xff] }
 0x30e   : > { %17800 = vrot.lane.b32.xlu0 %v17799_v38, %s17895_s11  ;;  %17780 = vrot.lane.b32.xlu1 %v17779_v10, %s17889_s6  ;;  %v15009_v42 = vsel %vm15005_vm15, %v14992_v59, %v19844_v37  ;;  %v21956_v20 = vcombine.low %v21949_v60, %v21950_v51  ;;  %v15061_v58 = vsel %vm15056_vm2, %v15044_v3, %v21957_v4  ;;  %v17658_v1 = vunpack.i.h.bf16 %v21138_v7  ;;  %v21962_v10 = vld [vmem:[#allocation19_spill] sm:$0xff]  ;;  %v21964_v15 = vld [vmem:[#allocation76_spill] sm:$0xff]  ;;  %v21967_v3 = vld [vmem:[#allocation73_spill] sm:$0xff]  ;;  %s15465_s11 = sshll.u32 %s17943_s16, 12  ;;  %p17821_p13 = pnand %p17820_p12, %p17960_p5 }
 0x30f   : > { %v17814_v43 = vpack.i.bf16 %v12228_v29, %v21951_v5  ;;  %v17789_v11 = vpack.i.bf16 %v14096_v14, %v21954_v49  ;;  %15228 = vmatmul.mubr.f32.gmra.mrb[134].mxu0 %v15009_v42  ;;  %v21960_v9 = vcombine.low %v21958_v35, %v21959_v48  ;;  %v17663_v2 = vunpack.i.h.bf16 %v21173_v61  ;;  %v21966_v59 = vld [vmem:[#allocation39_spill] sm:$0xff]  ;;  %p17828_p3 = por %p17827_p2, %p17826_p1 }
 0x310   : > { %v17809_v23 = vpack.i.bf16 %v12227_v8, %v21956_v20  ;;  %15445 = vmatprep.mubr.msk.f32.mxu0 %vm15095_vm3, %v15061_v58  ;;  %v21296_v6 = vpop.permute.xlu0 %14653  ;;  %v21963_v56 = vcombine.low %v21961_v19, %v21962_v10  ;;  %v17668_v28 = vunpack.i.h.bf16 %v21186_v31  ;;  %v17673_v63 = vunpack.i.h.bf16 %v21218_v25  ;;  %p17822_p0 = pneg %p17821_p13 }
 0x311   : > { %v17678_v7 = vunpack.i.h.bf16 %v21209_v27  ;;  %v17683_v14 = vunpack.i.h.bf16 %v21239_v62  ;;  %v17653_v31 = vunpack.i.h.bf16 %v21119_v13  ;;  %v15028_v27 = vsel %vm15022_vm0, %v21965_v54, %v21964_v15 }
 0x312   : > { %17805 = vrot.lane.b32.xlu0 %v17804_v26, %s17893_s10  ;;  %17785 = vrot.lane.b32.xlu1 %v17784_v17, %s17890_s7  ;;  %v14881_v41 = vsel %vm14869_vm4, %v21963_v56, %v17658_v1  ;;  %v15045_v42 = vsel %vm15039_vm1, %v15028_v27, %v21967_v3  ;;  %p17829_p4 = pnand %p17828_p3, %p17822_p0 }
 0x313   : > { %v14898_v22 = vsel %vm14886_vm5, %v14881_v41, %v17663_v2 }
 0x314   : > { %v14718_v37 = vpop.permute.xlu0 %14717 }
 0x315   : > { %v15035_v62 = vsel %vm15022_vm0, %v21296_v6, %v14718_v37  ;;  %v21968_v37 = vld [vmem:[#allocation75_spill] sm:$0xff] }
 0x316   : > { %17815 = vrot.lane.b32.xlu0 %v17814_v43, %s17897_s17  ;;  %17790 = vrot.lane.b32.xlu1 %v17789_v11, %s17894_s24  ;;  %v15062_v35 = vsel %vm15056_vm2, %v15045_v42, %v21968_v37  ;;  %s21533_s17 = scalar_lea.hbm %s21585_s3, %s15465_s11 }
 0x317   : > { %v21308_v34 = vpop.permute.xlu1 %17695 }
 0x318   : > { %v14782_v40 = vpop.permute.xlu0 %14781  ;;  %v17697_v61 = vunpack.i.l.bf16 %v21308_v34 }
 0x319   : > { %v15052_v43 = vsel %vm15039_vm1, %v15035_v62, %v14782_v40 }
 0x31a   : > { %14835 = vrot.lane.b32.xlu0 %v21960_v9, %s17888_s5  ;;  %17810 = vrot.lane.b32.xlu1 %v17809_v23, %s17896_s9  ;;  %v14925_v60 = vsel %vm14920_vm10, %v21966_v59, %v17697_v61 }
 0x31b   : > { %v17701_v26 = vpop.permute.xlu1 %17700 }
 0x31c   : > { %v21306_v16 = vpop.permute.xlu0 %17685  ;;  %v17702_v47 = vunpack.i.l.bf16 %v17701_v26 }
 0x31d   : > { %v17687_v49 = vunpack.i.l.bf16 %v21306_v16 }
 0x31e   : > { %14851 = vrot.lane.b32.xlu1 %v14100_v18, %s17888_s5  ;;  %v14942_v13 = vsel %vm14937_vm11, %v14925_v60, %v17702_v47  ;;  %s15435_s5 = sshll.u32 %s17943_s16, 4  ;;  %s21541_s16 = scalar_lea.sflag [#allocation3], %s180_s29 }
 0x31f   : > { %p184_p11 = scmp.lt.s32.totalorder %s15435_s5, 31 }
 0x320   : > { %v14846_v24 = vpop.permute.xlu0 %14845 }
 0x321   : > { %v15069_v11 = vsel %vm15056_vm2, %v15052_v43, %v14846_v24  ;;  %s21987_s5 = smov (!%p184_p11, %s15435_s5), 31 }
 0x322   : > { %s15436_s6 = sshll.u32 %s21987_s5, 3 }
 0x323   : > { %s187_s24 = scalar_lea.vmem %s21582_s0, %s15436_s6 }
 0x324   : > { %v17691_v38 = vpop.permute.xlu0 %17690 }
 0x325   : > { %v17692_v44 = vunpack.i.l.bf16 %v17691_v38  ;;  %v17693_v56 = vunpack.i.h.bf16 %v17691_v38 }
 0x327   : > { %v14915_v32 = vsel %vm14903_vm6, %v14898_v22, %v17692_v44 }
 0x328   : > { %v14932_v17 = vsel %vm14920_vm10, %v14915_v32, %v17668_v28  ;;  %v17698_v28 = vunpack.i.h.bf16 %v21308_v34  ;;  %v17688_v34 = vunpack.i.h.bf16 %v21306_v16 }
 0x329   : > { %v17706_v29 = vpop.permute.xlu0 %17705  ;;  %v14949_v39 = vsel %vm14937_vm11, %v14932_v17, %v17673_v63  ;;  %v17703_v63 = vunpack.i.h.bf16 %v17701_v26 }
 0x32a   : > { %v17707_v8 = vunpack.i.l.bf16 %v17706_v29  ;;  %v14966_v18 = vsel %vm14954_vm12, %v14949_v39, %v17678_v7  ;;  %v17708_v61 = vunpack.i.h.bf16 %v17706_v29  ;;  %v21970_v39 = vld [vmem:[#allocation78_spill] sm:$0xff] }
 0x32b   : > { %v14983_v25 = vsel %vm14971_vm13, %v14966_v18, %v17683_v14 }
 0x32c   : > { %v15000_v5 = vsel %vm14988_vm14, %v14983_v25, %v17653_v31  ;;  %v14959_v46 = vsel %vm14954_vm12, %v14942_v13, %v17707_v8 }
 0x32d   : > { %v17711_v51 = vpop.permute.xlu0 %17710  ;;  %v15017_v21 = vsel %vm15005_vm15, %v15000_v5, %v21095_v30 }
 0x32e   : > { %v17712_v50 = vunpack.i.l.bf16 %v17711_v51  ;;  %15268 = vmatmul.mubr.f32.gmra.mrb[134].mxu1 %v15017_v21  ;;  %v17713_v38 = vunpack.i.h.bf16 %v17711_v51 }
 0x32f   : > { %15453 = vmatprep.mubr.msk.f32.mxu1 %vm15095_vm3, %v15069_v11 }
 0x330   : > { %v14976_v20 = vsel %vm14971_vm13, %v14959_v46, %v17712_v50  ;;  %v21971_v50 = vld [vmem:[#allocation11_spill] sm:$0xff] }
 0x331   : > { %v14993_v4 = vsel %vm14988_vm14, %v14976_v20, %v17687_v49 }
 0x332   : > { %v14784_v23 = vpop.permute.xlu1 %14783  ;;  %v15010_v30 = vsel %vm15005_vm15, %v14993_v4, %v21948_v53  ;;  %v21350_v58 = vpop.permute.xlu0 %14655  ;;  %v21969_v53 = vcombine.low %v20442_v45, %v20462_v57  ;;  %v21972_v4 = vld [vmem:[#allocation18_spill] sm:$0xff] }
 0x333   : > { %15233 = vmatmul.mubr.f32.gmra.mrb[136].mxu0 %v15010_v30 }
 0x334   : > { %15446 = vmatprep.mubr.msk.f32.mxu0 %vm15095_vm3, %v15062_v35 }
 0x336   : > { %v14720_v9 = vpop.permute.xlu0 %14719 }
 0x337   : > { %v15036_v26 = vsel %vm15022_vm0, %v21350_v58, %v14720_v9 }
 0x338   : > { %v21355_v48 = vpop.permute.xlu1 %17715  ;;  %v15053_v60 = vsel %vm15039_vm1, %v15036_v26, %v14784_v23 }
 0x339   : > { %v17717_v59 = vunpack.i.l.bf16 %v21355_v48 }
 0x33a   : > { %v17721_v24 = vpop.permute.xlu0 %17720 }
 0x33b   : > { %v17722_v1 = vunpack.i.l.bf16 %v17721_v24  ;;  %v17723_v42 = vunpack.i.h.bf16 %v17721_v24 }
 0x33c   : > { %v14848_v40 = vpop.permute.xlu1 %14847 }
 0x33d   : > { %v14882_v41 = vsel %vm14869_vm4, %v21969_v53, %v17722_v1  ;;  %v15070_v51 = vsel %vm15056_vm2, %v15053_v60, %v14848_v40 }
 0x346   : > { %v17731_v2 = vpop.permute.xlu1 %17730  ;;  %v17726_v19 = vpop.permute.xlu0 %17725 }
 0x347   : > { %v17727_v10 = vunpack.i.l.bf16 %v17726_v19  ;;  %v17732_v44 = vunpack.i.l.bf16 %v17731_v2  ;;  %v17728_v20 = vunpack.i.h.bf16 %v17726_v19  ;;  %v17733_v35 = vunpack.i.h.bf16 %v17731_v2 }
 0x348   : > { %v17718_v2 = vunpack.i.h.bf16 %v21355_v48 }
 0x349   : > { %v14899_v22 = vsel %vm14886_vm5, %v14882_v41, %v17727_v10  ;;  %v14926_v45 = vsel %vm14920_vm10, %v21970_v39, %v17732_v44 }
 0x34a   : > { %v14916_v32 = vsel %vm14903_vm6, %v14899_v22, %v17693_v56  ;;  %v17736_v7 = vpop.permute.xlu1 %17735 }
 0x34b   : > { %v14933_v17 = vsel %vm14920_vm10, %v14916_v32, %v17698_v28  ;;  %v17737_v14 = vunpack.i.l.bf16 %v17736_v7  ;;  %v17741_v47 = vpop.permute.xlu0 %17740  ;;  %v17738_v1 = vunpack.i.h.bf16 %v17736_v7  ;;  %v21974_v32 = vld [vmem:[#allocation21_spill] sm:$0xff] }
 0x34c   : > { %v17742_v57 = vunpack.i.l.bf16 %v17741_v47  ;;  %v14950_v31 = vsel %vm14937_vm11, %v14933_v17, %v17703_v63  ;;  %v17743_v56 = vunpack.i.h.bf16 %v17741_v47 }
 0x34d   : > { %v14943_v8 = vsel %vm14937_vm11, %v14926_v45, %v17737_v14  ;;  %v14967_v29 = vsel %vm14954_vm12, %v14950_v31, %v17708_v61 }
 0x34e   : > { %v17746_v18 = vpop.permute.xlu1 %17745  ;;  %v14984_v25 = vsel %vm14971_vm13, %v14967_v29, %v17713_v38  ;;  %v14960_v62 = vsel %vm14954_vm12, %v14943_v8, %v17742_v57  ;;  %v21975_v8 = vld [vmem:[#allocation7_spill] sm:$0xff] }
 0x34f   : > { %v17747_v15 = vunpack.i.l.bf16 %v17746_v18  ;;  %v15001_v27 = vsel %vm14988_vm14, %v14984_v25, %v17688_v34 }
 0x350   : > { %v15018_v16 = vsel %vm15005_vm15, %v15001_v27, %v21296_v6 }
 0x351   : > { %15273 = vmatmul.mubr.f32.gmra.mrb[136].mxu1 %v15018_v16  ;;  %v14977_v5 = vsel %vm14971_vm13, %v14960_v62, %v17747_v15 }
 0x352   : > { %15454 = vmatprep.mubr.msk.f32.mxu1 %vm15095_vm3, %v15070_v51  ;;  %v14994_v13 = vsel %vm14988_vm14, %v14977_v5, %v17717_v59 }
 0x353   : > { %v15011_v43 = vsel %vm15005_vm15, %v14994_v13, %v21965_v54  ;;  %v21388_v21 = vpop.permute.xlu1 %14657  ;;  %v21973_v54 = vcombine.low %v20674_v52, %v21972_v4  ;;  %v17748_v52 = vunpack.i.h.bf16 %v17746_v18 }
 0x354   : > { %15238 = vmatmul.mubr.f32.gmra.mrb[138].mxu0 %v15011_v43 }
 0x355   : > { %15447 = vmatprep.mubr.msk.f32.mxu0 %vm15095_vm3, %v21971_v50  ;;  %v14883_v30 = vsel %vm14869_vm4, %v21973_v54, %v17723_v42 }
 0x356   : > { %v14900_v9 = vsel %vm14886_vm5, %v14883_v30, %v17728_v20 }
 0x357   : > { %v14722_v49 = vpop.permute.xlu1 %14721  ;;  %v21392_v46 = vpop.permute.xlu0 %17760 }
 0x358   : > { %v17762_v24 = vunpack.i.l.bf16 %v21392_v46  ;;  %v15037_v61 = vsel %vm15022_vm0, %v21388_v21, %v14722_v49  ;;  %v17763_v20 = vunpack.i.h.bf16 %v21392_v46 }
 0x35a   : > { %v14927_v7 = vsel %vm14920_vm10, %v21974_v32, %v17762_v24 }
 0x35b   : > { %v14786_v6 = vpop.permute.xlu1 %14785  ;;  %v21402_v40 = vpop.permute.xlu0 %17765 }
 0x35c   : > { %v17767_v41 = vunpack.i.l.bf16 %v21402_v40  ;;  %v15054_v48 = vsel %vm15039_vm1, %v15037_v61, %v14786_v6  ;;  %v21976_v6 = vcombine.low %v20892_v55, %v20913_v0  ;;  %v17768_v30 = vunpack.i.h.bf16 %v21402_v40 }
 0x35e   : > { %v14944_v47 = vsel %vm14937_vm11, %v14927_v7, %v17767_v41  ;;  %v21978_v7 = vld [vmem:[#allocation15_spill] sm:$0xff] }
 0x35f   : > { %v21390_v11 = vpop.permute.xlu1 %17750 }
 0x360   : > { %v17752_v45 = vunpack.i.l.bf16 %v21390_v11 }
 0x363   : > { %v14850_v3 = vpop.permute.xlu1 %14849 }
 0x364   : > { %v15071_v57 = vsel %vm15056_vm2, %v15054_v48, %v14850_v3 }
 0x367   : > { %v21394_v23 = vpop.permute.xlu1 %17755 }
 0x368   : > { %v17757_v37 = vunpack.i.l.bf16 %v21394_v23  ;;  %v17758_v5 = vunpack.i.h.bf16 %v21394_v23 }
 0x36a   : > { %v14917_v10 = vsel %vm14903_vm6, %v14900_v9, %v17757_v37 }
 0x36b   : > { %v14934_v19 = vsel %vm14920_vm10, %v14917_v10, %v17733_v35  ;;  %v21407_v53 = vpop.permute.xlu1 %17770  ;;  %v21977_v10 = vld [vmem:[#allocation17_spill] sm:$0xff] }
 0x36c   : > { %v14951_v44 = vsel %vm14937_vm11, %v14934_v19, %v17738_v1  ;;  %v17772_v28 = vunpack.i.l.bf16 %v21407_v53  ;;  %v17773_v36 = vunpack.i.h.bf16 %v21407_v53  ;;  %v17753_v19 = vunpack.i.h.bf16 %v21390_v11 }
 0x36d   : > { %v14968_v22 = vsel %vm14954_vm12, %v14951_v44, %v17743_v56 }
 0x36e   : > { %v14985_v63 = vsel %vm14971_vm13, %v14968_v22, %v17748_v52  ;;  %v14961_v31 = vsel %vm14954_vm12, %v14944_v47, %v17772_v28 }
 0x36f   : > { %v21419_v17 = vpop.permute.xlu1 %17775  ;;  %v15002_v14 = vsel %vm14988_vm14, %v14985_v63, %v17718_v2 }
 0x370   : > { %v17777_v38 = vunpack.i.l.bf16 %v21419_v17  ;;  %v15019_v39 = vsel %vm15005_vm15, %v15002_v14, %v21350_v58  ;;  %v17778_v1 = vunpack.i.h.bf16 %v21419_v17 }
 0x371   : > { %15278 = vmatmul.mubr.f32.gmra.mrb[138].mxu1 %v15019_v39 }
 0x372   : > { %15455 = vmatprep.mubr.msk.f32.mxu1 %vm15095_vm3, %v15071_v57  ;;  %v14978_v34 = vsel %vm14971_vm13, %v14961_v31, %v17777_v38 }
 0x373   : > { %v14995_v26 = vsel %vm14988_vm14, %v14978_v34, %v17752_v45 }
 0x374   : > { %v15012_v29 = vsel %vm15005_vm15, %v14995_v26, %v21975_v8 }
 0x375   : > { %15243 = vmatmul.mubr.f32.gmra.mrb[140].mxu0 %v15012_v29 }
 0x376   : > { %v21435_v58 = vpop.permute.xlu0 %14787  ;;  %v21437_v18 = vpop.permute.xlu1 %14659 }
 0x37a   : > { %v14724_v25 = vpop.permute.xlu1 %14723 }
 0x37b   : > { %v17796_v15 = vpop.permute.xlu0 %17795  ;;  %v15038_v44 = vsel %vm15022_vm0, %v21437_v18, %v14724_v25 }
 0x37c   : > { %v17798_v50 = vunpack.i.h.bf16 %v17796_v15  ;;  %v17797_v49 = vunpack.i.l.bf16 %v17796_v15  ;;  %v15055_v26 = vsel %vm15039_vm1, %v15038_v44, %v21435_v58 }
 0x37e   : > { %v14911_v56 = vsel %vm14903_vm6, %v21977_v10, %v17797_v49  ;;  %v15308_v10 = vld [vmem:[%s187_s24 + $0x78] sm:$0xff] }
 0x37f   : > { %15324 = vst [vmem:[%s21462_s4 + $0xf0] sm:$0xff] %v15308_v10 }
 0x380   : > { %v17801_v27 = vpop.permute.xlu0 %17800  ;;  %v17781_v59 = vpop.permute.xlu1 %17780 }
 0x381   : > { %v17783_v60 = vunpack.i.h.bf16 %v17781_v59  ;;  %v17782_v62 = vunpack.i.l.bf16 %v17781_v59  ;;  %v17802_v4 = vunpack.i.l.bf16 %v17801_v27  ;;  %v17803_v33 = vunpack.i.h.bf16 %v17801_v27  ;;  %v21979_v59 = vld [vmem:[#allocation14_spill] sm:$0xff] }
 0x383   : > { %v14884_v3 = vsel %vm14869_vm4, %v21976_v6, %v17782_v62  ;;  %v14885_v42 = vsel %vm14869_vm4, %v12221_v12, %v17783_v60  ;;  %v14928_v53 = vsel %vm14920_vm10, %v14911_v56, %v17802_v4  ;;  %v15294_v4 = vld [vmem:[%s187_s24 + $0x8] sm:$0xff] }
 0x384   : > { %v17806_v16 = vpop.permute.xlu0 %17805  ;;  %v17786_v51 = vpop.permute.xlu1 %17785  ;;  %15310 = vst [vmem:[%s21462_s4 + $0x10] sm:$0xff] %v15294_v4 }
 0x385   : > { %v17788_v13 = vunpack.i.h.bf16 %v17786_v51  ;;  %v17787_v43 = vunpack.i.l.bf16 %v17786_v51  ;;  %v17807_v37 = vunpack.i.l.bf16 %v17806_v16  ;;  %v17808_v2 = vunpack.i.h.bf16 %v17806_v16 }
 0x387   : > { %v14901_v54 = vsel %vm14886_vm5, %v14884_v3, %v17787_v43  ;;  %v14902_v23 = vsel %vm14886_vm5, %v14885_v42, %v17788_v13  ;;  %v14945_v28 = vsel %vm14937_vm11, %v14928_v53, %v17807_v37  ;;  %v15298_v37 = vld [vmem:[%s187_s24 + $0x28] sm:$0xff] }
 0x388   : > { %v14918_v35 = vsel %vm14903_vm6, %v14901_v54, %v17758_v5  ;;  %v14919_v55 = vsel %vm14903_vm6, %v14902_v23, %v17798_v50  ;;  %v17816_v0 = vpop.permute.xlu0 %17815  ;;  %v17791_v9 = vpop.permute.xlu1 %17790  ;;  %v15295_v54 = vld [vmem:[%s187_s24 + $0x10] sm:$0xff]  ;;  %v15296_v23 = vld [vmem:[%s187_s24 + $0x18] sm:$0xff]  ;;  %15314 = vst [vmem:[%s21462_s4 + $0x50] sm:$0xff] %v15298_v37 }
 0x389   : > { %v14935_v12 = vsel %vm14920_vm10, %v14918_v35, %v17763_v20  ;;  %v15214_v46 = vpop.f32.mrb[128].mxu0  ;;  %v14936_v52 = vsel %vm14920_vm10, %v14919_v55, %v17803_v33  ;;  %v17818_v47 = vunpack.i.h.bf16 %v17816_v0  ;;  %v17817_v48 = vunpack.i.l.bf16 %v17816_v0  ;;  %v15293_v20 = vld [vmem:[%s187_s24] sm:$0xff]  ;;  %15311 = vst [vmem:[%s21462_s4 + $0x20] sm:$0xff] %v15295_v54  ;;  %v15299_v35 = vld [vmem:[%s187_s24 + $0x30] sm:$0xff]  ;;  %v15300_v55 = vld [vmem:[%s187_s24 + $0x38] sm:$0xff] }
 0x38a   : > { %15325 = vst [vmem:[%s21462_s4 + $0x8] sm:$0xff] %v15214_v46  ;;  %v15216_v40 = vpop.f32.mrb[129].mxu0  ;;  %v14952_v24 = vsel %vm14937_vm11, %v14935_v12, %v17768_v30  ;;  %v14953_v38 = vsel %vm14937_vm11, %v14936_v52, %v17808_v2  ;;  %v17793_v45 = vunpack.i.h.bf16 %v17791_v9  ;;  %v17792_v57 = vunpack.i.l.bf16 %v17791_v9  ;;  %v15297_v30 = vld [vmem:[%s187_s24 + $0x20] sm:$0xff]  ;;  %15309 = vst [vmem:[%s21462_s4] sm:$0xff] %v15293_v20  ;;  %v15302_v9 = vld [vmem:[%s187_s24 + $0x48] sm:$0xff] }
 0x38b   : > { %v14969_v41 = vsel %vm14954_vm12, %v14952_v24, %v17773_v36  ;;  %v15301_v0 = vld [vmem:[%s187_s24 + $0x40] sm:$0xff]  ;;  %15312 = vst [vmem:[%s21462_s4 + $0x30] sm:$0xff] %v15296_v23  ;;  %15313 = vst [vmem:[%s21462_s4 + $0x40] sm:$0xff] %v15297_v30  ;;  %v15303_v36 = vld [vmem:[%s187_s24 + $0x50] sm:$0xff] }
 0x38c   : > { %v14836_v22 = vpop.permute.xlu0 %14835  ;;  %v17811_v63 = vpop.permute.xlu1 %17810  ;;  %v14986_v32 = vsel %vm14971_vm13, %v14969_v41, %v17778_v1  ;;  %v15304_v33 = vld [vmem:[%s187_s24 + $0x58] sm:$0xff]  ;;  %15315 = vst [vmem:[%s21462_s4 + $0x60] sm:$0xff] %v15299_v35  ;;  %15316 = vst [vmem:[%s21462_s4 + $0x70] sm:$0xff] %v15300_v55  ;;  %v15305_v12 = vld [vmem:[%s187_s24 + $0x60] sm:$0xff] }
 0x38d   : > { %v15064_v61 = vsel %vm15056_vm2, %v21978_v7, %v14836_v22  ;;  %v17813_v11 = vunpack.i.h.bf16 %v17811_v63  ;;  %v17812_v17 = vunpack.i.l.bf16 %v17811_v63  ;;  %v15003_v14 = vsel %vm14988_vm14, %v14986_v32, %v17753_v19  ;;  %15317 = vst [vmem:[%s21462_s4 + $0x80] sm:$0xff] %v15301_v0  ;;  %v15306_v46 = vld [vmem:[%s187_s24 + $0x68] sm:$0xff]  ;;  %v15307_v1 = vld [vmem:[%s187_s24 + $0x70] sm:$0xff]  ;;  %15318 = vst [vmem:[%s21462_s4 + $0x90] sm:$0xff] %v15302_v9 }
 0x38e   : > { %15448 = vmatprep.mubr.msk.f32.mxu0 %vm15095_vm3, %v15064_v61  ;;  %v15020_v39 = vsel %vm15005_vm15, %v15003_v14, %v21388_v21  ;;  %15319 = vst [vmem:[%s21462_s4 + $0xa0] sm:$0xff] %v15303_v36  ;;  %15320 = vst [vmem:[%s21462_s4 + $0xb0] sm:$0xff] %v15304_v33 }
 0x38f   : > { %v14962_v31 = vsel %vm14954_vm12, %v14945_v28, %v17812_v17  ;;  %v14970_v34 = vsel %vm14954_vm12, %v14953_v38, %v17813_v11  ;;  %15283 = vmatmul.mubr.f32.gmra.mrb[140].mxu1 %v15020_v39  ;;  %15321 = vst [vmem:[%s21462_s4 + $0xc0] sm:$0xff] %v15305_v12  ;;  %15322 = vst [vmem:[%s21462_s4 + $0xd0] sm:$0xff] %v15306_v46 }
 0x390   : > { %v14852_v8 = vpop.permute.xlu1 %14851  ;;  %v14979_v29 = vsel %vm14971_vm13, %v14962_v31, %v17817_v48  ;;  %v14987_v25 = vsel %vm14971_vm13, %v14970_v34, %v17818_v47  ;;  %15323 = vst [vmem:[%s21462_s4 + $0xe0] sm:$0xff] %v15307_v1 }
 0x391   : > { %v15072_v21 = vsel %vm15056_vm2, %v15055_v26, %v14852_v8  ;;  %v14996_v15 = vsel %vm14988_vm14, %v14979_v29, %v17792_v57  ;;  %v15004_v27 = vsel %vm14988_vm14, %v14987_v25, %v17793_v45 }
 0x392   : > { %15456 = vmatprep.mubr.msk.f32.mxu1 %vm15095_vm3, %v15072_v21  ;;  %v15013_v60 = vsel %vm15005_vm15, %v14996_v15, %v21979_v59  ;;  %v15021_v58 = vsel %vm15005_vm15, %v15004_v27, %v21437_v18 }
 0x393   : > { %15248 = vmatmul.mubr.f32.gmra.mrb[142].mxu0 %v15013_v60  ;;  %15288 = vmatmul.mubr.f32.gmra.mrb[142].mxu1 %v15021_v58 }
 0x3a5   : > { %v15219_v16 = vpop.f32.mrb[130].mxu0 }
 0x3a6   : > { %v15254_v62 = vpop.f32.mrb[128].mxu1  ;;  %15326 = vst [vmem:[%s21462_s4 + $0x18] sm:$0xff] %v15219_v16  ;;  %v15221_v5 = vpop.f32.mrb[131].mxu0 }
 0x3a7   : > { %15333 = vst [vmem:[%s21462_s4 + $0x88] sm:$0xff] %v15254_v62  ;;  %v15256_v51 = vpop.f32.mrb[129].mxu1 }
 0x3c8   : > { %v15259_v13 = vpop.f32.mrb[130].mxu1 }
 0x3c9   : > { %15334 = vst [vmem:[%s21462_s4 + $0x98] sm:$0xff] %v15259_v13  ;;  %v15261_v43 = vpop.f32.mrb[131].mxu1  ;;  %v15224_v50 = vpop.f32.mrb[132].mxu0 }
 0x3ca   : > { %15327 = vst [vmem:[%s21462_s4 + $0x28] sm:$0xff] %v15224_v50  ;;  %v15226_v49 = vpop.f32.mrb[133].mxu0 }
 0x3df   : > { %v15264_v6 = vpop.f32.mrb[132].mxu1 }
 0x3e0   : > { %15335 = vst [vmem:[%s21462_s4 + $0xa8] sm:$0xff] %v15264_v6  ;;  %v15266_v18 = vpop.f32.mrb[133].mxu1 }
 0x3e2   : > { %v15229_v3 = vpop.f32.mrb[134].mxu0 }
 0x3e3   : > { %15328 = vst [vmem:[%s21462_s4 + $0x38] sm:$0xff] %v15229_v3  ;;  %v15231_v42 = vpop.f32.mrb[135].mxu0 }
 0x401   : > { %v15269_v56 = vpop.f32.mrb[134].mxu1 }
 0x402   : > { %15336 = vst [vmem:[%s21462_s4 + $0xb8] sm:$0xff] %v15269_v56  ;;  %v15271_v40 = vpop.f32.mrb[135].mxu1 }
 0x406   : > { %v15234_v24 = vpop.f32.mrb[136].mxu0 }
 0x407   : > { %15329 = vst [vmem:[%s21462_s4 + $0x48] sm:$0xff] %v15234_v24  ;;  %v15236_v19 = vpop.f32.mrb[137].mxu0 }
 0x424   : > { %v15274_v53 = vpop.f32.mrb[136].mxu1 }
 0x425   : > { %15337 = vst [vmem:[%s21462_s4 + $0xc8] sm:$0xff] %v15274_v53  ;;  %v15276_v52 = vpop.f32.mrb[137].mxu1 }
 0x427   : > { %v15239_v41 = vpop.f32.mrb[138].mxu0 }
 0x428   : > { %15330 = vst [vmem:[%s21462_s4 + $0x58] sm:$0xff] %v15239_v41  ;;  %v15241_v44 = vpop.f32.mrb[139].mxu0 }
 0x444   : > { %v15279_v2 = vpop.f32.mrb[138].mxu1 }
 0x445   : > { %15338 = vst [vmem:[%s21462_s4 + $0xd8] sm:$0xff] %v15279_v2  ;;  %v15281_v28 = vpop.f32.mrb[139].mxu1 }
 0x448   : > { %v15244_v22 = vpop.f32.mrb[140].mxu0 }
 0x449   : > { %15331 = vst [vmem:[%s21462_s4 + $0x68] sm:$0xff] %v15244_v22  ;;  %v15246_v63 = vpop.f32.mrb[141].mxu0 }
 0x462   : > { %v15284_v32 = vpop.f32.mrb[140].mxu1 }
 0x463   : > { %15339 = vst [vmem:[%s21462_s4 + $0xe8] sm:$0xff] %v15284_v32  ;;  %v15286_v7 = vpop.f32.mrb[141].mxu1 }
 0x466   : > { %v15249_v61 = vpop.f32.mrb[142].mxu0  ;;  %v15289_v11 = vpop.f32.mrb[142].mxu1 }
 0x467   : > { %15332 = vst [vmem:[%s21462_s4 + $0x78] sm:$0xff] %v15249_v61  ;;  %15340 = vst [vmem:[%s21462_s4 + $0xf8] sm:$0xff] %v15289_v11  ;;  %v15251_v17 = vpop.f32.mrb[143].mxu0  ;;  %v15291_v14 = vpop.f32.mrb[143].mxu1 }
 0x468   : > { %17832 = shalt.err (!%p17829_p4)
}
 0x469   : > { %s17833_s8 = scalar_lea.hbm %s21533_s17, 4096  ;;  %s17837_s4 = scalar_lea.hbm %s21585_s3, 8192 }
 0x46a   : > { %p17834_p7 = scmp.ne.s32.totalorder %s21533_s17, %s17833_s8  ;;  %p17838_p10 = scmp.lt.u32.totalorder %s21533_s17, %s21585_s3 }
 0x46b   : > { %p17839_p11 = scmp.lt.u32.totalorder %s17837_s4, %s17833_s8  ;;  %p17841_p13 = scmp.lt.u32.totalorder %s17833_s8, %s21533_s17 }
 0x46c   : > { %p17835_p8 = pnand %p17834_p7, %p17960_p5 }
 0x46d   : > { %p17840_p12 = por %p17839_p11, %p17838_p10 }
 0x46e   : > { %p17836_p9 = pneg %p17835_p8 }
 0x46f   : > { %p17842_p0 = por %p17841_p13, %p17840_p12 }
 0x471   : > { %p17843_p1 = pnand %p17842_p0, %p17836_p9 }
 0x473   : > { %17846 = shalt.err (!%p17843_p1)
}
 0x474   : > { %s17900_s7 = smov 256   ;;  %s17901_s10 = smov 16  }
 0x475   : > { %17442 = dma.vmem_to_hbm [thread:$0]  (%p17960_p5), %s21535_s27, 4096, %s21533_s17, %s21541_s16, %s17900_s7, %s17900_s7, %s17901_s10  }
 0x476 PF: > { %p17448_p2 = scmp.ge.s32.totalorder %s17881_s15, 2  ;;  %s15371_s24 = sand.u32 1, %s17869_s12  }
 0x477   : > { %s15372_s11 = scalar_lea.sflag [#allocation3], %s15371_s24 }
 0x478   : > { %p17445_p3 = pnand %p17448_p2, %p17964_p6 }
 0x47a   : > { %17864 = dma.done.wait (!%p17445_p3), %s15372_s11, 4096  }
 0x47b   : > { %17866 = vsyncadd (!%p17445_p3), %s15372_s11, 4294963200  ;;  %p13_p4 = scmp.ge.s32.totalorder %s17947_s18, 4   ;;  %s21980_s12 = smov %s17873_s13 }
 0x47c   : > { %s21981_s13 = smov %s17877_s14  ;;  %s21982_s14 = smov %s17958_s21 }
 0x47d   : > { %s21983_s15 = smov %s17947_s18  ;;  %15 = sbr.rel (!%p13_p4) target bundleno = 3 (0x3), region = 70 }
 0x484   :  { %15377 = vsyncpa [#allocation3], 1 }
 0x485   :  { %15379 = vsyncpa [#allocation3 + $0x1], 1 }

</bundles_post_ra>
